<compile_context>
chip_gen: v7x
topology: tpu7x:2x2x1
jax: 0.10.0
libtpu: 0.0.40
codegen_flags: <defaults>
</compile_context>

<pallas_src>
import math
from collections import defaultdict

import numpy as np
import jax
import jax.numpy as jnp
from jax.experimental import pallas as pl
from jax.experimental.pallas import tpu as pltpu

N_BATCH = 2
IN_H = IN_W = 60          # floor((60-30)/2)+1 = 16 conv out, /4 pool -> 4 => 16*4*4 = 256
K = 30
STRIDE = 2
OH = OW = 16              # conv output spatial
POOL = 4
PH = PW = OH // POOL      # pooled spatial = 4x4
C_OUT = 16
PATCH = K * K             # 900
PATCH_PAD = 1024          # contraction dim padded to a multiple of 128
NWIN = PH * PW            # 16 pool windows per image
WSZ = POOL * POOL         # 16 conv positions per pool window
FC_IN = C_OUT * NWIN      # 256
FC_OUT = 2
FC_PAD = 128              # lane-dense logits output (wrapper slices [:, :2])


def fused_forward_kernel(p_ref, w_ref, b_ref, cw_ref, fb_ref, pooled_ref, logits_ref):
    """conv (im2col matmul) + bias + ReLU + 4x4 max-pool + fc3, one grid step.

    p_ref:      (N*256, 1024) bf16  im2col patches, row = (win*N + n)*16 + within
    w_ref:      (1024, 16)    bf16  conv weight (column = output channel)
    b_ref:      (1, 16)       f32   conv bias
    cw_ref:     (16, 16, 384) f32   per-window [one-hot scatter(256) | fc3 cols(128)]
    fb_ref:     (1, 128)      f32   fc3 bias, zero padded
    pooled_ref: (N, 256)      f32   pooled activations, flat index = c*16 + win (NCHW order)
    logits_ref: (N, 128)      f32   logits in cols [0:2], zeros elsewhere
    """
    nb = pooled_ref.shape[0]

    # Whole-batch conv as a single MXU matmul: bf16 operands, f32 accumulation.
    y = jnp.dot(p_ref[...], w_ref[...], preferred_element_type=jnp.float32)   # (N*256, 16)
    y = jnp.maximum(y + b_ref[...], 0.0)                                      # bias + ReLU (f32 VPU)

    # Rows are (win*nb + n)*16 + within  ->  4x4 max-pool = sublane-group reduce.
    pooled = jnp.max(y.reshape(NWIN * nb, WSZ, C_OUT), axis=1)                # (nb*16, 16)

    # Combined "scatter-to-flat + fc3": for each pool window w,
    #   (nb, 16ch) @ (16ch, 256 + 128)
    # cols [0,256):  one-hot scatter to channel-major flat index c*16 + w
    #                (== PyTorch's view(-1, 256) order) -> lane-dense pooled output
    # cols [256,384): fc3 weight columns for window w   -> lane-dense logits
    acc = jnp.zeros((nb, FC_IN + FC_PAD), dtype=jnp.float32)
    for w in range(NWIN):
        blk = pooled[w * nb:(w + 1) * nb, :]                                  # (nb, 16)
        acc = acc + jnp.dot(blk, cw_ref[w], preferred_element_type=jnp.float32)

    pooled_ref[...] = acc[:, :FC_IN]
    logits_ref[...] = acc[:, FC_IN:] + fb_ref[...]


def im2col_pool_ordered(x):
    """Glue (gather/reshape/transpose): (N,1,60,60) f32 -> (N*256, 1024) bf16 patches.

    Row = (win*N + n)*16 + within with win = ph*4+pw, within = ih*4+iw, so every pool
    window's 16 conv positions of one image occupy 16 consecutive rows (kernel pools
    with one sublane-group reduce).  Contraction dim zero-padded 900 -> 1024.
    """
    n = x.shape[0]
    x2 = x[:, 0].astype(jnp.bfloat16)                                         # (N, 60, 60)
    r = (jnp.arange(OH) * STRIDE)[:, None] + jnp.arange(K)[None, :]           # (16, 30)
    c = (jnp.arange(OW) * STRIDE)[:, None] + jnp.arange(K)[None, :]           # (16, 30)
    p = x2[:, r[:, None, :, None], c[None, :, None, :]]                       # (N,16,16,30,30)
    p = p.reshape(n, PH, POOL, PW, POOL, K, K)                                # (n,ph,ih,pw,iw,kh,kw)
    p = p.transpose(1, 3, 0, 2, 4, 5, 6)                                      # (ph,pw,n,ih,iw,kh,kw)
    p = p.reshape(NWIN * n * WSZ, PATCH)
    return jnp.pad(p, ((0, 0), (0, PATCH_PAD - PATCH)))


@jax.jit
def net_forward(x, conv_w, conv_b, fc_w, fc_b):
    n = x.shape[0]
    patches = im2col_pool_ordered(x)                                          # (N*256, 1024) bf16
    w_mat = jnp.pad(conv_w.reshape(C_OUT, PATCH).T,
                    ((0, PATCH_PAD - PATCH), (0, 0))).astype(jnp.bfloat16)     # (1024, 16) bf16
    b_row = conv_b.reshape(1, C_OUT).astype(jnp.float32)

    # Per-window combined weight: one-hot scatter (-> channel-major flat pooled)
    # concatenated with the fc3 columns for that window (fc3 fused into the kernel).
    #   fw3[w, c, o] = fc_w[o, c*16 + w]
    fw3 = fc_w.reshape(FC_OUT, C_OUT, NWIN).transpose(2, 1, 0)                 # (16, 16, 2)
    fw3 = jnp.pad(fw3, ((0, 0), (0, 0), (0, FC_PAD - FC_OUT)))                 # (16, 16, 128)
    col = jnp.arange(FC_IN)[None, None, :]
    tgt = (jnp.arange(C_OUT)[None, :, None] * NWIN
           + jnp.arange(NWIN)[:, None, None])
    scatter = (col == tgt).astype(jnp.float32)                                 # (16, 16, 256)
    cw = jnp.concatenate([scatter, fw3.astype(jnp.float32)], axis=-1)          # (16, 16, 384)
    fb_row = jnp.pad(fc_b, (0, FC_PAD - FC_OUT)).reshape(1, FC_PAD).astype(jnp.float32)

    pooled_flat, logits_pad = pl.pallas_call(
        fused_forward_kernel,
        out_shape=(
            jax.ShapeDtypeStruct((n, FC_IN), jnp.float32),
            jax.ShapeDtypeStruct((n, FC_PAD), jnp.float32),
        ),
        grid=(1,),
        in_specs=[
            pl.BlockSpec((NWIN * n * WSZ, PATCH_PAD), lambda i: (0, 0)),
            pl.BlockSpec((PATCH_PAD, C_OUT), lambda i: (0, 0)),
            pl.BlockSpec((1, C_OUT), lambda i: (0, 0)),
            pl.BlockSpec((NWIN, C_OUT, FC_IN + FC_PAD), lambda i: (0, 0, 0)),
            pl.BlockSpec((1, FC_PAD), lambda i: (0, 0)),
        ],
        out_specs=(
            pl.BlockSpec((n, FC_IN), lambda i: (0, 0)),
            pl.BlockSpec((n, FC_PAD), lambda i: (0, 0)),
        ),
        compiler_params=pltpu.CompilerParams(dimension_semantics=("arbitrary",)),
    )(patches, w_mat, b_row, cw, fb_row)

    # Dropout(p=0.5): eval-mode identity.
    # TODO(synk): training-mode dropout (random mask * 1/(1-p)) not reproduced.
    pooled_nchw = pooled_flat.reshape(n, C_OUT, PH, PW)   # channel-major flat == NCHW
    logits = logits_pad[:, :FC_OUT]
    return logits, pooled_nchw


def reference_forward(x, conv_w, conv_b, fc_w, fc_b):
    """Pure-JAX f32 reference of Net.forward (eval mode)."""
    y = jax.lax.conv_general_dilated(
        x, conv_w, window_strides=(STRIDE, STRIDE), padding="VALID",
        dimension_numbers=("NCHW", "OIHW", "NCHW"),
        precision=jax.lax.Precision.HIGHEST)
    y = jnp.maximum(y + conv_b[None, :, None, None], 0.0)                      # (N,16,16,16)
    n = x.shape[0]
    pooled = jnp.max(y.reshape(n, C_OUT, PH, POOL, PW, POOL), axis=(3, 5))     # (N,16,4,4)
    logits = pooled.reshape(n, FC_IN) @ fc_w.T + fc_b
    return logits, pooled


if __name__ == "__main__":
    key = jax.random.PRNGKey(0)
    kx, kcw, kcb, kfw, kfb = jax.random.split(key, 5)

    # Deterministic inputs / parameters (shapes from Net.__init__; values synthetic).
    x = jax.random.normal(kx, (N_BATCH, 1, IN_H, IN_W), dtype=jnp.float32)
    cbound = 1.0 / math.sqrt(1 * K * K)
    conv_w = jax.random.uniform(kcw, (C_OUT, 1, K, K), jnp.float32, -cbound, cbound)
    conv_b = jax.random.uniform(kcb, (C_OUT,), jnp.float32, -cbound, cbound)
    fbound = 1.0 / math.sqrt(FC_IN)
    fc_w = jax.random.uniform(kfw, (FC_OUT, FC_IN), jnp.float32, -fbound, fbound)
    fc_b = jax.random.uniform(kfb, (FC_OUT,), jnp.float32, -fbound, fbound)

    logits, pooled_nchw = net_forward(x, conv_w, conv_b, fc_w, fc_b)
    jax.block_until_ready((logits, pooled_nchw))

    # Loose f32 reference check (kernel uses bf16 conv operands with f32 accumulation).
    ref_logits, ref_pooled = reference_forward(x, conv_w, conv_b, fc_w, fc_b)
    np.testing.assert_allclose(np.asarray(pooled_nchw), np.asarray(ref_pooled),
                               rtol=5e-2, atol=5e-2)
    np.testing.assert_allclose(np.asarray(logits), np.asarray(ref_logits),
                               rtol=5e-2, atol=5e-2)

    # Reproduce the hidden-activation recording from the PyTorch forward.
    hidden = defaultdict(list)
    hidden["conv-pool1"].append(np.asarray(pooled_nchw).tolist())
    hidden["fc3"].append(np.asarray(logits).tolist())

    assert logits.shape == (N_BATCH, FC_OUT)
    assert pooled_nchw.shape == (N_BATCH, C_OUT, PH, PW)
    assert bool(jnp.all(jnp.isfinite(logits)))
    print("KERNEL_OK")
</pallas_src>

<mosaic_0001>
module attributes {stable_mosaic.version = 11 : i64} {
  func.func @fused_forward_kernel(%arg0: i32, %arg1: memref<512x1024xbf16, #tpu.memory_space<vmem>>, %arg2: memref<1024x16xbf16, #tpu.memory_space<vmem>>, %arg3: memref<1x16xf32, #tpu.memory_space<vmem>>, %arg4: memref<16x16x384xf32, #tpu.memory_space<vmem>>, %arg5: memref<1x128xf32, #tpu.memory_space<vmem>>, %arg6: memref<2x256xf32, #tpu.memory_space<vmem>>, %arg7: memref<2x128xf32, #tpu.memory_space<vmem>>) attributes {dimension_semantics = [#tpu.dimension_semantics<arbitrary>], iteration_bounds = array<i64: 1>, scalar_prefetch = 0 : i64, scratch_operands = 0 : i64, tpu.core_type = #tpu.core_type<tc>, window_params = [{pipeline_mode = #tpu.pipeline_mode<synchronous>, transform_indices = @transform_0, window_bounds = array<i64: 512, 1024>}, {pipeline_mode = #tpu.pipeline_mode<synchronous>, transform_indices = @transform_1, window_bounds = array<i64: 1024, 16>}, {pipeline_mode = #tpu.pipeline_mode<synchronous>, transform_indices = @transform_2, window_bounds = array<i64: 1, 16>}, {pipeline_mode = #tpu.pipeline_mode<synchronous>, transform_indices = @transform_3, window_bounds = array<i64: 16, 16, 384>}, {pipeline_mode = #tpu.pipeline_mode<synchronous>, transform_indices = @transform_4, window_bounds = array<i64: 1, 128>}, {pipeline_mode = #tpu.pipeline_mode<synchronous>, transform_indices = @transform_5, window_bounds = array<i64: 2, 256>}, {pipeline_mode = #tpu.pipeline_mode<synchronous>, transform_indices = @transform_6, window_bounds = array<i64: 2, 128>}]} {
    %c0 = arith.constant 0 : index
    %c0_0 = arith.constant 0 : index
    %0 = vector.load %arg1[%c0, %c0_0] : memref<512x1024xbf16, #tpu.memory_space<vmem>>, vector<512x1024xbf16>
    %c0_1 = arith.constant 0 : index
    %c0_2 = arith.constant 0 : index
    %1 = vector.load %arg2[%c0_1, %c0_2] : memref<1024x16xbf16, #tpu.memory_space<vmem>>, vector<1024x16xbf16>
    %cst = arith.constant dense<0.000000e+00> : vector<512x16xf32>
    %2 = tpu.matmul %0, %1, %cst {dimension_numbers = #tpu.dot_dimension_numbers<[1], [0], [0], [1], [0, 0, 1, 1], [], []>} : vector<512x1024xbf16>, vector<1024x16xbf16>, vector<512x16xf32> -> vector<512x16xf32>
    %c0_3 = arith.constant 0 : index
    %c0_4 = arith.constant 0 : index
    %3 = vector.load %arg3[%c0_3, %c0_4] : memref<1x16xf32, #tpu.memory_space<vmem>>, vector<1x16xf32>
    %4 = vector.broadcast %3 : vector<1x16xf32> to vector<512x16xf32>
    %5 = arith.addf %2, %4 : vector<512x16xf32>
    %cst_5 = arith.constant 0.000000e+00 : f32
    %6 = vector.broadcast %cst_5 : f32 to vector<512x16xf32>
    %7 = arith.maximumf %5, %6 : vector<512x16xf32>
    %8 = vector.shape_cast %7 : vector<512x16xf32> to vector<32x16x16xf32>
    %cst_6 = arith.constant dense<0xFF800000> : vector<32x16xf32>
    %9 = vector.multi_reduction <maximumf>, %8, %cst_6 [1] : vector<32x16x16xf32> to vector<32x16xf32>
    %cst_7 = arith.constant 0.000000e+00 : f32
    %10 = vector.broadcast %cst_7 : f32 to vector<2x384xf32>
    %11 = vector.extract_strided_slice %9 {offsets = [0, 0], sizes = [2, 16], strides = [1, 1]} : vector<32x16xf32> to vector<2x16xf32>
    %c0_8 = arith.constant 0 : index
    %c0_9 = arith.constant 0 : index
    %c0_10 = arith.constant 0 : index
    %12 = vector.load %arg4[%c0_8, %c0_9, %c0_10] : memref<16x16x384xf32, #tpu.memory_space<vmem>>, vector<1x16x384xf32>
    %13 = vector.shape_cast %12 : vector<1x16x384xf32> to vector<16x384xf32>
    %cst_11 = arith.constant dense<0.000000e+00> : vector<2x384xf32>
    %14 = tpu.matmul %11, %13, %cst_11 {dimension_numbers = #tpu.dot_dimension_numbers<[1], [0], [0], [1], [0, 0, 1, 1], [], []>} : vector<2x16xf32>, vector<16x384xf32>, vector<2x384xf32> -> vector<2x384xf32>
    %15 = arith.addf %10, %14 : vector<2x384xf32>
    %16 = vector.extract_strided_slice %9 {offsets = [2, 0], sizes = [2, 16], strides = [1, 1]} : vector<32x16xf32> to vector<2x16xf32>
    %c1 = arith.constant 1 : index
    %c0_12 = arith.constant 0 : index
    %c0_13 = arith.constant 0 : index
    %17 = vector.load %arg4[%c1, %c0_12, %c0_13] : memref<16x16x384xf32, #tpu.memory_space<vmem>>, vector<1x16x384xf32>
    %18 = vector.shape_cast %17 : vector<1x16x384xf32> to vector<16x384xf32>
    %cst_14 = arith.constant dense<0.000000e+00> : vector<2x384xf32>
    %19 = tpu.matmul %16, %18, %cst_14 {dimension_numbers = #tpu.dot_dimension_numbers<[1], [0], [0], [1], [0, 0, 1, 1], [], []>} : vector<2x16xf32>, vector<16x384xf32>, vector<2x384xf32> -> vector<2x384xf32>
    %20 = arith.addf %15, %19 : vector<2x384xf32>
    %21 = vector.extract_strided_slice %9 {offsets = [4, 0], sizes = [2, 16], strides = [1, 1]} : vector<32x16xf32> to vector<2x16xf32>
    %c2 = arith.constant 2 : index
    %c0_15 = arith.constant 0 : index
    %c0_16 = arith.constant 0 : index
    %22 = vector.load %arg4[%c2, %c0_15, %c0_16] : memref<16x16x384xf32, #tpu.memory_space<vmem>>, vector<1x16x384xf32>
    %23 = vector.shape_cast %22 : vector<1x16x384xf32> to vector<16x384xf32>
    %cst_17 = arith.constant dense<0.000000e+00> : vector<2x384xf32>
    %24 = tpu.matmul %21, %23, %cst_17 {dimension_numbers = #tpu.dot_dimension_numbers<[1], [0], [0], [1], [0, 0, 1, 1], [], []>} : vector<2x16xf32>, vector<16x384xf32>, vector<2x384xf32> -> vector<2x384xf32>
    %25 = arith.addf %20, %24 : vector<2x384xf32>
    %26 = vector.extract_strided_slice %9 {offsets = [6, 0], sizes = [2, 16], strides = [1, 1]} : vector<32x16xf32> to vector<2x16xf32>
    %c3 = arith.constant 3 : index
    %c0_18 = arith.constant 0 : index
    %c0_19 = arith.constant 0 : index
    %27 = vector.load %arg4[%c3, %c0_18, %c0_19] : memref<16x16x384xf32, #tpu.memory_space<vmem>>, vector<1x16x384xf32>
    %28 = vector.shape_cast %27 : vector<1x16x384xf32> to vector<16x384xf32>
    %cst_20 = arith.constant dense<0.000000e+00> : vector<2x384xf32>
    %29 = tpu.matmul %26, %28, %cst_20 {dimension_numbers = #tpu.dot_dimension_numbers<[1], [0], [0], [1], [0, 0, 1, 1], [], []>} : vector<2x16xf32>, vector<16x384xf32>, vector<2x384xf32> -> vector<2x384xf32>
    %30 = arith.addf %25, %29 : vector<2x384xf32>
    %31 = vector.extract_strided_slice %9 {offsets = [8, 0], sizes = [2, 16], strides = [1, 1]} : vector<32x16xf32> to vector<2x16xf32>
    %c4 = arith.constant 4 : index
    %c0_21 = arith.constant 0 : index
    %c0_22 = arith.constant 0 : index
    %32 = vector.load %arg4[%c4, %c0_21, %c0_22] : memref<16x16x384xf32, #tpu.memory_space<vmem>>, vector<1x16x384xf32>
    %33 = vector.shape_cast %32 : vector<1x16x384xf32> to vector<16x384xf32>
    %cst_23 = arith.constant dense<0.000000e+00> : vector<2x384xf32>
    %34 = tpu.matmul %31, %33, %cst_23 {dimension_numbers = #tpu.dot_dimension_numbers<[1], [0], [0], [1], [0, 0, 1, 1], [], []>} : vector<2x16xf32>, vector<16x384xf32>, vector<2x384xf32> -> vector<2x384xf32>
    %35 = arith.addf %30, %34 : vector<2x384xf32>
    %36 = vector.extract_strided_slice %9 {offsets = [10, 0], sizes = [2, 16], strides = [1, 1]} : vector<32x16xf32> to vector<2x16xf32>
    %c5 = arith.constant 5 : index
    %c0_24 = arith.constant 0 : index
    %c0_25 = arith.constant 0 : index
    %37 = vector.load %arg4[%c5, %c0_24, %c0_25] : memref<16x16x384xf32, #tpu.memory_space<vmem>>, vector<1x16x384xf32>
    %38 = vector.shape_cast %37 : vector<1x16x384xf32> to vector<16x384xf32>
    %cst_26 = arith.constant dense<0.000000e+00> : vector<2x384xf32>
    %39 = tpu.matmul %36, %38, %cst_26 {dimension_numbers = #tpu.dot_dimension_numbers<[1], [0], [0], [1], [0, 0, 1, 1], [], []>} : vector<2x16xf32>, vector<16x384xf32>, vector<2x384xf32> -> vector<2x384xf32>
    %40 = arith.addf %35, %39 : vector<2x384xf32>
    %41 = vector.extract_strided_slice %9 {offsets = [12, 0], sizes = [2, 16], strides = [1, 1]} : vector<32x16xf32> to vector<2x16xf32>
    %c6 = arith.constant 6 : index
    %c0_27 = arith.constant 0 : index
    %c0_28 = arith.constant 0 : index
    %42 = vector.load %arg4[%c6, %c0_27, %c0_28] : memref<16x16x384xf32, #tpu.memory_space<vmem>>, vector<1x16x384xf32>
    %43 = vector.shape_cast %42 : vector<1x16x384xf32> to vector<16x384xf32>
    %cst_29 = arith.constant dense<0.000000e+00> : vector<2x384xf32>
    %44 = tpu.matmul %41, %43, %cst_29 {dimension_numbers = #tpu.dot_dimension_numbers<[1], [0], [0], [1], [0, 0, 1, 1], [], []>} : vector<2x16xf32>, vector<16x384xf32>, vector<2x384xf32> -> vector<2x384xf32>
    %45 = arith.addf %40, %44 : vector<2x384xf32>
    %46 = vector.extract_strided_slice %9 {offsets = [14, 0], sizes = [2, 16], strides = [1, 1]} : vector<32x16xf32> to vector<2x16xf32>
    %c7 = arith.constant 7 : index
    %c0_30 = arith.constant 0 : index
    %c0_31 = arith.constant 0 : index
    %47 = vector.load %arg4[%c7, %c0_30, %c0_31] : memref<16x16x384xf32, #tpu.memory_space<vmem>>, vector<1x16x384xf32>
    %48 = vector.shape_cast %47 : vector<1x16x384xf32> to vector<16x384xf32>
    %cst_32 = arith.constant dense<0.000000e+00> : vector<2x384xf32>
    %49 = tpu.matmul %46, %48, %cst_32 {dimension_numbers = #tpu.dot_dimension_numbers<[1], [0], [0], [1], [0, 0, 1, 1], [], []>} : vector<2x16xf32>, vector<16x384xf32>, vector<2x384xf32> -> vector<2x384xf32>
    %50 = arith.addf %45, %49 : vector<2x384xf32>
    %51 = vector.extract_strided_slice %9 {offsets = [16, 0], sizes = [2, 16], strides = [1, 1]} : vector<32x16xf32> to vector<2x16xf32>
    %c8 = arith.constant 8 : index
    %c0_33 = arith.constant 0 : index
    %c0_34 = arith.constant 0 : index
    %52 = vector.load %arg4[%c8, %c0_33, %c0_34] : memref<16x16x384xf32, #tpu.memory_space<vmem>>, vector<1x16x384xf32>
    %53 = vector.shape_cast %52 : vector<1x16x384xf32> to vector<16x384xf32>
    %cst_35 = arith.constant dense<0.000000e+00> : vector<2x384xf32>
    %54 = tpu.matmul %51, %53, %cst_35 {dimension_numbers = #tpu.dot_dimension_numbers<[1], [0], [0], [1], [0, 0, 1, 1], [], []>} : vector<2x16xf32>, vector<16x384xf32>, vector<2x384xf32> -> vector<2x384xf32>
    %55 = arith.addf %50, %54 : vector<2x384xf32>
    %56 = vector.extract_strided_slice %9 {offsets = [18, 0], sizes = [2, 16], strides = [1, 1]} : vector<32x16xf32> to vector<2x16xf32>
    %c9 = arith.constant 9 : index
    %c0_36 = arith.constant 0 : index
    %c0_37 = arith.constant 0 : index
    %57 = vector.load %arg4[%c9, %c0_36, %c0_37] : memref<16x16x384xf32, #tpu.memory_space<vmem>>, vector<1x16x384xf32>
    %58 = vector.shape_cast %57 : vector<1x16x384xf32> to vector<16x384xf32>
    %cst_38 = arith.constant dense<0.000000e+00> : vector<2x384xf32>
    %59 = tpu.matmul %56, %58, %cst_38 {dimension_numbers = #tpu.dot_dimension_numbers<[1], [0], [0], [1], [0, 0, 1, 1], [], []>} : vector<2x16xf32>, vector<16x384xf32>, vector<2x384xf32> -> vector<2x384xf32>
    %60 = arith.addf %55, %59 : vector<2x384xf32>
    %61 = vector.extract_strided_slice %9 {offsets = [20, 0], sizes = [2, 16], strides = [1, 1]} : vector<32x16xf32> to vector<2x16xf32>
    %c10 = arith.constant 10 : index
    %c0_39 = arith.constant 0 : index
    %c0_40 = arith.constant 0 : index
    %62 = vector.load %arg4[%c10, %c0_39, %c0_40] : memref<16x16x384xf32, #tpu.memory_space<vmem>>, vector<1x16x384xf32>
    %63 = vector.shape_cast %62 : vector<1x16x384xf32> to vector<16x384xf32>
    %cst_41 = arith.constant dense<0.000000e+00> : vector<2x384xf32>
    %64 = tpu.matmul %61, %63, %cst_41 {dimension_numbers = #tpu.dot_dimension_numbers<[1], [0], [0], [1], [0, 0, 1, 1], [], []>} : vector<2x16xf32>, vector<16x384xf32>, vector<2x384xf32> -> vector<2x384xf32>
    %65 = arith.addf %60, %64 : vector<2x384xf32>
    %66 = vector.extract_strided_slice %9 {offsets = [22, 0], sizes = [2, 16], strides = [1, 1]} : vector<32x16xf32> to vector<2x16xf32>
    %c11 = arith.constant 11 : index
    %c0_42 = arith.constant 0 : index
    %c0_43 = arith.constant 0 : index
    %67 = vector.load %arg4[%c11, %c0_42, %c0_43] : memref<16x16x384xf32, #tpu.memory_space<vmem>>, vector<1x16x384xf32>
    %68 = vector.shape_cast %67 : vector<1x16x384xf32> to vector<16x384xf32>
    %cst_44 = arith.constant dense<0.000000e+00> : vector<2x384xf32>
    %69 = tpu.matmul %66, %68, %cst_44 {dimension_numbers = #tpu.dot_dimension_numbers<[1], [0], [0], [1], [0, 0, 1, 1], [], []>} : vector<2x16xf32>, vector<16x384xf32>, vector<2x384xf32> -> vector<2x384xf32>
    %70 = arith.addf %65, %69 : vector<2x384xf32>
    %71 = vector.extract_strided_slice %9 {offsets = [24, 0], sizes = [2, 16], strides = [1, 1]} : vector<32x16xf32> to vector<2x16xf32>
    %c12 = arith.constant 12 : index
    %c0_45 = arith.constant 0 : index
    %c0_46 = arith.constant 0 : index
    %72 = vector.load %arg4[%c12, %c0_45, %c0_46] : memref<16x16x384xf32, #tpu.memory_space<vmem>>, vector<1x16x384xf32>
    %73 = vector.shape_cast %72 : vector<1x16x384xf32> to vector<16x384xf32>
    %cst_47 = arith.constant dense<0.000000e+00> : vector<2x384xf32>
    %74 = tpu.matmul %71, %73, %cst_47 {dimension_numbers = #tpu.dot_dimension_numbers<[1], [0], [0], [1], [0, 0, 1, 1], [], []>} : vector<2x16xf32>, vector<16x384xf32>, vector<2x384xf32> -> vector<2x384xf32>
    %75 = arith.addf %70, %74 : vector<2x384xf32>
    %76 = vector.extract_strided_slice %9 {offsets = [26, 0], sizes = [2, 16], strides = [1, 1]} : vector<32x16xf32> to vector<2x16xf32>
    %c13 = arith.constant 13 : index
    %c0_48 = arith.constant 0 : index
    %c0_49 = arith.constant 0 : index
    %77 = vector.load %arg4[%c13, %c0_48, %c0_49] : memref<16x16x384xf32, #tpu.memory_space<vmem>>, vector<1x16x384xf32>
    %78 = vector.shape_cast %77 : vector<1x16x384xf32> to vector<16x384xf32>
    %cst_50 = arith.constant dense<0.000000e+00> : vector<2x384xf32>
    %79 = tpu.matmul %76, %78, %cst_50 {dimension_numbers = #tpu.dot_dimension_numbers<[1], [0], [0], [1], [0, 0, 1, 1], [], []>} : vector<2x16xf32>, vector<16x384xf32>, vector<2x384xf32> -> vector<2x384xf32>
    %80 = arith.addf %75, %79 : vector<2x384xf32>
    %81 = vector.extract_strided_slice %9 {offsets = [28, 0], sizes = [2, 16], strides = [1, 1]} : vector<32x16xf32> to vector<2x16xf32>
    %c14 = arith.constant 14 : index
    %c0_51 = arith.constant 0 : index
    %c0_52 = arith.constant 0 : index
    %82 = vector.load %arg4[%c14, %c0_51, %c0_52] : memref<16x16x384xf32, #tpu.memory_space<vmem>>, vector<1x16x384xf32>
    %83 = vector.shape_cast %82 : vector<1x16x384xf32> to vector<16x384xf32>
    %cst_53 = arith.constant dense<0.000000e+00> : vector<2x384xf32>
    %84 = tpu.matmul %81, %83, %cst_53 {dimension_numbers = #tpu.dot_dimension_numbers<[1], [0], [0], [1], [0, 0, 1, 1], [], []>} : vector<2x16xf32>, vector<16x384xf32>, vector<2x384xf32> -> vector<2x384xf32>
    %85 = arith.addf %80, %84 : vector<2x384xf32>
    %86 = vector.extract_strided_slice %9 {offsets = [30, 0], sizes = [2, 16], strides = [1, 1]} : vector<32x16xf32> to vector<2x16xf32>
    %c15 = arith.constant 15 : index
    %c0_54 = arith.constant 0 : index
    %c0_55 = arith.constant 0 : index
    %87 = vector.load %arg4[%c15, %c0_54, %c0_55] : memref<16x16x384xf32, #tpu.memory_space<vmem>>, vector<1x16x384xf32>
    %88 = vector.shape_cast %87 : vector<1x16x384xf32> to vector<16x384xf32>
    %cst_56 = arith.constant dense<0.000000e+00> : vector<2x384xf32>
    %89 = tpu.matmul %86, %88, %cst_56 {dimension_numbers = #tpu.dot_dimension_numbers<[1], [0], [0], [1], [0, 0, 1, 1], [], []>} : vector<2x16xf32>, vector<16x384xf32>, vector<2x384xf32> -> vector<2x384xf32>
    %90 = arith.addf %85, %89 : vector<2x384xf32>
    %91 = vector.extract_strided_slice %90 {offsets = [0, 0], sizes = [2, 256], strides = [1, 1]} : vector<2x384xf32> to vector<2x256xf32>
    %c0_57 = arith.constant 0 : index
    %c0_58 = arith.constant 0 : index
    %92 = vector.load %arg6[%c0_57, %c0_58] : memref<2x256xf32, #tpu.memory_space<vmem>>, vector<2x256xf32>
    tpu.vector_store %arg6[%c0_57, %c0_58], %91 {strides = array<i32>} : memref<2x256xf32, #tpu.memory_space<vmem>>, vector<2x256xf32>,
    %93 = vector.extract_strided_slice %90 {offsets = [0, 256], sizes = [2, 128], strides = [1, 1]} : vector<2x384xf32> to vector<2x128xf32>
    %c0_59 = arith.constant 0 : index
    %c0_60 = arith.constant 0 : index
    %94 = vector.load %arg5[%c0_59, %c0_60] : memref<1x128xf32, #tpu.memory_space<vmem>>, vector<1x128xf32>
    %95 = vector.broadcast %94 : vector<1x128xf32> to vector<2x128xf32>
    %96 = arith.addf %93, %95 : vector<2x128xf32>
    %c0_61 = arith.constant 0 : index
    %c0_62 = arith.constant 0 : index
    %97 = vector.load %arg7[%c0_61, %c0_62] : memref<2x128xf32, #tpu.memory_space<vmem>>, vector<2x128xf32>
    tpu.vector_store %arg7[%c0_61, %c0_62], %96 {strides = array<i32>} : memref<2x128xf32, #tpu.memory_space<vmem>>, vector<2x128xf32>,
    return
  }
  func.func @transform_0(%arg0: i32) -> (i32, i32) {
    %c0_i32 = arith.constant 0 : i32
    %c0_i32_0 = arith.constant 0 : i32
    %c0_i32_1 = arith.constant 0 : i32
    return %c0_i32, %c0_i32_0 : i32, i32
  }
  func.func @transform_1(%arg0: i32) -> (i32, i32) {
    %c0_i32 = arith.constant 0 : i32
    %c0_i32_0 = arith.constant 0 : i32
    %c0_i32_1 = arith.constant 0 : i32
    return %c0_i32, %c0_i32_0 : i32, i32
  }
  func.func @transform_2(%arg0: i32) -> (i32, i32) {
    %c0_i32 = arith.constant 0 : i32
    %c0_i32_0 = arith.constant 0 : i32
    %c0_i32_1 = arith.constant 0 : i32
    return %c0_i32, %c0_i32_0 : i32, i32
  }
  func.func @transform_3(%arg0: i32) -> (i32, i32, i32) {
    %c0_i32 = arith.constant 0 : i32
    %c0_i32_0 = arith.constant 0 : i32
    %c0_i32_1 = arith.constant 0 : i32
    %c0_i32_2 = arith.constant 0 : i32
    return %c0_i32, %c0_i32_0, %c0_i32_1 : i32, i32, i32
  }
  func.func @transform_4(%arg0: i32) -> (i32, i32) {
    %c0_i32 = arith.constant 0 : i32
    %c0_i32_0 = arith.constant 0 : i32
    %c0_i32_1 = arith.constant 0 : i32
    return %c0_i32, %c0_i32_0 : i32, i32
  }
  func.func @transform_5(%arg0: i32) -> (i32, i32) {
    %c0_i32 = arith.constant 0 : i32
    %c0_i32_0 = arith.constant 0 : i32
    %c0_i32_1 = arith.constant 0 : i32
    return %c0_i32, %c0_i32_0 : i32, i32
  }
  func.func @transform_6(%arg0: i32) -> (i32, i32) {
    %c0_i32 = arith.constant 0 : i32
    %c0_i32_0 = arith.constant 0 : i32
    %c0_i32_1 = arith.constant 0 : i32
    return %c0_i32, %c0_i32_0 : i32, i32
  }
}

</mosaic_0001>

<bundles_post_ra>
// kernel: net_forward.1
= control target key start
LH: loop header
LB: loop body
LE: loop exit
PB: predicated region body
PF: predicated region fallthrough
CT: control target
= control target key end

     0   :  { %v7374_v1 = vmov 0   ;;  %s9274_s0 = inlined_call_operand.vmem [shape: bf16[512,1024], index: 0, kind: input, shape index: {}]   ;;  %s9275_s1 = inlined_call_operand.vmem [shape: bf16[1024,16], index: 1, kind: input, shape index: {}]   ;;  %s9276_s2 = inlined_call_operand.vmem [shape: f32[1,16], index: 2, kind: input, shape index: {}]   ;;  %s9277_s3 = inlined_call_operand.vmem [shape: f32[16,16,384], index: 3, kind: input, shape index: {}]   ;;  %s9278_s4 = inlined_call_operand.vmem [shape: f32[1,128], index: 4, kind: input, shape index: {}]   ;;  %s9279_s5 = inlined_call_operand.vmem [shape: f32[2,256], index: 5, kind: output, shape index: {0}]   ;;  %s9280_s6 = inlined_call_operand.hbm [shape: f32[2,128], index: 6, kind: output, shape index: {1}]  }
   0x1   :  { %v7285_v0 = vld [vmem:[%s9275_s1] sm:$0xff]   ;;  %2079 = vmatprep.subr.bf16.mxu1 %v7374_v1  ;;  %2368 = vmatprep.subr.bf16.mxu0 %v7374_v1  ;;  %v7287_v3 = vld [vmem:[%s9275_s1 + $0x8] sm:$0xff]   ;;  %v7289_v5 = vld [vmem:[%s9275_s1 + $0x10] sm:$0xff]  }
   0x2   :  { %v7422_v2 = vld [vmem:[%s9275_s1 + $0x80] sm:$0xff]   ;;  %2080 = vmatpush1.bf16.msra.mxu1 %v7285_v0  ;;  %v7432_v4 = vld [vmem:[%s9275_s1 + $0x88] sm:$0xff]   ;;  %v7443_v6 = vld [vmem:[%s9275_s1 + $0x90] sm:$0xff]  }
   0x3   :  { %2369 = vmatpush1.bf16.msra.mxu0 %v7422_v2  ;;  %2081 = vmatprep.subr.bf16.mxu1 %v7374_v1  ;;  %v7291_v7 = vld [vmem:[%s9275_s1 + $0x18] sm:$0xff]   ;;  %v7293_v9 = vld [vmem:[%s9275_s1 + $0x20] sm:$0xff]   ;;  %v7295_v11 = vld [vmem:[%s9275_s1 + $0x28] sm:$0xff]  }
   0x4   :  { %2370 = vmatprep.subr.bf16.mxu0 %v7374_v1  ;;  %v7454_v8 = vld [vmem:[%s9275_s1 + $0x98] sm:$0xff]   ;;  %v7465_v10 = vld [vmem:[%s9275_s1 + $0xa0] sm:$0xff]   ;;  %v7476_v12 = vld [vmem:[%s9275_s1 + $0xa8] sm:$0xff]  }
   0x5   :  { %v7297_v13 = vld [vmem:[%s9275_s1 + $0x30] sm:$0xff]   ;;  %v7299_v15 = vld [vmem:[%s9275_s1 + $0x38] sm:$0xff]   ;;  %v7301_v17 = vld [vmem:[%s9275_s1 + $0x40] sm:$0xff]  }
   0x6   :  { %2082 = vmatpush1.bf16.msra.mxu1 %v7287_v3  ;;  %v7487_v14 = vld [vmem:[%s9275_s1 + $0xb0] sm:$0xff]   ;;  %v7498_v16 = vld [vmem:[%s9275_s1 + $0xb8] sm:$0xff]   ;;  %v7509_v18 = vld [vmem:[%s9275_s1 + $0xc0] sm:$0xff]  }
   0x7   :  { %2371 = vmatpush1.bf16.msra.mxu0 %v7432_v4  ;;  %2083 = vmatprep.subr.bf16.mxu1 %v7374_v1  ;;  %v7515_v19 = vld [vmem:[%s9274_s0] sm:$0xff]  ;;  %v25_v21 = vld [vmem:[%s9274_s0 + $0x8] sm:$0xff]  ;;  %v7305_v27 = vld [vmem:[%s9275_s1 + $0x50] sm:$0xff]  }
   0x8   :  { %2372 = vmatprep.subr.bf16.mxu0 %v7374_v1  ;;  %v28_v20 = vld [vmem:[%s9274_s0 + $0x20] sm:$0xff]  ;;  %v29_v23 = vld [vmem:[%s9274_s0 + $0x28] sm:$0xff]  ;;  %v7546_v28 = vld [vmem:[%s9275_s1 + $0xd0] sm:$0xff]  }
   0x9   :  { %v6119_v22 = vcombine.high %v7515_v19, %v28_v20  ;;  %v7303_v24 = vld [vmem:[%s9275_s1 + $0x48] sm:$0xff]   ;;  %v6121_v25 = vcombine.high %v25_v21, %v29_v23  ;;  %v7307_v29 = vld [vmem:[%s9275_s1 + $0x58] sm:$0xff]   ;;  %v7309_v31 = vld [vmem:[%s9275_s1 + $0x60] sm:$0xff]   ;;  %v6118_v43 = vcombine.low %v7515_v19, %v28_v20  ;;  %v6120_v44 = vcombine.low %v25_v21, %v29_v23 }
   0xa   :  { %2084 = vmatpush1.bf16.msra.mxu1 %v7289_v5  ;;  %v7535_v26 = vld [vmem:[%s9275_s1 + $0xc8] sm:$0xff]   ;;  %v7557_v30 = vld [vmem:[%s9275_s1 + $0xd8] sm:$0xff]   ;;  %v7568_v32 = vld [vmem:[%s9275_s1 + $0xe0] sm:$0xff]  }
   0xb   :  { %2373 = vmatpush1.bf16.msra.mxu0 %v7443_v6  ;;  %2085 = vmatprep.subr.bf16.mxu1 %v7374_v1  ;;  %v7311_v33 = vld [vmem:[%s9275_s1 + $0x68] sm:$0xff]   ;;  %v7313_v35 = vld [vmem:[%s9275_s1 + $0x70] sm:$0xff]   ;;  %v7315_v37 = vld [vmem:[%s9275_s1 + $0x78] sm:$0xff]  }
   0xc   :  { %2374 = vmatprep.subr.bf16.mxu0 %v7374_v1  ;;  %2111 = vmatprep.mubr.bf16.mxu1 %v6119_v22  ;;  %v7579_v34 = vld [vmem:[%s9275_s1 + $0xe8] sm:$0xff]   ;;  %v7590_v36 = vld [vmem:[%s9275_s1 + $0xf0] sm:$0xff]   ;;  %v7599_v38 = vld [vmem:[%s9275_s1 + $0xf8] sm:$0xff]  }
   0xd   :  { %2400 = vmatprep.mubr.bf16.mxu0 %v6121_v25  ;;  %v32_v39 = vld [vmem:[%s9274_s0 + $0x40] sm:$0xff]  ;;  %v33_v41 = vld [vmem:[%s9274_s0 + $0x48] sm:$0xff]  ;;  %v7319_v56 = vld [vmem:[%s9275_s1 + $0x110] sm:$0xff]  }
   0xe   :  { %2086 = vmatpush1.bf16.msra.mxu1 %v7291_v7  ;;  %v36_v40 = vld [vmem:[%s9274_s0 + $0x60] sm:$0xff]  ;;  %v37_v42 = vld [vmem:[%s9274_s0 + $0x68] sm:$0xff]  ;;  %v7320_v58 = vld [vmem:[%s9275_s1 + $0x118] sm:$0xff]  }
   0xf   :  { %2375 = vmatpush1.bf16.msra.mxu0 %v7454_v8  ;;  %2087 = vmatprep.subr.bf16.mxu1 %v7374_v1  ;;  %v6127_v45 = vcombine.high %v32_v39, %v36_v40  ;;  %v7317_v46 = vld [vmem:[%s9275_s1 + $0x100] sm:$0xff]   ;;  %v6129_v47 = vcombine.high %v33_v41, %v37_v42  ;;  %v7318_v48 = vld [vmem:[%s9275_s1 + $0x108] sm:$0xff]   ;;  %v6126_v53 = vcombine.low %v32_v39, %v36_v40 }
  0x10   :  { %2376 = vmatprep.subr.bf16.mxu0 %v7374_v1  ;;  %v40_v49 = vld [vmem:[%s9274_s0 + $0x80] sm:$0xff]  ;;  %v41_v51 = vld [vmem:[%s9274_s0 + $0x88] sm:$0xff]  ;;  %v6128_v54 = vcombine.low %v33_v41, %v37_v42 }
  0x11   :  { %v44_v50 = vld [vmem:[%s9274_s0 + $0xa0] sm:$0xff]  ;;  %v45_v52 = vld [vmem:[%s9274_s0 + $0xa8] sm:$0xff] }
  0x12   :  { %2088 = vmatpush1.bf16.msra.mxu1 %v7293_v9  ;;  %v6135_v55 = vcombine.high %v40_v49, %v44_v50  ;;  %v6137_v57 = vcombine.high %v41_v51, %v45_v52  ;;  %v48_v59 = vld [vmem:[%s9274_s0 + $0xc0] sm:$0xff]  ;;  %v49_v61 = vld [vmem:[%s9274_s0 + $0xc8] sm:$0xff]  ;;  %v6134_v63 = vcombine.low %v40_v49, %v44_v50  ;;  %v6136_v0 = vcombine.low %v41_v51, %v45_v52 }
  0x13   :  { %2377 = vmatpush1.bf16.msra.mxu0 %v7465_v10  ;;  %2089 = vmatprep.subr.bf16.mxu1 %v7374_v1  ;;  %v52_v60 = vld [vmem:[%s9274_s0 + $0xe0] sm:$0xff]  ;;  %v53_v62 = vld [vmem:[%s9274_s0 + $0xe8] sm:$0xff] }
  0x14   :  { %2378 = vmatprep.subr.bf16.mxu0 %v7374_v1  ;;  %v6143_v3 = vcombine.high %v48_v59, %v52_v60  ;;  %v7322_v5 = vld [vmem:[%s9275_s1 + $0x128] sm:$0xff]   ;;  %v60_v7 = vld [vmem:[%s9274_s0 + $0x120] sm:$0xff] }
  0x15   :  { %v61_v9 = vld [vmem:[%s9274_s0 + $0x128] sm:$0xff] }
  0x16   :  { %2090 = vmatpush1.bf16.msra.mxu1 %v7295_v11  ;;  %v6142_v11 = vcombine.low %v48_v59, %v52_v60 }
  0x17   :  { %2379 = vmatpush1.bf16.msra.mxu0 %v7476_v12  ;;  %2091 = vmatprep.subr.bf16.mxu1 %v7374_v1 }
  0x18   :  { %2380 = vmatprep.subr.bf16.mxu0 %v7374_v1 }
  0x1a   :  { %2092 = vmatpush1.bf16.msra.mxu1 %v7297_v13  ;;  %v6144_v13 = vcombine.low %v49_v61, %v53_v62 }
  0x1b   :  { %2381 = vmatpush1.bf16.msra.mxu0 %v7487_v14  ;;  %2093 = vmatprep.subr.bf16.mxu1 %v7374_v1 }
  0x1c   :  { %2382 = vmatprep.subr.bf16.mxu0 %v7374_v1 }
  0x1e   :  { %2094 = vmatpush1.bf16.msra.mxu1 %v7299_v15 }
  0x1f   :  { %2383 = vmatpush1.bf16.msra.mxu0 %v7498_v16  ;;  %2095 = vmatprep.subr.bf16.mxu1 %v7374_v1 }
  0x20   :  { %2384 = vmatprep.subr.bf16.mxu0 %v7374_v1 }
  0x22   :  { %2096 = vmatpush1.bf16.msra.mxu1 %v7301_v17  ;;  %v7323_v17 = vld [vmem:[%s9275_s1 + $0x130] sm:$0xff]  }
  0x23   :  { %2385 = vmatpush1.bf16.msra.mxu0 %v7509_v18  ;;  %2097 = vmatprep.subr.bf16.mxu1 %v7374_v1 }
  0x24   :  { %2386 = vmatprep.subr.bf16.mxu0 %v7374_v1 }
  0x26   :  { %2098 = vmatpush1.bf16.msra.mxu1 %v7303_v24 }
  0x27   :  { %2387 = vmatpush1.bf16.msra.mxu0 %v7535_v26  ;;  %2099 = vmatprep.subr.bf16.mxu1 %v7374_v1 }
  0x28   :  { %2388 = vmatprep.subr.bf16.mxu0 %v7374_v1 }
  0x2a   :  { %2100 = vmatpush1.bf16.msra.mxu1 %v7305_v27 }
  0x2b   :  { %2389 = vmatpush1.bf16.msra.mxu0 %v7546_v28  ;;  %2101 = vmatprep.subr.bf16.mxu1 %v7374_v1 }
  0x2c   :  { %2390 = vmatprep.subr.bf16.mxu0 %v7374_v1 }
  0x2e   :  { %2102 = vmatpush1.bf16.msra.mxu1 %v7307_v29 }
  0x2f   :  { %2391 = vmatpush1.bf16.msra.mxu0 %v7557_v30  ;;  %2103 = vmatprep.subr.bf16.mxu1 %v7374_v1 }
  0x30   :  { %2392 = vmatprep.subr.bf16.mxu0 %v7374_v1 }
  0x32   :  { %2104 = vmatpush1.bf16.msra.mxu1 %v7309_v31 }
  0x33   :  { %2393 = vmatpush1.bf16.msra.mxu0 %v7568_v32  ;;  %2105 = vmatprep.subr.bf16.mxu1 %v7374_v1 }
  0x34   :  { %2394 = vmatprep.subr.bf16.mxu0 %v7374_v1 }
  0x36   :  { %2106 = vmatpush1.bf16.msra.mxu1 %v7311_v33 }
  0x37   :  { %2395 = vmatpush1.bf16.msra.mxu0 %v7579_v34  ;;  %2107 = vmatprep.subr.bf16.mxu1 %v7374_v1 }
  0x38   :  { %2396 = vmatprep.subr.bf16.mxu0 %v7374_v1 }
  0x3a   :  { %2108 = vmatpush1.bf16.msra.mxu1 %v7313_v35 }
  0x3b   :  { %2397 = vmatpush1.bf16.msra.mxu0 %v7590_v36  ;;  %2109 = vmatprep.subr.bf16.mxu1 %v7374_v1 }
  0x3c   :  { %2398 = vmatprep.subr.bf16.mxu0 %v7374_v1 }
  0x3e   :  { %2110 = vmatpush1.bf16.msra.mxu1 %v7315_v37 }
  0x3f   :  { %2399 = vmatpush1.bf16.msra.mxu0 %v7599_v38  ;;  %6834 = vmatprep.subr.bf16.mxu1 %v7374_v1 }
  0x40   :  { %2657 = vmatprep.subr.bf16.mxu0 %v7374_v1 }
  0x41   :  { %2112 = vmatmul.mubr.bf16.vlgmr.msra.gmra.mrb[0].mxu1 %v6118_v43 }
  0x42   :  { %2401 = vmatmul.mubr.bf16.vlgmr.msra.gmra.mrb[0].mxu0 %v6120_v44  ;;  %2119 = vmatprep.mubr.bf16.mxu1 %v6127_v45 }
  0x43   :  { %2658 = vmatpush1.bf16.msra.mxu0 %v7317_v46  ;;  %2408 = vmatprep.mubr.bf16.mxu0 %v6129_v47 }
  0x44   :  { %2659 = vmatprep.subr.bf16.mxu0 %v7374_v1  ;;  %6850 = vmatpush1.bf16.msra.mxu1 %v7422_v2  ;;  %v7321_v2 = vld [vmem:[%s9275_s1 + $0x120] sm:$0xff]  }
  0x45   :  { %6835 = vmatprep.subr.bf16.mxu1 %v7374_v1 }
  0x47   :  { %2660 = vmatpush1.bf16.msra.mxu0 %v7318_v48 }
  0x48   :  { %2661 = vmatprep.subr.bf16.mxu0 %v7374_v1  ;;  %6851 = vmatpush1.bf16.msra.mxu1 %v7432_v4  ;;  %v6145_v4 = vcombine.high %v49_v61, %v53_v62 }
  0x49   :  { %2120 = vmatmul.mubr.bf16.gmra.mrb[4].mxu1 %v6126_v53  ;;  %6836 = vmatprep.subr.bf16.mxu1 %v7374_v1 }
  0x4a   :  { %2409 = vmatmul.mubr.bf16.gmra.mrb[4].mxu0 %v6128_v54  ;;  %2127 = vmatprep.mubr.bf16.mxu1 %v6135_v55 }
  0x4b   :  { %2662 = vmatpush1.bf16.msra.mxu0 %v7319_v56  ;;  %2416 = vmatprep.mubr.bf16.mxu0 %v6137_v57 }
  0x4c   :  { %2663 = vmatprep.subr.bf16.mxu0 %v7374_v1  ;;  %6852 = vmatpush1.bf16.msra.mxu1 %v7443_v6  ;;  %v56_v6 = vld [vmem:[%s9274_s0 + $0x100] sm:$0xff] }
  0x4d   :  { %6837 = vmatprep.subr.bf16.mxu1 %v7374_v1  ;;  %v6151_v15 = vcombine.high %v56_v6, %v60_v7 }
  0x4f   :  { %2664 = vmatpush1.bf16.msra.mxu0 %v7320_v58 }
  0x50   :  { %2665 = vmatprep.subr.bf16.mxu0 %v7374_v1  ;;  %6853 = vmatpush1.bf16.msra.mxu1 %v7454_v8  ;;  %v57_v8 = vld [vmem:[%s9274_s0 + $0x108] sm:$0xff] }
  0x51   :  { %2128 = vmatmul.mubr.bf16.gmra.mrb[8].mxu1 %v6134_v63  ;;  %6838 = vmatprep.subr.bf16.mxu1 %v7374_v1  ;;  %v6153_v19 = vcombine.high %v57_v8, %v61_v9 }
  0x52   :  { %2417 = vmatmul.mubr.bf16.gmra.mrb[8].mxu0 %v6136_v0  ;;  %2135 = vmatprep.mubr.bf16.mxu1 %v6143_v3 }
  0x53   :  { %2666 = vmatpush1.bf16.msra.mxu0 %v7321_v2  ;;  %2424 = vmatprep.mubr.bf16.mxu0 %v6145_v4 }
  0x54   :  { %2667 = vmatprep.subr.bf16.mxu0 %v7374_v1  ;;  %6854 = vmatpush1.bf16.msra.mxu1 %v7465_v10 }
  0x55   :  { %6839 = vmatprep.subr.bf16.mxu1 %v7374_v1 }
  0x57   :  { %2668 = vmatpush1.bf16.msra.mxu0 %v7322_v5 }
  0x58   :  { %12 = vsyncpa [#allocation3], 0  ;;  %2669 = vmatprep.subr.bf16.mxu0 %v7374_v1  ;;  %6855 = vmatpush1.bf16.msra.mxu1 %v7476_v12  ;;  %v7324_v10 = vld [vmem:[%s9275_s1 + $0x138] sm:$0xff]   ;;  %v64_v20 = vld [vmem:[%s9274_s0 + $0x140] sm:$0xff]  ;;  %v6150_v23 = vcombine.low %v56_v6, %v60_v7  ;;  %v6152_v24 = vcombine.low %v57_v8, %v61_v9  ;;  %vm3299_vm0 = vcmask 130048   ;;  %vm3603_vm1 = vcmask 1041409  }
  0x59   :  { %2136 = vmatmul.mubr.bf16.gmra.mrb[12].mxu1 %v6142_v11  ;;  %6840 = vmatprep.subr.bf16.mxu1 %v7374_v1  ;;  %v68_v21 = vld [vmem:[%s9274_s0 + $0x160] sm:$0xff]  ;;  %v65_v12 = vld [vmem:[%s9274_s0 + $0x148] sm:$0xff]  ;;  %v7327_v41 = vld [vmem:[%s9275_s1 + $0x150] sm:$0xff]   ;;  %vm7377_vm2 = vmmov 0   ;;  %s7378_s12 = smov [#allocation2]  }
  0x5a   :  { %2425 = vmatmul.mubr.bf16.gmra.mrb[12].mxu0 %v6144_v13  ;;  %2143 = vmatprep.mubr.bf16.mxu1 %v6151_v15  ;;  %v69_v22 = vld [vmem:[%s9274_s0 + $0x168] sm:$0xff]  ;;  %v6159_v25 = vcombine.high %v64_v20, %v68_v21  ;;  %v7325_v27 = vld [vmem:[%s9275_s1 + $0x140] sm:$0xff]   ;;  %v6158_v37 = vcombine.low %v64_v20, %v68_v21  ;;  %v30_v53 = vld [vmem:[%s9274_s0 + $0x30] sm:$0xff] }
  0x5b   :  { %2670 = vmatpush1.bf16.msra.mxu0 %v7323_v17  ;;  %2432 = vmatprep.mubr.bf16.mxu0 %v6153_v19  ;;  %v6161_v29 = vcombine.high %v65_v12, %v69_v22  ;;  %v72_v31 = vld [vmem:[%s9274_s0 + $0x180] sm:$0xff]  ;;  %v77_v35 = vld [vmem:[%s9274_s0 + $0x1a8] sm:$0xff]  ;;  %v6160_v39 = vcombine.low %v65_v12, %v69_v22  ;;  %v7331_v57 = vld [vmem:[%s9275_s1 + $0x170] sm:$0xff]  }
  0x5c   :  { %2671 = vmatprep.subr.bf16.mxu0 %v7374_v1  ;;  %6856 = vmatpush1.bf16.msra.mxu1 %v7487_v14  ;;  %v7326_v14 = vld [vmem:[%s9275_s1 + $0x148] sm:$0xff]   ;;  %v76_v33 = vld [vmem:[%s9274_s0 + $0x1a0] sm:$0xff]  ;;  %v38_v61 = vld [vmem:[%s9274_s0 + $0x70] sm:$0xff] }
  0x5d   :  { %6841 = vmatprep.subr.bf16.mxu1 %v7374_v1  ;;  %v6167_v40 = vcombine.high %v72_v31, %v76_v33  ;;  %v80_v43 = vld [vmem:[%s9274_s0 + $0x1c0] sm:$0xff]  ;;  %v85_v45 = vld [vmem:[%s9274_s0 + $0x1e8] sm:$0xff]  ;;  %v6166_v46 = vcombine.low %v72_v31, %v76_v33  ;;  %v46_v6 = vld [vmem:[%s9274_s0 + $0xb0] sm:$0xff] }
  0x5e   :  { %v84_v44 = vld [vmem:[%s9274_s0 + $0x1e0] sm:$0xff]  ;;  %v7334_v5 = vld [vmem:[%s9275_s1 + $0x188] sm:$0xff]   ;;  %v7335_v13 = vld [vmem:[%s9275_s1 + $0x190] sm:$0xff]  }
  0x5f   :  { %2672 = vmatpush1.bf16.msra.mxu0 %v7324_v10  ;;  %v6175_v48 = vcombine.high %v80_v43, %v84_v44  ;;  %v7329_v49 = vld [vmem:[%s9275_s1 + $0x160] sm:$0xff]   ;;  %v6174_v54 = vcombine.low %v80_v43, %v84_v44  ;;  %v7336_v19 = vld [vmem:[%s9275_s1 + $0x198] sm:$0xff]   ;;  %v50_v10 = vld [vmem:[%s9274_s0 + $0xd0] sm:$0xff] }
  0x60   :  { %2673 = vmatprep.subr.bf16.mxu0 %v7374_v1  ;;  %6857 = vmatpush1.bf16.msra.mxu1 %v7498_v16  ;;  %v73_v16 = vld [vmem:[%s9274_s0 + $0x188] sm:$0xff]  ;;  %v88_v51 = vld [vmem:[%s9274_s0 + $0x200] sm:$0xff]  ;;  %v54_v20 = vld [vmem:[%s9274_s0 + $0xf0] sm:$0xff] }
  0x61   :  { %2144 = vmatmul.mubr.bf16.gmra.mrb[16].mxu1 %v6150_v23  ;;  %6842 = vmatprep.subr.bf16.mxu1 %v7374_v1  ;;  %v6169_v42 = vcombine.high %v73_v16, %v77_v35  ;;  %v6168_v47 = vcombine.low %v73_v16, %v77_v35  ;;  %v92_v52 = vld [vmem:[%s9274_s0 + $0x220] sm:$0xff]  ;;  %v6147_v23 = vcombine.high %v50_v10, %v54_v20  ;;  %v62_v31 = vld [vmem:[%s9274_s0 + $0x130] sm:$0xff] }
  0x62   :  { %2433 = vmatmul.mubr.bf16.gmra.mrb[16].mxu0 %v6152_v24  ;;  %2151 = vmatprep.mubr.bf16.mxu1 %v6159_v25  ;;  %v6183_v56 = vcombine.high %v88_v51, %v92_v52  ;;  %v96_v59 = vld [vmem:[%s9274_s0 + $0x240] sm:$0xff]  ;;  %v6182_v62 = vcombine.low %v88_v51, %v92_v52  ;;  %v6146_v16 = vcombine.low %v50_v10, %v54_v20  ;;  %v70_v43 = vld [vmem:[%s9274_s0 + $0x170] sm:$0xff] }
  0x63   :  { %2674 = vmatpush1.bf16.msra.mxu0 %v7325_v27  ;;  %2440 = vmatprep.mubr.bf16.mxu0 %v6161_v29  ;;  %v100_v60 = vld [vmem:[%s9274_s0 + $0x260] sm:$0xff]  ;;  %v7338_v29 = vld [vmem:[%s9275_s1 + $0x1a8] sm:$0xff]   ;;  %v78_v51 = vld [vmem:[%s9274_s0 + $0x1b0] sm:$0xff] }
  0x64   :  { %2675 = vmatprep.subr.bf16.mxu0 %v7374_v1  ;;  %6858 = vmatpush1.bf16.msra.mxu1 %v7509_v18  ;;  %v7328_v18 = vld [vmem:[%s9275_s1 + $0x158] sm:$0xff]   ;;  %v6191_v0 = vcombine.high %v96_v59, %v100_v60  ;;  %v7333_v2 = vld [vmem:[%s9275_s1 + $0x180] sm:$0xff]   ;;  %v6190_v7 = vcombine.low %v96_v59, %v100_v60 }
  0x65   :  { %6843 = vmatprep.subr.bf16.mxu1 %v7374_v1  ;;  %v108_v4 = vld [vmem:[%s9274_s0 + $0x2a0] sm:$0xff] }
  0x66   :  { %v112_v15 = vld [vmem:[%s9274_s0 + $0x2c0] sm:$0xff] }
  0x67   :  { %2676 = vmatpush1.bf16.msra.mxu0 %v7326_v14  ;;  %v116_v17 = vld [vmem:[%s9274_s0 + $0x2e0] sm:$0xff]  ;;  %v58_v14 = vld [vmem:[%s9274_s0 + $0x110] sm:$0xff] }
  0x68   :  { %2677 = vmatprep.subr.bf16.mxu0 %v7374_v1  ;;  %6859 = vmatpush1.bf16.msra.mxu1 %v7535_v26  ;;  %v81_v26 = vld [vmem:[%s9274_s0 + $0x1c8] sm:$0xff]  ;;  %v6207_v22 = vcombine.high %v112_v15, %v116_v17  ;;  %v7337_v24 = vld [vmem:[%s9275_s1 + $0x1a0] sm:$0xff]   ;;  %v6206_v33 = vcombine.low %v112_v15, %v116_v17 }
  0x69   :  { %2152 = vmatmul.mubr.bf16.gmra.mrb[20].mxu1 %v6158_v37  ;;  %6844 = vmatprep.subr.bf16.mxu1 %v7374_v1  ;;  %v6177_v50 = vcombine.high %v81_v26, %v85_v45  ;;  %v6176_v55 = vcombine.low %v81_v26, %v85_v45  ;;  %v120_v25 = vld [vmem:[%s9274_s0 + $0x300] sm:$0xff]  ;;  %v6155_v37 = vcombine.high %v58_v14, %v62_v31 }
  0x6a   :  { %2441 = vmatmul.mubr.bf16.gmra.mrb[20].mxu0 %v6160_v39  ;;  %2159 = vmatprep.mubr.bf16.mxu1 %v6167_v40  ;;  %v124_v27 = vld [vmem:[%s9274_s0 + $0x320] sm:$0xff]  ;;  %v7339_v39 = vld [vmem:[%s9275_s1 + $0x1b0] sm:$0xff]   ;;  %v6154_v26 = vcombine.low %v58_v14, %v62_v31 }
  0x6b   :  { %2678 = vmatpush1.bf16.msra.mxu0 %v7327_v41  ;;  %2448 = vmatprep.mubr.bf16.mxu0 %v6169_v42  ;;  %v6215_v35 = vcombine.high %v120_v25, %v124_v27  ;;  %v128_v40 = vld [vmem:[%s9274_s0 + $0x340] sm:$0xff]  ;;  %v7340_v42 = vld [vmem:[%s9275_s1 + $0x1b8] sm:$0xff]   ;;  %v6214_v44 = vcombine.low %v120_v25, %v124_v27  ;;  %v114_v14 = vld [vmem:[%s9274_s0 + $0x2d0] sm:$0xff] }
  0x6c   :  { %2679 = vmatprep.subr.bf16.mxu0 %v7374_v1  ;;  %6860 = vmatpush1.bf16.msra.mxu1 %v7546_v28  ;;  %v7330_v28 = vld [vmem:[%s9275_s1 + $0x168] sm:$0xff]   ;;  %v132_v41 = vld [vmem:[%s9274_s0 + $0x360] sm:$0xff]  ;;  %v118_v31 = vld [vmem:[%s9274_s0 + $0x2f0] sm:$0xff] }
  0x6d   :  { %6845 = vmatprep.subr.bf16.mxu1 %v7374_v1  ;;  %v6223_v45 = vcombine.high %v128_v40, %v132_v41  ;;  %v6222_v52 = vcombine.low %v128_v40, %v132_v41  ;;  %v168_v10 = vld [vmem:[%s9274_s0 + $0x480] sm:$0xff] }
  0x6e   :  { %v172_v20 = vld [vmem:[%s9274_s0 + $0x4a0] sm:$0xff] }
  0x6f   :  { %2680 = vmatpush1.bf16.msra.mxu0 %v7328_v18  ;;  %v66_v18 = vld [vmem:[%s9274_s0 + $0x150] sm:$0xff]  ;;  %v176_v27 = vld [vmem:[%s9274_s0 + $0x4c0] sm:$0xff] }
  0x70   :  { %2681 = vmatprep.subr.bf16.mxu0 %v7374_v1  ;;  %6861 = vmatpush1.bf16.msra.mxu1 %v7557_v30  ;;  %v26_v30 = vld [vmem:[%s9274_s0 + $0x10] sm:$0xff]  ;;  %v184_v40 = vld [vmem:[%s9274_s0 + $0x500] sm:$0xff] }
  0x71   :  { %2160 = vmatmul.mubr.bf16.gmra.mrb[24].mxu1 %v6166_v46  ;;  %6846 = vmatprep.subr.bf16.mxu1 %v7374_v1  ;;  %v6123_v58 = vcombine.high %v26_v30, %v30_v53  ;;  %v6122_v63 = vcombine.low %v26_v30, %v30_v53  ;;  %v6163_v46 = vcombine.high %v66_v18, %v70_v43  ;;  %v188_v41 = vld [vmem:[%s9274_s0 + $0x520] sm:$0xff] }
  0x72   :  { %2449 = vmatmul.mubr.bf16.gmra.mrb[24].mxu0 %v6168_v47  ;;  %2167 = vmatprep.mubr.bf16.mxu1 %v6175_v48  ;;  %v7341_v47 = vld [vmem:[%s9275_s1 + $0x1c0] sm:$0xff]   ;;  %v6162_v30 = vcombine.low %v66_v18, %v70_v43  ;;  %v126_v18 = vld [vmem:[%s9274_s0 + $0x330] sm:$0xff] }
  0x73   :  { %2682 = vmatpush1.bf16.msra.mxu0 %v7329_v49  ;;  %2456 = vmatprep.mubr.bf16.mxu0 %v6177_v50  ;;  %v136_v48 = vld [vmem:[%s9274_s0 + $0x380] sm:$0xff]  ;;  %v7342_v50 = vld [vmem:[%s9275_s1 + $0x1c8] sm:$0xff]  }
  0x74   :  { %2683 = vmatprep.subr.bf16.mxu0 %v7374_v1  ;;  %6862 = vmatpush1.bf16.msra.mxu1 %v7568_v32  ;;  %v7332_v32 = vld [vmem:[%s9275_s1 + $0x178] sm:$0xff]   ;;  %v140_v49 = vld [vmem:[%s9274_s0 + $0x3a0] sm:$0xff] }
  0x75   :  { %6847 = vmatprep.subr.bf16.mxu1 %v7374_v1  ;;  %v6231_v53 = vcombine.high %v136_v48, %v140_v49  ;;  %v6230_v59 = vcombine.low %v136_v48, %v140_v49  ;;  %v130_v48 = vld [vmem:[%s9274_s0 + $0x350] sm:$0xff] }
  0x76   :  { %v134_v49 = vld [vmem:[%s9274_s0 + $0x370] sm:$0xff] }
  0x77   :  { %2684 = vmatpush1.bf16.msra.mxu0 %v7330_v28  ;;  %v74_v28 = vld [vmem:[%s9274_s0 + $0x190] sm:$0xff] }
  0x78   :  { %2685 = vmatprep.subr.bf16.mxu0 %v7374_v1  ;;  %6863 = vmatpush1.bf16.msra.mxu1 %v7579_v34  ;;  %v34_v34 = vld [vmem:[%s9274_s0 + $0x50] sm:$0xff]  ;;  %v6170_v60 = vcombine.low %v74_v28, %v78_v51 }
  0x79   :  { %2168 = vmatmul.mubr.bf16.gmra.mrb[28].mxu1 %v6174_v54  ;;  %6848 = vmatprep.subr.bf16.mxu1 %v7374_v1  ;;  %v6131_v3 = vcombine.high %v34_v34, %v38_v61  ;;  %v6130_v8 = vcombine.low %v34_v34, %v38_v61  ;;  %v6171_v54 = vcombine.high %v74_v28, %v78_v51 }
  0x7a   :  { %2457 = vmatmul.mubr.bf16.gmra.mrb[28].mxu0 %v6176_v55  ;;  %2175 = vmatprep.mubr.bf16.mxu1 %v6183_v56  ;;  %v7343_v55 = vld [vmem:[%s9275_s1 + $0x1d0] sm:$0xff]   ;;  %v144_v56 = vld [vmem:[%s9274_s0 + $0x3c0] sm:$0xff] }
  0x7b   :  { %2686 = vmatpush1.bf16.msra.mxu0 %v7331_v57  ;;  %2689 = vmatprep.mubr.bf16.mxu0 %v6123_v58  ;;  %v148_v57 = vld [vmem:[%s9274_s0 + $0x3e0] sm:$0xff]  ;;  %v82_v58 = vld [vmem:[%s9274_s0 + $0x1d0] sm:$0xff] }
  0x7c   :  { %2687 = vmatprep.subr.bf16.mxu0 %v7374_v1  ;;  %6864 = vmatpush1.bf16.msra.mxu1 %v7590_v36  ;;  %v104_v36 = vld [vmem:[%s9274_s0 + $0x280] sm:$0xff]  ;;  %v6239_v34 = vcombine.high %v144_v56, %v148_v57 }
  0x7d   :  { %6849 = vmatprep.subr.bf16.mxu1 %v7374_v1  ;;  %v6199_v9 = vcombine.high %v104_v36, %v108_v4  ;;  %v6198_v21 = vcombine.low %v104_v36, %v108_v4  ;;  %v6238_v36 = vcombine.low %v144_v56, %v148_v57  ;;  %v142_v56 = vld [vmem:[%s9274_s0 + $0x3b0] sm:$0xff] }
  0x7f   :  { %2688 = vmatpush1.bf16.msra.mxu0 %v7332_v32  ;;  %v86_v32 = vld [vmem:[%s9274_s0 + $0x1f0] sm:$0xff] }
  0x80   :  { %2946 = vmatprep.subr.bf16.mxu0 %v7374_v1  ;;  %6865 = vmatpush1.bf16.msra.mxu1 %v7599_v38  ;;  %v42_v38 = vld [vmem:[%s9274_s0 + $0x90] sm:$0xff]  ;;  %v6179_v61 = vcombine.high %v82_v58, %v86_v32  ;;  %v6178_v4 = vcombine.low %v82_v58, %v86_v32  ;;  %v6226_v58 = vcombine.low %v130_v48, %v134_v49 }
  0x81   :  { %2176 = vmatmul.mubr.bf16.gmra.mrb[32].mxu1 %v6182_v62  ;;  %v6139_v11 = vcombine.high %v42_v38, %v46_v6  ;;  %v6138_v12 = vcombine.low %v42_v38, %v46_v6  ;;  %v7344_v62 = vld [vmem:[%s9275_s1 + $0x1d8] sm:$0xff]   ;;  %v160_v6 = vld [vmem:[%s9274_s0 + $0x440] sm:$0xff] }
  0x82   :  { %2690 = vmatmul.mubr.bf16.vlgmr.msra.gmra.mrb[0].mxu0 %v6122_v63  ;;  %2183 = vmatprep.mubr.bf16.mxu1 %v6191_v0  ;;  %v152_v63 = vld [vmem:[%s9274_s0 + $0x400] sm:$0xff] }
  0x83   :  { %2947 = vmatpush1.bf16.msra.mxu0 %v7333_v2  ;;  %2697 = vmatprep.mubr.bf16.mxu0 %v6131_v3  ;;  %v156_v0 = vld [vmem:[%s9274_s0 + $0x420] sm:$0xff]  ;;  %v90_v2 = vld [vmem:[%s9274_s0 + $0x210] sm:$0xff] }
  0x84   :  { %2948 = vmatprep.subr.bf16.mxu0 %v7374_v1  ;;  %v94_v3 = vld [vmem:[%s9274_s0 + $0x230] sm:$0xff] }
  0x85   :  { %v6187_v38 = vcombine.high %v90_v2, %v94_v3 }
  0x87   :  { %2949 = vmatpush1.bf16.msra.mxu0 %v7334_v5  ;;  %v6247_v5 = vcombine.high %v152_v63, %v156_v0 }
  0x88   :  { %2950 = vmatprep.subr.bf16.mxu0 %v7374_v1 }
  0x89   :  { %2184 = vmatmul.mubr.bf16.gmra.mrb[36].mxu1 %v6190_v7  ;;  %v164_v7 = vld [vmem:[%s9274_s0 + $0x460] sm:$0xff] }
  0x8a   :  { %2698 = vmatmul.mubr.bf16.gmra.mrb[4].mxu0 %v6130_v8  ;;  %2191 = vmatprep.mubr.bf16.mxu1 %v6199_v9  ;;  %v98_v8 = vld [vmem:[%s9274_s0 + $0x250] sm:$0xff]  ;;  %v6255_v15 = vcombine.high %v160_v6, %v164_v7 }
  0x8b   :  { %2705 = vmatprep.mubr.bf16.mxu0 %v6139_v11  ;;  %2951 = vmatpush1.bf16.msra.mxu0 %v7335_v13  ;;  %v102_v9 = vld [vmem:[%s9274_s0 + $0x270] sm:$0xff]  ;;  %v6246_v11 = vcombine.low %v152_v63, %v156_v0  ;;  %v6186_v13 = vcombine.low %v90_v2, %v94_v3  ;;  %v7348_v3 = vld [vmem:[%s9275_s1 + $0x1f8] sm:$0xff]  }
  0x8c   :  { %2952 = vmatprep.subr.bf16.mxu0 %v7374_v1  ;;  %v6195_v17 = vcombine.high %v98_v8, %v102_v9 }
  0x8f   :  { %2953 = vmatpush1.bf16.msra.mxu0 %v7336_v19  ;;  %v7345_v19 = vld [vmem:[%s9275_s1 + $0x1e0] sm:$0xff]  }
  0x90   :  { %2954 = vmatprep.subr.bf16.mxu0 %v7374_v1 }
  0x91   :  { %2192 = vmatmul.mubr.bf16.gmra.mrb[40].mxu1 %v6198_v21  ;;  %v106_v21 = vld [vmem:[%s9274_s0 + $0x290] sm:$0xff] }
  0x92   :  { %2706 = vmatmul.mubr.bf16.gmra.mrb[8].mxu0 %v6138_v12  ;;  %2199 = vmatprep.mubr.bf16.mxu1 %v6207_v22  ;;  %v110_v12 = vld [vmem:[%s9274_s0 + $0x2b0] sm:$0xff]  ;;  %v6254_v22 = vcombine.low %v160_v6, %v164_v7 }
  0x93   :  { %2713 = vmatprep.mubr.bf16.mxu0 %v6147_v23  ;;  %2955 = vmatpush1.bf16.msra.mxu0 %v7337_v24  ;;  %v6194_v23 = vcombine.low %v98_v8, %v102_v9  ;;  %v6263_v24 = vcombine.high %v168_v10, %v172_v20  ;;  %v6203_v25 = vcombine.high %v106_v21, %v110_v12 }
  0x94   :  { %2956 = vmatprep.subr.bf16.mxu0 %v7374_v1 }
  0x97   :  { %2957 = vmatpush1.bf16.msra.mxu0 %v7338_v29  ;;  %v180_v29 = vld [vmem:[%s9274_s0 + $0x4e0] sm:$0xff] }
  0x98   :  { %2958 = vmatprep.subr.bf16.mxu0 %v7374_v1  ;;  %v6270_v43 = vcombine.low %v176_v27, %v180_v29 }
  0x99   :  { %2200 = vmatmul.mubr.bf16.gmra.mrb[44].mxu1 %v6206_v33  ;;  %v6262_v33 = vcombine.low %v168_v10, %v172_v20 }
  0x9a   :  { %2714 = vmatmul.mubr.bf16.gmra.mrb[12].mxu0 %v6146_v16  ;;  %2207 = vmatprep.mubr.bf16.mxu1 %v6215_v35  ;;  %v6202_v16 = vcombine.low %v106_v21, %v110_v12  ;;  %v6271_v35 = vcombine.high %v176_v27, %v180_v29  ;;  %v232_v12 = vld [vmem:[%s9274_s0 + $0x680] sm:$0xff] }
  0x9b   :  { %2721 = vmatprep.mubr.bf16.mxu0 %v6155_v37  ;;  %2959 = vmatpush1.bf16.msra.mxu0 %v7339_v39  ;;  %v6211_v37 = vcombine.high %v114_v14, %v118_v31  ;;  %v7346_v39 = vld [vmem:[%s9275_s1 + $0x1e8] sm:$0xff]  }
  0x9c   :  { %2960 = vmatprep.subr.bf16.mxu0 %v7374_v1 }
  0x9f   :  { %2961 = vmatpush1.bf16.msra.mxu0 %v7340_v42  ;;  %v122_v42 = vld [vmem:[%s9274_s0 + $0x310] sm:$0xff] }
  0xa0   :  { %2962 = vmatprep.subr.bf16.mxu0 %v7374_v1  ;;  %v6218_v28 = vcombine.low %v122_v42, %v126_v18 }
  0xa1   :  { %2208 = vmatmul.mubr.bf16.gmra.mrb[48].mxu1 %v6214_v44  ;;  %v6210_v44 = vcombine.low %v114_v14, %v118_v31  ;;  %v240_v31 = vld [vmem:[%s9274_s0 + $0x6c0] sm:$0xff] }
  0xa2   :  { %2722 = vmatmul.mubr.bf16.gmra.mrb[16].mxu0 %v6154_v26  ;;  %2215 = vmatprep.mubr.bf16.mxu1 %v6223_v45  ;;  %v6279_v26 = vcombine.high %v184_v40, %v188_v41  ;;  %v6219_v45 = vcombine.high %v122_v42, %v126_v18  ;;  %v248_v42 = vld [vmem:[%s9274_s0 + $0x700] sm:$0xff] }
  0xa3   :  { %2729 = vmatprep.mubr.bf16.mxu0 %v6163_v46  ;;  %2963 = vmatpush1.bf16.msra.mxu0 %v7341_v47  ;;  %v192_v46 = vld [vmem:[%s9274_s0 + $0x540] sm:$0xff] }
  0xa4   :  { %2964 = vmatprep.subr.bf16.mxu0 %v7374_v1  ;;  %v196_v47 = vld [vmem:[%s9274_s0 + $0x560] sm:$0xff] }
  0xa5   :  { %v6287_v51 = vcombine.high %v192_v46, %v196_v47  ;;  %v6286_v57 = vcombine.low %v192_v46, %v196_v47  ;;  %v252_v18 = vld [vmem:[%s9274_s0 + $0x720] sm:$0xff] }
  0xa7   :  { %2965 = vmatpush1.bf16.msra.mxu0 %v7342_v50  ;;  %v6278_v50 = vcombine.low %v184_v40, %v188_v41 }
  0xa8   :  { %2966 = vmatprep.subr.bf16.mxu0 %v7374_v1 }
  0xa9   :  { %2216 = vmatmul.mubr.bf16.gmra.mrb[52].mxu1 %v6222_v52  ;;  %v6227_v52 = vcombine.high %v130_v48, %v134_v49  ;;  %v6343_v48 = vcombine.high %v248_v42, %v252_v18 }
  0xaa   :  { %2730 = vmatmul.mubr.bf16.gmra.mrb[20].mxu0 %v6162_v30  ;;  %2223 = vmatprep.mubr.bf16.mxu1 %v6231_v53  ;;  %v7347_v30 = vld [vmem:[%s9275_s1 + $0x1f0] sm:$0xff]   ;;  %v200_v53 = vld [vmem:[%s9274_s0 + $0x580] sm:$0xff]  ;;  %s6107_s1 = sshll.u32 %s7378_s12, 4  ;;  %s6108_s1 = int_to_ptr.vmem [resolvable:$true] %s6107_s1 }
  0xab   :  { %2737 = vmatprep.mubr.bf16.mxu0 %v6171_v54  ;;  %2967 = vmatpush1.bf16.msra.mxu0 %v7343_v55  ;;  %v204_v54 = vld [vmem:[%s9274_s0 + $0x5a0] sm:$0xff]  ;;  %v138_v55 = vld [vmem:[%s9274_s0 + $0x390] sm:$0xff]  ;;  %s7350_s13 = scalar_lea.vmem %s6108_s1, 32  ;;  %p7355_p1 = scmp.lt.s32.totalorder %s6108_s1, %s6108_s1 }
  0xac   :  { %2968 = vmatprep.subr.bf16.mxu0 %v7374_v1  ;;  %v6295_v32 = vcombine.high %v200_v53, %v204_v54  ;;  %v6234_v63 = vcombine.low %v138_v55, %v142_v56  ;;  %p7351_p0 = scmp.ne.s32.totalorder %s6108_s1, %s7350_s13  ;;  %p7356_p2 = scmp.lt.s32.totalorder %s7350_s13, %s7350_s13 }
  0xae   :  { %p7357_p3 = por %p7356_p2, %p7355_p1 }
  0xaf   :  { %2969 = vmatpush1.bf16.msra.mxu0 %v7344_v62  ;;  %v6294_v62 = vcombine.low %v200_v53, %v204_v54  ;;  %v198_v53 = vld [vmem:[%s9274_s0 + $0x570] sm:$0xff] }
  0xb0   :  { %2970 = vmatprep.subr.bf16.mxu0 %v7374_v1  ;;  %p7358_p4 = pnand %p7357_p3, %p7351_p0 }
  0xb1   :  { %2224 = vmatmul.mubr.bf16.gmra.mrb[56].mxu1 %v6230_v59  ;;  %v6235_v59 = vcombine.high %v138_v55, %v142_v56  ;;  %v6342_v55 = vcombine.low %v248_v42, %v252_v18 }
  0xb2   :  { %2738 = vmatmul.mubr.bf16.gmra.mrb[24].mxu0 %v6170_v60  ;;  %2231 = vmatprep.mubr.bf16.mxu1 %v6239_v34  ;;  %v208_v60 = vld [vmem:[%s9274_s0 + $0x5c0] sm:$0xff] }
  0xb3   :  { %2745 = vmatprep.mubr.bf16.mxu0 %v6179_v61  ;;  %2971 = vmatpush1.bf16.msra.mxu0 %v7345_v19  ;;  %v212_v34 = vld [vmem:[%s9274_s0 + $0x5e0] sm:$0xff]  ;;  %v146_v61 = vld [vmem:[%s9274_s0 + $0x3d0] sm:$0xff] }
  0xb4   :  { %2972 = vmatprep.subr.bf16.mxu0 %v7374_v1  ;;  %v6303_v0 = vcombine.high %v208_v60, %v212_v34  ;;  %v6302_v6 = vcombine.low %v208_v60, %v212_v34  ;;  %v264_v34 = vld [vmem:[%s9274_s0 + $0x780] sm:$0xff] }
  0xb7   :  { %2973 = vmatpush1.bf16.msra.mxu0 %v7346_v39 }
  0xb8   :  { %2974 = vmatprep.subr.bf16.mxu0 %v7374_v1 }
  0xb9   :  { %2232 = vmatmul.mubr.bf16.gmra.mrb[60].mxu1 %v6238_v36  ;;  %v216_v36 = vld [vmem:[%s9274_s0 + $0x600] sm:$0xff] }
  0xba   :  { %2746 = vmatmul.mubr.bf16.gmra.mrb[28].mxu0 %v6178_v4  ;;  %2239 = vmatprep.mubr.bf16.mxu1 %v6247_v5  ;;  %v220_v4 = vld [vmem:[%s9274_s0 + $0x620] sm:$0xff]  ;;  %v154_v5 = vld [vmem:[%s9274_s0 + $0x410] sm:$0xff] }
  0xbb   :  { %2753 = vmatprep.mubr.bf16.mxu0 %v6187_v38  ;;  %2975 = vmatpush1.bf16.msra.mxu0 %v7347_v30  ;;  %v158_v38 = vld [vmem:[%s9274_s0 + $0x430] sm:$0xff]  ;;  %v6311_v8 = vcombine.high %v216_v36, %v220_v4  ;;  %v6310_v19 = vcombine.low %v216_v36, %v220_v4 }
  0xbc   :  { %2976 = vmatprep.subr.bf16.mxu0 %v7374_v1  ;;  %v150_v1 = vld [vmem:[%s9274_s0 + $0x3f0] sm:$0xff]  ;;  %v6251_v9 = vcombine.high %v154_v5, %v158_v38  ;;  %v6250_v10 = vcombine.low %v154_v5, %v158_v38 }
  0xbd   :  { %v6243_v2 = vcombine.high %v146_v61, %v150_v1  ;;  %v6242_v7 = vcombine.low %v146_v61, %v150_v1  ;;  %v194_v30 = vld [vmem:[%s9274_s0 + $0x550] sm:$0xff]  ;;  %v268_v61 = vld [vmem:[%s9274_s0 + $0x7a0] sm:$0xff] }
  0xbe   :  { %v202_v1 = vld [vmem:[%s9274_s0 + $0x590] sm:$0xff]  ;;  %v6359_v36 = vcombine.high %v264_v34, %v268_v61 }
  0xbf   :  { %2977 = vmatpush1.bf16.msra.mxu0 %v7348_v3  ;;  %v6290_v3 = vcombine.low %v194_v30, %v198_v53 }
  0xc1   :  { %2240 = vmatmul.mubr.bf16.gmra.mrb[64].mxu1 %v6246_v11  ;;  %v224_v11 = vld [vmem:[%s9274_s0 + $0x640] sm:$0xff] }
  0xc2   :  { %2754 = vmatmul.mubr.bf16.gmra.mrb[32].mxu0 %v6186_v13  ;;  %2247 = vmatprep.mubr.bf16.mxu1 %v6255_v15  ;;  %v228_v13 = vld [vmem:[%s9274_s0 + $0x660] sm:$0xff]  ;;  %v162_v15 = vld [vmem:[%s9274_s0 + $0x450] sm:$0xff] }
  0xc3   :  { %2761 = vmatprep.mubr.bf16.mxu0 %v6195_v17  ;;  %v166_v17 = vld [vmem:[%s9274_s0 + $0x470] sm:$0xff]  ;;  %v6319_v20 = vcombine.high %v224_v11, %v228_v13 }
  0xc4   :  { %v6259_v21 = vcombine.high %v162_v15, %v166_v17  ;;  %v6258_v27 = vcombine.low %v162_v15, %v166_v17 }
  0xc9   :  { %2248 = vmatmul.mubr.bf16.gmra.mrb[68].mxu1 %v6254_v22  ;;  %v236_v22 = vld [vmem:[%s9274_s0 + $0x6a0] sm:$0xff] }
  0xca   :  { %2762 = vmatmul.mubr.bf16.gmra.mrb[36].mxu0 %v6194_v23  ;;  %2255 = vmatprep.mubr.bf16.mxu1 %v6263_v24  ;;  %v170_v23 = vld [vmem:[%s9274_s0 + $0x490] sm:$0xff]  ;;  %v6327_v29 = vcombine.high %v232_v12, %v236_v22 }
  0xcb   :  { %2769 = vmatprep.mubr.bf16.mxu0 %v6203_v25  ;;  %v174_v24 = vld [vmem:[%s9274_s0 + $0x4b0] sm:$0xff]  ;;  %v6318_v25 = vcombine.low %v224_v11, %v228_v13  ;;  %v6358_v13 = vcombine.low %v264_v34, %v268_v61  ;;  %v113_v34 = vld [vmem:[%s9274_s0 + $0x2c8] sm:$0xff] }
  0xcc   :  { %v6267_v14 = vcombine.high %v170_v23, %v174_v24  ;;  %v6266_v39 = vcombine.low %v170_v23, %v174_v24  ;;  %v218_v23 = vld [vmem:[%s9274_s0 + $0x610] sm:$0xff]  ;;  %v117_v61 = vld [vmem:[%s9274_s0 + $0x2e8] sm:$0xff] }
  0xcd   :  { %v222_v24 = vld [vmem:[%s9274_s0 + $0x630] sm:$0xff] }
  0xd1   :  { %2256 = vmatmul.mubr.bf16.gmra.mrb[72].mxu1 %v6262_v33  ;;  %v244_v33 = vld [vmem:[%s9274_s0 + $0x6e0] sm:$0xff] }
  0xd2   :  { %2770 = vmatmul.mubr.bf16.gmra.mrb[40].mxu0 %v6202_v16  ;;  %2263 = vmatprep.mubr.bf16.mxu1 %v6271_v35  ;;  %v178_v16 = vld [vmem:[%s9274_s0 + $0x4d0] sm:$0xff]  ;;  %v6335_v40 = vcombine.high %v240_v31, %v244_v33 }
  0xd3   :  { %2777 = vmatprep.mubr.bf16.mxu0 %v6211_v37  ;;  %v182_v35 = vld [vmem:[%s9274_s0 + $0x4f0] sm:$0xff]  ;;  %v6326_v37 = vcombine.low %v232_v12, %v236_v22  ;;  %v89_v12 = vld [vmem:[%s9274_s0 + $0x208] sm:$0xff] }
  0xd4   :  { %v6275_v41 = vcombine.high %v178_v16, %v182_v35  ;;  %v6274_v47 = vcombine.low %v178_v16, %v182_v35  ;;  %v93_v22 = vld [vmem:[%s9274_s0 + $0x228] sm:$0xff]  ;;  %v6315_v16 = vcombine.high %v218_v23, %v222_v24 }
  0xd5   :  { %v6184_v18 = vcombine.low %v89_v12, %v93_v22 }
  0xd9   :  { %2264 = vmatmul.mubr.bf16.gmra.mrb[76].mxu1 %v6270_v43  ;;  %v186_v43 = vld [vmem:[%s9274_s0 + $0x510] sm:$0xff] }
  0xda   :  { %2778 = vmatmul.mubr.bf16.gmra.mrb[44].mxu0 %v6210_v44  ;;  %2271 = vmatprep.mubr.bf16.mxu1 %v6279_v26  ;;  %v190_v44 = vld [vmem:[%s9274_s0 + $0x530] sm:$0xff] }
  0xdb   :  { %2785 = vmatprep.mubr.bf16.mxu0 %v6219_v45  ;;  %v6334_v45 = vcombine.low %v240_v31, %v244_v33  ;;  %v6185_v31 = vcombine.high %v89_v12, %v93_v22  ;;  %v129_v12 = vld [vmem:[%s9274_s0 + $0x348] sm:$0xff] }
  0xdc   :  { %v133_v22 = vld [vmem:[%s9274_s0 + $0x368] sm:$0xff] }
  0xe1   :  { %2272 = vmatmul.mubr.bf16.gmra.mrb[80].mxu1 %v6278_v50  ;;  %v6283_v50 = vcombine.high %v186_v43, %v190_v44 }
  0xe2   :  { %2786 = vmatmul.mubr.bf16.gmra.mrb[48].mxu0 %v6218_v28  ;;  %2279 = vmatprep.mubr.bf16.mxu1 %v6287_v51  ;;  %v256_v51 = vld [vmem:[%s9274_s0 + $0x740] sm:$0xff] }
  0xe3   :  { %2793 = vmatprep.mubr.bf16.mxu0 %v6227_v52  ;;  %v260_v52 = vld [vmem:[%s9274_s0 + $0x760] sm:$0xff] }
  0xe9   :  { %2280 = vmatmul.mubr.bf16.gmra.mrb[84].mxu1 %v6286_v57  ;;  %v6282_v57 = vcombine.low %v186_v43, %v190_v44  ;;  %v6314_v44 = vcombine.low %v218_v23, %v222_v24  ;;  %v258_v23 = vld [vmem:[%s9274_s0 + $0x750] sm:$0xff] }
  0xea   :  { %2794 = vmatmul.mubr.bf16.gmra.mrb[52].mxu0 %v6226_v58  ;;  %2287 = vmatprep.mubr.bf16.mxu1 %v6295_v32  ;;  %v6351_v58 = vcombine.high %v256_v51, %v260_v52  ;;  %v262_v24 = vld [vmem:[%s9274_s0 + $0x770] sm:$0xff] }
  0xeb   :  { %2801 = vmatprep.mubr.bf16.mxu0 %v6235_v59  ;;  %v6291_v59 = vcombine.high %v194_v30, %v198_v53 }
  0xf1   :  { %2288 = vmatmul.mubr.bf16.gmra.mrb[88].mxu1 %v6294_v62  ;;  %v206_v62 = vld [vmem:[%s9274_s0 + $0x5b0] sm:$0xff] }
  0xf2   :  { %2802 = vmatmul.mubr.bf16.gmra.mrb[56].mxu0 %v6234_v63  ;;  %2295 = vmatprep.mubr.bf16.mxu1 %v6303_v0  ;;  %v6350_v0 = vcombine.low %v256_v51, %v260_v52  ;;  %v6299_v5 = vcombine.high %v202_v1, %v206_v62  ;;  %v6298_v17 = vcombine.low %v202_v1, %v206_v62  ;;  %v234_v51 = vld [vmem:[%s9274_s0 + $0x690] sm:$0xff] }
  0xf3   :  { %2809 = vmatprep.mubr.bf16.mxu0 %v6243_v2  ;;  %v238_v52 = vld [vmem:[%s9274_s0 + $0x6b0] sm:$0xff] }
  0xf4   :  { %v242_v1 = vld [vmem:[%s9274_s0 + $0x6d0] sm:$0xff] }
  0xf5   :  { %v246_v62 = vld [vmem:[%s9274_s0 + $0x6f0] sm:$0xff] }
  0xf9   :  { %2296 = vmatmul.mubr.bf16.gmra.mrb[92].mxu1 %v6302_v6  ;;  %v272_v6 = vld [vmem:[%s9274_s0 + $0x7c0] sm:$0xff] }
  0xfa   :  { %2810 = vmatmul.mubr.bf16.gmra.mrb[60].mxu0 %v6242_v7  ;;  %2303 = vmatprep.mubr.bf16.mxu1 %v6311_v8  ;;  %v276_v7 = vld [vmem:[%s9274_s0 + $0x7e0] sm:$0xff]  ;;  %v210_v8 = vld [vmem:[%s9274_s0 + $0x5d0] sm:$0xff] }
  0xfb   :  { %2817 = vmatprep.mubr.bf16.mxu0 %v6251_v9  ;;  %v214_v9 = vld [vmem:[%s9274_s0 + $0x5f0] sm:$0xff] }
 0x101   :  { %2304 = vmatmul.mubr.bf16.gmra.mrb[96].mxu1 %v6310_v19  ;;  %v6367_v19 = vcombine.high %v272_v6, %v276_v7 }
 0x102   :  { %2818 = vmatmul.mubr.bf16.gmra.mrb[64].mxu0 %v6250_v10  ;;  %2311 = vmatprep.mubr.bf16.mxu1 %v6319_v20  ;;  %v6307_v20 = vcombine.high %v210_v8, %v214_v9 }
 0x103   :  { %2825 = vmatprep.mubr.bf16.mxu0 %v6259_v21 }
 0x109   :  { %2312 = vmatmul.mubr.bf16.gmra.mrb[100].mxu1 %v6318_v25 }
 0x10a   :  { %2826 = vmatmul.mubr.bf16.gmra.mrb[68].mxu0 %v6258_v27  ;;  %2319 = vmatprep.mubr.bf16.mxu1 %v6327_v29  ;;  %v6366_v27 = vcombine.low %v272_v6, %v276_v7  ;;  %v6339_v6 = vcombine.high %v242_v1, %v246_v62 }
 0x10b   :  { %2833 = vmatprep.mubr.bf16.mxu0 %v6267_v14  ;;  %v6306_v14 = vcombine.low %v210_v8, %v214_v9  ;;  %v121_v8 = vld [vmem:[%s9274_s0 + $0x308] sm:$0xff] }
 0x10c   :  { %v125_v9 = vld [vmem:[%s9274_s0 + $0x328] sm:$0xff] }
 0x111   :  { %2320 = vmatmul.mubr.bf16.gmra.mrb[104].mxu1 %v6326_v37  ;;  %v97_v37 = vld [vmem:[%s9274_s0 + $0x248] sm:$0xff] }
 0x112   :  { %2834 = vmatmul.mubr.bf16.gmra.mrb[72].mxu0 %v6266_v39  ;;  %2327 = vmatprep.mubr.bf16.mxu1 %v6335_v40  ;;  %v101_v39 = vld [vmem:[%s9274_s0 + $0x268] sm:$0xff]  ;;  %v226_v40 = vld [vmem:[%s9274_s0 + $0x650] sm:$0xff] }
 0x113   :  { %2841 = vmatprep.mubr.bf16.mxu0 %v6275_v41  ;;  %v230_v41 = vld [vmem:[%s9274_s0 + $0x670] sm:$0xff]  ;;  %v6192_v53 = vcombine.low %v97_v37, %v101_v39 }
 0x114   :  { %v8102_v26 = vpop.f32.mrb[0].mxu1 }
 0x115   :  { %v2115_v46 = vpop.f32.mrb[1].mxu1 }
 0x116   :  { %v8104_v49 = vpop.f32.mrb[2].mxu1 }
 0x117   :  { %v2118_v28 = vpop.f32.mrb[3].mxu1 }
 0x118   :  { %v109_v28 = vld [vmem:[%s9274_s0 + $0x2a8] sm:$0xff] }
 0x119   :  { %2328 = vmatmul.mubr.bf16.gmra.mrb[108].mxu1 %v6334_v45  ;;  %v6193_v45 = vcombine.high %v97_v37, %v101_v39  ;;  %v266_v37 = vld [vmem:[%s9274_s0 + $0x790] sm:$0xff] }
 0x11a   :  { %2842 = vmatmul.mubr.bf16.gmra.mrb[76].mxu0 %v6274_v47  ;;  %2335 = vmatprep.mubr.bf16.mxu1 %v6343_v48  ;;  %v6323_v47 = vcombine.high %v226_v40, %v230_v41  ;;  %v270_v39 = vld [vmem:[%s9274_s0 + $0x7b0] sm:$0xff] }
 0x11b   :  { %2849 = vmatprep.mubr.bf16.mxu0 %v6283_v50  ;;  %v105_v50 = vld [vmem:[%s9274_s0 + $0x288] sm:$0xff] }
 0x11c   :  { %v8118_v54 = vpop.f32.mrb[4].mxu1 }
 0x11d   :  { %v2123_v56 = vpop.f32.mrb[5].mxu1 }
 0x11e   :  { %v8120_v32 = vpop.f32.mrb[6].mxu1  ;;  %v6322_v56 = vcombine.low %v226_v40, %v230_v41  ;;  %v6224_v40 = vcombine.low %v129_v12, %v133_v22  ;;  %v6354_v41 = vcombine.low %v258_v23, %v262_v24 }
 0x11f   :  { %v2126_v60 = vpop.f32.mrb[7].mxu1 }
 0x121   :  { %2336 = vmatmul.mubr.bf16.gmra.mrb[112].mxu1 %v6342_v55 }
 0x122   :  { %2850 = vmatmul.mubr.bf16.gmra.mrb[80].mxu0 %v6282_v57  ;;  %2343 = vmatprep.mubr.bf16.mxu1 %v6351_v58  ;;  %v6201_v57 = vcombine.high %v105_v50, %v109_v28 }
 0x123   :  { %2857 = vmatprep.mubr.bf16.mxu0 %v6291_v59  ;;  %v6331_v59 = vcombine.high %v234_v51, %v238_v52 }
 0x124   :  { %v8134_v63 = vpop.f32.mrb[8].mxu1 }
 0x125   :  { %v2131_v2 = vpop.f32.mrb[9].mxu1 }
 0x126   :  { %v8136_v4 = vpop.f32.mrb[10].mxu1  ;;  %v6200_v2 = vcombine.low %v105_v50, %v109_v28  ;;  %v6362_v28 = vcombine.low %v266_v37, %v270_v39 }
 0x127   :  { %v2134_v38 = vpop.f32.mrb[11].mxu1 }
 0x129   :  { %2344 = vmatmul.mubr.bf16.gmra.mrb[116].mxu1 %v6350_v0 }
 0x12a   :  { %2858 = vmatmul.mubr.bf16.gmra.mrb[84].mxu0 %v6290_v3  ;;  %2351 = vmatprep.mubr.bf16.mxu1 %v6359_v36  ;;  %v6330_v36 = vcombine.low %v234_v51, %v238_v52 }
 0x12b   :  { %2865 = vmatprep.mubr.bf16.mxu0 %v6299_v5  ;;  %v6209_v5 = vcombine.high %v113_v34, %v117_v61 }
 0x12c   :  { %v8150_v11 = vpop.f32.mrb[12].mxu1 }
 0x12d   :  { %v2139_v15 = vpop.f32.mrb[13].mxu1 }
 0x12e   :  { %v8152_v10 = vpop.f32.mrb[14].mxu1  ;;  %v254_v15 = vld [vmem:[%s9274_s0 + $0x730] sm:$0xff] }
 0x12f   :  { %v2142_v21 = vpop.f32.mrb[15].mxu1 }
 0x131   :  { %2352 = vmatmul.mubr.bf16.gmra.mrb[120].mxu1 %v6358_v13  ;;  %v250_v13 = vld [vmem:[%s9274_s0 + $0x710] sm:$0xff] }
 0x132   :  { %2866 = vmatmul.mubr.bf16.gmra.mrb[88].mxu0 %v6298_v17  ;;  %2359 = vmatprep.mubr.bf16.mxu1 %v6367_v19  ;;  %v6208_v17 = vcombine.low %v113_v34, %v117_v61  ;;  %v6338_v19 = vcombine.low %v242_v1, %v246_v62  ;;  %v6347_v21 = vcombine.high %v250_v13, %v254_v15  ;;  %v161_v1 = vld [vmem:[%s9274_s0 + $0x448] sm:$0xff] }
 0x133   :  { %2873 = vmatprep.mubr.bf16.mxu0 %v6307_v20  ;;  %v6217_v20 = vcombine.high %v121_v8, %v125_v9  ;;  %v165_v62 = vld [vmem:[%s9274_s0 + $0x468] sm:$0xff] }
 0x134   :  { %v8166_v25 = vpop.f32.mrb[16].mxu1 }
 0x135   :  { %v2147_v29 = vpop.f32.mrb[17].mxu1 }
 0x136   :  { %v8168_v33 = vpop.f32.mrb[18].mxu1  ;;  %v6346_v29 = vcombine.low %v250_v13, %v254_v15  ;;  %v43_v13 = vld [vmem:[%s9274_s0 + $0x98] sm:$0xff] }
 0x137   :  { %v2150_v35 = vpop.f32.mrb[19].mxu1  ;;  %v47_v15 = vld [vmem:[%s9274_s0 + $0xb8] sm:$0xff] }
 0x138   :  { %v141_v35 = vld [vmem:[%s9274_s0 + $0x3a8] sm:$0xff] }
 0x139   :  { %2360 = vmatmul.mubr.bf16.gmra.mrb[124].mxu1 %v6366_v27  ;;  %v6216_v27 = vcombine.low %v121_v8, %v125_v9  ;;  %v169_v8 = vld [vmem:[%s9274_s0 + $0x488] sm:$0xff] }
 0x13a   :  { %2874 = vmatmul.mubr.bf16.gmra.mrb[92].mxu0 %v6306_v14  ;;  %2464 = vmatprep.mubr.bf16.mxu1 %v6185_v31  ;;  %v6225_v14 = vcombine.high %v129_v12, %v133_v22  ;;  %v6355_v31 = vcombine.high %v258_v23, %v262_v24  ;;  %v173_v9 = vld [vmem:[%s9274_s0 + $0x4a8] sm:$0xff]  ;;  %v51_v23 = vld [vmem:[%s9274_s0 + $0xd8] sm:$0xff] }
 0x13b   :  { %2881 = vmatprep.mubr.bf16.mxu0 %v6315_v16  ;;  %v137_v16 = vld [vmem:[%s9274_s0 + $0x388] sm:$0xff]  ;;  %v55_v24 = vld [vmem:[%s9274_s0 + $0xf8] sm:$0xff] }
 0x13c   :  { %v8182_v42 = vpop.f32.mrb[20].mxu1  ;;  %v6232_v50 = vcombine.low %v137_v16, %v141_v35  ;;  %v177_v12 = vld [vmem:[%s9274_s0 + $0x4c8] sm:$0xff] }
 0x13d   :  { %v2155_v43 = vpop.f32.mrb[21].mxu1  ;;  %v181_v22 = vld [vmem:[%s9274_s0 + $0x4e8] sm:$0xff] }
 0x13e   :  { %v8184_v46 = vpop.f32.mrb[22].mxu1  ;;  %v6363_v43 = vcombine.high %v266_v37, %v270_v39  ;;  %v59_v37 = vld [vmem:[%s9274_s0 + $0x118] sm:$0xff] }
 0x13f   :  { %v2158_v48 = vpop.f32.mrb[23].mxu1  ;;  %v63_v39 = vld [vmem:[%s9274_s0 + $0x138] sm:$0xff] }
 0x140   :  { %v278_v48 = vld [vmem:[%s9274_s0 + $0x7f0] sm:$0xff] }
 0x141   :  { %2465 = vmatmul.mubr.bf16.vlgmr.msra.gmra.mrb[32].mxu1 %v6184_v18  ;;  %v6233_v18 = vcombine.high %v137_v16, %v141_v35  ;;  %v185_v16 = vld [vmem:[%s9274_s0 + $0x508] sm:$0xff] }
 0x142   :  { %2882 = vmatmul.mubr.bf16.gmra.mrb[96].mxu0 %v6314_v44  ;;  %2472 = vmatprep.mubr.bf16.mxu1 %v6193_v45  ;;  %v145_v44 = vld [vmem:[%s9274_s0 + $0x3c8] sm:$0xff] }
 0x143   :  { %2889 = vmatprep.mubr.bf16.mxu0 %v6323_v47  ;;  %v149_v45 = vld [vmem:[%s9274_s0 + $0x3e8] sm:$0xff]  ;;  %v274_v47 = vld [vmem:[%s9274_s0 + $0x7d0] sm:$0xff] }
 0x144   :  { %v8198_v30 = vpop.f32.mrb[24].mxu1  ;;  %v6241_v51 = vcombine.high %v145_v44, %v149_v45  ;;  %v6371_v52 = vcombine.high %v274_v47, %v278_v48  ;;  %v189_v35 = vld [vmem:[%s9274_s0 + $0x528] sm:$0xff] }
 0x145   :  { %v2163_v55 = vpop.f32.mrb[25].mxu1 }
 0x146   :  { %v8200_v58 = vpop.f32.mrb[26].mxu1  ;;  %v157_v55 = vld [vmem:[%s9274_s0 + $0x428] sm:$0xff] }
 0x147   :  { %v2166_v60 = vpop.f32.mrb[27].mxu1 }
 0x148   :  { %v6370_v60 = vcombine.low %v274_v47, %v278_v48  ;;  %v67_v47 = vld [vmem:[%s9274_s0 + $0x158] sm:$0xff] }
 0x149   :  { %2473 = vmatmul.mubr.bf16.gmra.mrb[36].mxu1 %v6192_v53  ;;  %v153_v53 = vld [vmem:[%s9274_s0 + $0x408] sm:$0xff]  ;;  %v71_v48 = vld [vmem:[%s9274_s0 + $0x178] sm:$0xff] }
 0x14a   :  { %2890 = vmatmul.mubr.bf16.gmra.mrb[100].mxu0 %v6322_v56  ;;  %2480 = vmatprep.mubr.bf16.mxu1 %v6201_v57  ;;  %v27_v56 = vld [vmem:[%s9274_s0 + $0x18] sm:$0xff]  ;;  %v6249_v34 = vcombine.high %v153_v53, %v157_v55 }
 0x14b   :  { %2897 = vmatprep.mubr.bf16.mxu0 %v6331_v59  ;;  %v31_v57 = vld [vmem:[%s9274_s0 + $0x38] sm:$0xff]  ;;  %v6240_v59 = vcombine.low %v145_v44, %v149_v45  ;;  %v193_v44 = vld [vmem:[%s9274_s0 + $0x548] sm:$0xff] }
 0x14c   :  { %v8214_v0 = vpop.f32.mrb[28].mxu1  ;;  %v6125_v61 = vcombine.high %v27_v56, %v31_v57  ;;  %v197_v45 = vld [vmem:[%s9274_s0 + $0x568] sm:$0xff] }
 0x14d   :  { %v2171_v3 = vpop.f32.mrb[29].mxu1 }
 0x14e   :  { %v8216_v38 = vpop.f32.mrb[30].mxu1  ;;  %v39_v3 = vld [vmem:[%s9274_s0 + $0x78] sm:$0xff] }
 0x14f   :  { %v2174_v7 = vpop.f32.mrb[31].mxu1 }
 0x151   :  { %2481 = vmatmul.mubr.bf16.gmra.mrb[40].mxu1 %v6200_v2  ;;  %v35_v2 = vld [vmem:[%s9274_s0 + $0x58] sm:$0xff] }
 0x152   :  { %2898 = vmatmul.mubr.bf16.gmra.mrb[104].mxu0 %v6330_v36  ;;  %2488 = vmatprep.mubr.bf16.mxu1 %v6209_v5  ;;  %v6248_v36 = vcombine.low %v153_v53, %v157_v55  ;;  %v6124_v5 = vcombine.low %v27_v56, %v31_v57  ;;  %v6133_v7 = vcombine.high %v35_v2, %v39_v3  ;;  %v201_v53 = vld [vmem:[%s9274_s0 + $0x588] sm:$0xff]  ;;  %v75_v56 = vld [vmem:[%s9274_s0 + $0x198] sm:$0xff] }
 0x153   :  { %2905 = vmatprep.mubr.bf16.mxu0 %v6339_v6  ;;  %v6257_v6 = vcombine.high %v161_v1, %v165_v62  ;;  %v205_v55 = vld [vmem:[%s9274_s0 + $0x5a8] sm:$0xff]  ;;  %v79_v57 = vld [vmem:[%s9274_s0 + $0x1b8] sm:$0xff] }
 0x159   :  { %2489 = vmatmul.mubr.bf16.gmra.mrb[44].mxu1 %v6208_v17  ;;  %v6256_v17 = vcombine.low %v161_v1, %v165_v62  ;;  %v6439_v1 = vld [vmem:[%s9277_s3 + $0x38] sm:$0xff]  ;;  %v6442_v62 = vld [vmem:[%s9277_s3 + $0x50] sm:$0xff] }
 0x15a   :  { %2906 = vmatmul.mubr.bf16.gmra.mrb[108].mxu0 %v6338_v19  ;;  %2496 = vmatprep.mubr.bf16.mxu1 %v6217_v20  ;;  %v6132_v19 = vcombine.low %v35_v2, %v39_v3  ;;  %v6265_v20 = vcombine.high %v169_v8, %v173_v9  ;;  %v209_v2 = vld [vmem:[%s9274_s0 + $0x5c8] sm:$0xff] }
 0x15b   :  { %2913 = vmatprep.mubr.bf16.mxu0 %v6347_v21  ;;  %v6141_v21 = vcombine.high %v43_v13, %v47_v15  ;;  %v213_v3 = vld [vmem:[%s9274_s0 + $0x5e8] sm:$0xff] }
 0x161   :  { %2497 = vmatmul.mubr.bf16.gmra.mrb[48].mxu1 %v6216_v27  ;;  %v6264_v27 = vcombine.low %v169_v8, %v173_v9  ;;  %v6438_v8 = vld [vmem:[%s9277_s3 + $0x30] sm:$0xff]  ;;  %v6441_v9 = vld [vmem:[%s9277_s3 + $0x48] sm:$0xff] }
 0x162   :  { %2914 = vmatmul.mubr.bf16.gmra.mrb[112].mxu0 %v6346_v29  ;;  %2504 = vmatprep.mubr.bf16.mxu1 %v6225_v14  ;;  %v6140_v29 = vcombine.low %v43_v13, %v47_v15  ;;  %v6273_v14 = vcombine.high %v177_v12, %v181_v22  ;;  %v6172_v13 = vcombine.low %v75_v56, %v79_v57 }
 0x163   :  { %2921 = vmatprep.mubr.bf16.mxu0 %v6355_v31  ;;  %v6149_v31 = vcombine.high %v51_v23, %v55_v24  ;;  %v6305_v15 = vcombine.high %v209_v2, %v213_v3 }
 0x169   :  { %2505 = vmatmul.mubr.bf16.gmra.mrb[52].mxu1 %v6224_v40  ;;  %v6272_v40 = vcombine.low %v177_v12, %v181_v22  ;;  %v91_v12 = vld [vmem:[%s9274_s0 + $0x218] sm:$0xff] }
 0x16a   :  { %2922 = vmatmul.mubr.bf16.gmra.mrb[116].mxu0 %v6354_v41  ;;  %2512 = vmatprep.mubr.bf16.mxu1 %v6233_v18  ;;  %v6148_v41 = vcombine.low %v51_v23, %v55_v24  ;;  %v6281_v18 = vcombine.high %v185_v16, %v189_v35  ;;  %v95_v22 = vld [vmem:[%s9274_s0 + $0x238] sm:$0xff]  ;;  %v6304_v23 = vcombine.low %v209_v2, %v213_v3 }
 0x16b   :  { %2929 = vmatprep.mubr.bf16.mxu0 %v6363_v43  ;;  %v6157_v43 = vcombine.high %v59_v37, %v63_v39 }
 0x171   :  { %2513 = vmatmul.mubr.bf16.gmra.mrb[56].mxu1 %v6232_v50  ;;  %v6280_v50 = vcombine.low %v185_v16, %v189_v35  ;;  %v99_v16 = vld [vmem:[%s9274_s0 + $0x258] sm:$0xff] }
 0x172   :  { %2930 = vmatmul.mubr.bf16.gmra.mrb[120].mxu0 %v6362_v28  ;;  %2520 = vmatprep.mubr.bf16.mxu1 %v6241_v51  ;;  %v6156_v28 = vcombine.low %v59_v37, %v63_v39  ;;  %v6289_v51 = vcombine.high %v193_v44, %v197_v45  ;;  %v103_v35 = vld [vmem:[%s9274_s0 + $0x278] sm:$0xff]  ;;  %v6188_v39 = vcombine.low %v91_v12, %v95_v22 }
 0x173   :  { %2937 = vmatprep.mubr.bf16.mxu0 %v6371_v52  ;;  %v6165_v52 = vcombine.high %v67_v47, %v71_v48 }
 0x179   :  { %2521 = vmatmul.mubr.bf16.gmra.mrb[60].mxu1 %v6240_v59  ;;  %v6288_v59 = vcombine.low %v193_v44, %v197_v45  ;;  %v107_v44 = vld [vmem:[%s9274_s0 + $0x298] sm:$0xff] }
 0x17a   :  { %2938 = vmatmul.mubr.bf16.gmra.mrb[124].mxu0 %v6370_v60  ;;  %2528 = vmatprep.mubr.bf16.mxu1 %v6249_v34  ;;  %v6164_v60 = vcombine.low %v67_v47, %v71_v48  ;;  %v6297_v34 = vcombine.high %v201_v53, %v205_v55  ;;  %v111_v45 = vld [vmem:[%s9274_s0 + $0x2b8] sm:$0xff]  ;;  %v6196_v48 = vcombine.low %v99_v16, %v103_v35 }
 0x17b   :  { %2978 = vmatprep.mubr.bf16.mxu0 %v6125_v61  ;;  %v6173_v61 = vcombine.high %v75_v56, %v79_v57  ;;  %v6204_v57 = vcombine.low %v107_v44, %v111_v45 }
 0x181   :  { %2529 = vmatmul.mubr.bf16.gmra.mrb[64].mxu1 %v6248_v36  ;;  %v6722_v36 = vpack.c.bf16 %v6442_v62, %v6439_v1  ;;  %v123_v1 = vld [vmem:[%s9274_s0 + $0x318] sm:$0xff] }
 0x182   :  { %2979 = vmatmul.mubr.bf16.vlgmr.msra.gmra.mrb[0].mxu0 %v6124_v5  ;;  %2536 = vmatprep.mubr.bf16.mxu1 %v6257_v6  ;;  %v83_v5 = vld [vmem:[%s9274_s0 + $0x1d8] sm:$0xff] }
 0x183   :  { %2986 = vmatprep.mubr.bf16.mxu0 %v6133_v7  ;;  %v87_v6 = vld [vmem:[%s9274_s0 + $0x1f8] sm:$0xff]  ;;  %v6296_v7 = vcombine.low %v201_v53, %v205_v55  ;;  %6723 = vmatprep.subr.bf16.mxu1 %v6722_v36 }
 0x184   :  { %v6180_v24 = vcombine.low %v83_v5, %v87_v6  ;;  %v115_v53 = vld [vmem:[%s9274_s0 + $0x2d8] sm:$0xff] }
 0x185   :  { %v119_v55 = vld [vmem:[%s9274_s0 + $0x2f8] sm:$0xff] }
 0x186   :  { %v127_v62 = vld [vmem:[%s9274_s0 + $0x338] sm:$0xff]  ;;  %v6212_v3 = vcombine.low %v115_v53, %v119_v55 }
 0x189   :  { %2537 = vmatmul.mubr.bf16.gmra.mrb[68].mxu1 %v6256_v17  ;;  %v6724_v17 = vpack.c.bf16 %v6441_v9, %v6438_v8  ;;  %v131_v8 = vld [vmem:[%s9274_s0 + $0x358] sm:$0xff] }
 0x18a   :  { %2987 = vmatmul.mubr.bf16.gmra.mrb[4].mxu0 %v6132_v19  ;;  %2544 = vmatprep.mubr.bf16.mxu1 %v6265_v20  ;;  %v6181_v19 = vcombine.high %v83_v5, %v87_v6  ;;  %v217_v20 = vld [vmem:[%s9274_s0 + $0x608] sm:$0xff]  ;;  %v6221_v5 = vcombine.high %v123_v1, %v127_v62  ;;  %v135_v9 = vld [vmem:[%s9274_s0 + $0x378] sm:$0xff] }
 0x18b   :  { %2994 = vmatprep.mubr.bf16.mxu0 %v6141_v21  ;;  %6725 = vmatpush1.bf16.msra.mxu1 %v6724_v17  ;;  %v221_v21 = vld [vmem:[%s9274_s0 + $0x628] sm:$0xff] }
 0x18c   :  { %v6312_v37 = vcombine.low %v217_v20, %v221_v21  ;;  %v257_v6 = vld [vmem:[%s9274_s0 + $0x748] sm:$0xff] }
 0x191   :  { %2545 = vmatmul.mubr.bf16.gmra.mrb[72].mxu1 %v6264_v27  ;;  %v6313_v27 = vcombine.high %v217_v20, %v221_v21  ;;  %v265_v20 = vld [vmem:[%s9274_s0 + $0x788] sm:$0xff] }
 0x192   :  { %2995 = vmatmul.mubr.bf16.gmra.mrb[8].mxu0 %v6140_v29  ;;  %2552 = vmatprep.mubr.bf16.mxu1 %v6273_v14  ;;  %v6189_v29 = vcombine.high %v91_v12, %v95_v22  ;;  %v225_v14 = vld [vmem:[%s9274_s0 + $0x648] sm:$0xff]  ;;  %v139_v12 = vld [vmem:[%s9274_s0 + $0x398] sm:$0xff] }
 0x193   :  { %3002 = vmatprep.mubr.bf16.mxu0 %v6149_v31  ;;  %v229_v31 = vld [vmem:[%s9274_s0 + $0x668] sm:$0xff]  ;;  %v143_v22 = vld [vmem:[%s9274_s0 + $0x3b8] sm:$0xff] }
 0x194   :  { %v6320_v47 = vcombine.low %v225_v14, %v229_v31  ;;  %v269_v21 = vld [vmem:[%s9274_s0 + $0x7a8] sm:$0xff] }
 0x199   :  { %2553 = vmatmul.mubr.bf16.gmra.mrb[76].mxu1 %v6272_v40  ;;  %v6321_v40 = vcombine.high %v225_v14, %v229_v31  ;;  %v273_v14 = vld [vmem:[%s9274_s0 + $0x7c8] sm:$0xff] }
 0x19a   :  { %3003 = vmatmul.mubr.bf16.gmra.mrb[12].mxu0 %v6148_v41  ;;  %2560 = vmatprep.mubr.bf16.mxu1 %v6281_v18  ;;  %v6197_v41 = vcombine.high %v99_v16, %v103_v35  ;;  %v233_v18 = vld [vmem:[%s9274_s0 + $0x688] sm:$0xff]  ;;  %v147_v16 = vld [vmem:[%s9274_s0 + $0x3d8] sm:$0xff] }
 0x19b   :  { %3010 = vmatprep.mubr.bf16.mxu0 %v6157_v43  ;;  %v237_v43 = vld [vmem:[%s9274_s0 + $0x6a8] sm:$0xff]  ;;  %v151_v35 = vld [vmem:[%s9274_s0 + $0x3f8] sm:$0xff] }
 0x19c   :  { %v6328_v56 = vcombine.low %v233_v18, %v237_v43  ;;  %v277_v31 = vld [vmem:[%s9274_s0 + $0x7e8] sm:$0xff] }
 0x1a1   :  { %2561 = vmatmul.mubr.bf16.gmra.mrb[80].mxu1 %v6280_v50  ;;  %v6329_v50 = vcombine.high %v233_v18, %v237_v43  ;;  %v155_v18 = vld [vmem:[%s9274_s0 + $0x418] sm:$0xff] }
 0x1a2   :  { %3011 = vmatmul.mubr.bf16.gmra.mrb[16].mxu0 %v6156_v28  ;;  %2568 = vmatprep.mubr.bf16.mxu1 %v6289_v51  ;;  %v6205_v28 = vcombine.high %v107_v44, %v111_v45  ;;  %v241_v51 = vld [vmem:[%s9274_s0 + $0x6c8] sm:$0xff]  ;;  %v159_v43 = vld [vmem:[%s9274_s0 + $0x438] sm:$0xff]  ;;  %v6368_v44 = vcombine.low %v273_v14, %v277_v31  ;;  %v6244_v45 = vcombine.low %v147_v16, %v151_v35 }
 0x1a3   :  { %3018 = vmatprep.mubr.bf16.mxu0 %v6165_v52  ;;  %v245_v52 = vld [vmem:[%s9274_s0 + $0x6e8] sm:$0xff] }
 0x1a4   :  { %v6336_v2 = vcombine.low %v241_v51, %v245_v52 }
 0x1a9   :  { %2569 = vmatmul.mubr.bf16.gmra.mrb[84].mxu1 %v6288_v59  ;;  %v6337_v59 = vcombine.high %v241_v51, %v245_v52  ;;  %v7375_v52 = vmov 0.0  }
 0x1aa   :  { %3019 = vmatmul.mubr.bf16.gmra.mrb[20].mxu0 %v6164_v60  ;;  %2576 = vmatprep.mubr.bf16.mxu1 %v6297_v34  ;;  %v6213_v60 = vcombine.high %v115_v53, %v119_v55  ;;  %v249_v34 = vld [vmem:[%s9274_s0 + $0x708] sm:$0xff]  ;;  %v171_v53 = vld [vmem:[%s9274_s0 + $0x498] sm:$0xff] }
 0x1ab   :  { %3026 = vmatprep.mubr.bf16.mxu0 %v6173_v61  ;;  %v253_v61 = vld [vmem:[%s9274_s0 + $0x728] sm:$0xff]  ;;  %v175_v55 = vld [vmem:[%s9274_s0 + $0x4b8] sm:$0xff] }
 0x1ac   :  { %v6345_v36 = vcombine.high %v249_v34, %v253_v61 }
 0x1b1   :  { %2577 = vmatmul.mubr.bf16.gmra.mrb[88].mxu1 %v6296_v7  ;;  %v261_v7 = vld [vmem:[%s9274_s0 + $0x768] sm:$0xff] }
 0x1b2   :  { %3027 = vmatmul.mubr.bf16.gmra.mrb[24].mxu0 %v6172_v13  ;;  %2584 = vmatprep.mubr.bf16.mxu1 %v6305_v15  ;;  %v6344_v13 = vcombine.low %v249_v34, %v253_v61  ;;  %v6220_v15 = vcombine.low %v123_v1, %v127_v62  ;;  %v6353_v17 = vcombine.high %v257_v6, %v261_v7  ;;  %v183_v34 = vld [vmem:[%s9274_s0 + $0x4f8] sm:$0xff] }
 0x1b3   :  { %3034 = vmatprep.mubr.bf16.mxu0 %v6181_v19  ;;  %v6229_v19 = vcombine.high %v131_v8, %v135_v9  ;;  %v6268_v61 = vcombine.low %v171_v53, %v175_v55 }
 0x1b9   :  { %2585 = vmatmul.mubr.bf16.gmra.mrb[92].mxu1 %v6304_v23  ;;  %v6352_v23 = vcombine.low %v257_v6, %v261_v7 }
 0x1ba   :  { %3035 = vmatmul.mubr.bf16.gmra.mrb[28].mxu0 %v6180_v24  ;;  %2592 = vmatprep.mubr.bf16.mxu1 %v6313_v27  ;;  %v6228_v24 = vcombine.low %v131_v8, %v135_v9  ;;  %v6361_v27 = vcombine.high %v265_v20, %v269_v21 }
 0x1bb   :  { %3042 = vmatprep.mubr.bf16.mxu0 %v6189_v29  ;;  %v6237_v29 = vcombine.high %v139_v12, %v143_v22 }
 0x1c1   :  { %2593 = vmatmul.mubr.bf16.gmra.mrb[96].mxu1 %v6312_v37  ;;  %v6360_v37 = vcombine.low %v265_v20, %v269_v21 }
 0x1c2   :  { %3043 = vmatmul.mubr.bf16.gmra.mrb[32].mxu0 %v6188_v39  ;;  %2600 = vmatprep.mubr.bf16.mxu1 %v6321_v40  ;;  %v6236_v39 = vcombine.low %v139_v12, %v143_v22  ;;  %v6369_v40 = vcombine.high %v273_v14, %v277_v31 }
 0x1c3   :  { %3050 = vmatprep.mubr.bf16.mxu0 %v6197_v41  ;;  %v6245_v41 = vcombine.high %v147_v16, %v151_v35 }
 0x1c9   :  { %2601 = vmatmul.mubr.bf16.gmra.mrb[100].mxu1 %v6320_v47  ;;  %v6253_v47 = vcombine.high %v155_v18, %v159_v43 }
 0x1ca   :  { %3051 = vmatmul.mubr.bf16.gmra.mrb[36].mxu0 %v6196_v48  ;;  %2608 = vmatprep.mubr.bf16.mxu1 %v6329_v50  ;;  %v163_v48 = vld [vmem:[%s9274_s0 + $0x458] sm:$0xff] }
 0x1cb   :  { %3058 = vmatprep.mubr.bf16.mxu0 %v6205_v28  ;;  %v167_v50 = vld [vmem:[%s9274_s0 + $0x478] sm:$0xff]  ;;  %v6252_v28 = vcombine.low %v155_v18, %v159_v43 }
 0x1cc   :  { %v6261_v51 = vcombine.high %v163_v48, %v167_v50 }
 0x1d1   :  { %2609 = vmatmul.mubr.bf16.gmra.mrb[104].mxu1 %v6328_v56  ;;  %v7376_v56 = vmov 0.0|0.0  }
 0x1d2   :  { %3059 = vmatmul.mubr.bf16.gmra.mrb[40].mxu0 %v6204_v57  ;;  %2616 = vmatprep.mubr.bf16.mxu1 %v6337_v59  ;;  %v6260_v57 = vcombine.low %v163_v48, %v167_v50  ;;  %v6269_v59 = vcombine.high %v171_v53, %v175_v55  ;;  %v223_v48 = vld [vmem:[%s9274_s0 + $0x638] sm:$0xff] }
 0x1d3   :  { %3066 = vmatprep.mubr.bf16.mxu0 %v6213_v60  ;;  %6726 = vmatprep.subr.bf16.mxu1 %v7376_v56  ;;  %v179_v60 = vld [vmem:[%s9274_s0 + $0x4d8] sm:$0xff] }
 0x1d4   :  { %v6277_v1 = vcombine.high %v179_v60, %v183_v34  ;;  %v6276_v6 = vcombine.low %v179_v60, %v183_v34  ;;  %v231_v60 = vld [vmem:[%s9274_s0 + $0x678] sm:$0xff] }
 0x1d9   :  { %2617 = vmatmul.mubr.bf16.gmra.mrb[108].mxu1 %v6336_v2  ;;  %v187_v2 = vld [vmem:[%s9274_s0 + $0x518] sm:$0xff] }
 0x1da   :  { %3067 = vmatmul.mubr.bf16.gmra.mrb[44].mxu0 %v6212_v3  ;;  %2624 = vmatprep.mubr.bf16.mxu1 %v6345_v36  ;;  %v191_v3 = vld [vmem:[%s9274_s0 + $0x538] sm:$0xff] }
 0x1db   :  { %3074 = vmatprep.mubr.bf16.mxu0 %v6221_v5  ;;  %v6285_v8 = vcombine.high %v187_v2, %v191_v3  ;;  %v6284_v20 = vcombine.low %v187_v2, %v191_v3 }
 0x1e1   :  { %2625 = vmatmul.mubr.bf16.gmra.mrb[112].mxu1 %v6344_v13  ;;  %v195_v13 = vld [vmem:[%s9274_s0 + $0x558] sm:$0xff] }
 0x1e2   :  { %3075 = vmatmul.mubr.bf16.gmra.mrb[48].mxu0 %v6220_v15  ;;  %2632 = vmatprep.mubr.bf16.mxu1 %v6353_v17  ;;  %v199_v15 = vld [vmem:[%s9274_s0 + $0x578] sm:$0xff] }
 0x1e3   :  { %3082 = vmatprep.mubr.bf16.mxu0 %v6229_v19  ;;  %v6293_v12 = vcombine.high %v195_v13, %v199_v15  ;;  %v6292_v14 = vcombine.low %v195_v13, %v199_v15 }
 0x1e9   :  { %2633 = vmatmul.mubr.bf16.gmra.mrb[116].mxu1 %v6352_v23  ;;  %v203_v23 = vld [vmem:[%s9274_s0 + $0x598] sm:$0xff] }
 0x1ea   :  { %3083 = vmatmul.mubr.bf16.gmra.mrb[52].mxu0 %v6228_v24  ;;  %2640 = vmatprep.mubr.bf16.mxu1 %v6361_v27  ;;  %v207_v24 = vld [vmem:[%s9274_s0 + $0x5b8] sm:$0xff] }
 0x1eb   :  { %3090 = vmatprep.mubr.bf16.mxu0 %v6237_v29  ;;  %v6301_v16 = vcombine.high %v203_v23, %v207_v24  ;;  %v6300_v18 = vcombine.low %v203_v23, %v207_v24  ;;  %v247_v23 = vld [vmem:[%s9274_s0 + $0x6f8] sm:$0xff] }
 0x1f1   :  { %2641 = vmatmul.mubr.bf16.gmra.mrb[120].mxu1 %v6360_v37  ;;  %v211_v37 = vld [vmem:[%s9274_s0 + $0x5d8] sm:$0xff] }
 0x1f2   :  { %3091 = vmatmul.mubr.bf16.gmra.mrb[56].mxu0 %v6236_v39  ;;  %2648 = vmatprep.mubr.bf16.mxu1 %v6369_v40  ;;  %v215_v39 = vld [vmem:[%s9274_s0 + $0x5f8] sm:$0xff] }
 0x1f3   :  { %3098 = vmatprep.mubr.bf16.mxu0 %v6245_v41 }
 0x1f9   :  { %2649 = vmatmul.mubr.bf16.gmra.mrb[124].mxu1 %v6368_v44  ;;  %v6309_v44 = vcombine.high %v211_v37, %v215_v39 }
 0x1fa   :  { %3099 = vmatmul.mubr.bf16.gmra.mrb[60].mxu0 %v6244_v45  ;;  %3671 = vmatprep.mubr.f32.mxu1 %v7375_v52 }
 0x1fb   :  { %3106 = vmatprep.mubr.bf16.mxu0 %v6253_v47  ;;  %v219_v47 = vld [vmem:[%s9274_s0 + $0x618] sm:$0xff] }
 0x1fc   :  { %v6317_v55 = vcombine.high %v219_v47, %v223_v48 }
 0x202   :  { %3107 = vmatmul.mubr.bf16.gmra.mrb[64].mxu0 %v6252_v28 }
 0x203   :  { %3114 = vmatprep.mubr.bf16.mxu0 %v6261_v51  ;;  %v6308_v51 = vcombine.low %v211_v37, %v215_v39  ;;  %v8579_v37 = vld [vmem:[%s9276_s2] ss:$0 sm:$0xff] }
 0x204   :  { %v2114_v39 = vadd.f32 %v8579_v37, %v8102_v26 }
 0x20a   :  { %3115 = vmatmul.mubr.bf16.gmra.mrb[68].mxu0 %v6260_v57 }
 0x20b   :  { %3122 = vmatprep.mubr.bf16.mxu0 %v6269_v59  ;;  %v227_v59 = vld [vmem:[%s9274_s0 + $0x658] sm:$0xff] }
 0x20c   :  { %v6325_v3 = vcombine.high %v227_v59, %v231_v60  ;;  %v6324_v15 = vcombine.low %v227_v59, %v231_v60 }
 0x212   :  { %3123 = vmatmul.mubr.bf16.gmra.mrb[72].mxu0 %v6268_v61 }
 0x213   :  { %3130 = vmatprep.mubr.bf16.mxu0 %v6277_v1  ;;  %v6316_v1 = vcombine.low %v219_v47, %v223_v48  ;;  %v2117_v48 = vadd.f32 %v8579_v37, %v8104_v49 }
 0x214   :  { %v8496_v62 = vpop.f32.mrb[32].mxu1 }
 0x215   :  { %v2468_v36 = vpop.f32.mrb[33].mxu1 }
 0x216   :  { %v8504_v5 = vpop.f32.mrb[34].mxu1 }
 0x217   :  { %v2471_v7 = vpop.f32.mrb[35].mxu1 }
 0x218   :  { %v239_v7 = vld [vmem:[%s9274_s0 + $0x6b8] sm:$0xff] }
 0x21a   :  { %3131 = vmatmul.mubr.bf16.gmra.mrb[76].mxu0 %v6276_v6  ;;  %v235_v6 = vld [vmem:[%s9274_s0 + $0x698] sm:$0xff] }
 0x21b   :  { %3138 = vmatprep.mubr.bf16.mxu0 %v6285_v8 }
 0x21c   :  { %v8506_v9 = vpop.f32.mrb[36].mxu1 }
 0x21d   :  { %v2476_v17 = vpop.f32.mrb[37].mxu1 }
 0x21e   :  { %v8514_v19 = vpop.f32.mrb[38].mxu1 }
 0x21f   :  { %v2479_v21 = vpop.f32.mrb[39].mxu1 }
 0x222   :  { %3139 = vmatmul.mubr.bf16.gmra.mrb[80].mxu0 %v6284_v20  ;;  %v6333_v20 = vcombine.high %v235_v6, %v239_v7 }
 0x223   :  { %3146 = vmatprep.mubr.bf16.mxu0 %v6293_v12  ;;  %v243_v12 = vld [vmem:[%s9274_s0 + $0x6d8] sm:$0xff] }
 0x224   :  { %v8516_v22 = vpop.f32.mrb[40].mxu1  ;;  %v6340_v26 = vcombine.low %v243_v12, %v247_v23 }
 0x225   :  { %v2484_v27 = vpop.f32.mrb[41].mxu1 }
 0x226   :  { %v8524_v29 = vpop.f32.mrb[42].mxu1 }
 0x227   :  { %v2487_v31 = vpop.f32.mrb[43].mxu1 }
 0x22a   :  { %3147 = vmatmul.mubr.bf16.gmra.mrb[84].mxu0 %v6292_v14  ;;  %v6332_v14 = vcombine.low %v235_v6, %v239_v7  ;;  %v2122_v6 = vadd.f32 %v8579_v37, %v8118_v54  ;;  %v2125_v54 = vadd.f32 %v8579_v37, %v8120_v32 }
 0x22b   :  { %3154 = vmatprep.mubr.bf16.mxu0 %v6301_v16  ;;  %v6341_v16 = vcombine.high %v243_v12, %v247_v23 }
 0x22c   :  { %v8526_v35 = vpop.f32.mrb[44].mxu1 }
 0x22d   :  { %v2492_v40 = vpop.f32.mrb[45].mxu1 }
 0x22e   :  { %v8534_v41 = vpop.f32.mrb[46].mxu1 }
 0x22f   :  { %v2495_v43 = vpop.f32.mrb[47].mxu1 }
 0x230   :  { %v255_v43 = vld [vmem:[%s9274_s0 + $0x738] sm:$0xff] }
 0x232   :  { %3155 = vmatmul.mubr.bf16.gmra.mrb[88].mxu0 %v6300_v18  ;;  %v251_v18 = vld [vmem:[%s9274_s0 + $0x718] sm:$0xff] }
 0x233   :  { %3162 = vmatprep.mubr.bf16.mxu0 %v6309_v44  ;;  %v6349_v60 = vcombine.high %v251_v18, %v255_v43 }
 0x234   :  { %v8536_v45 = vpop.f32.mrb[48].mxu1 }
 0x235   :  { %v2500_v50 = vpop.f32.mrb[49].mxu1 }
 0x236   :  { %v8544_v28 = vpop.f32.mrb[50].mxu1 }
 0x237   :  { %v2503_v53 = vpop.f32.mrb[51].mxu1 }
 0x23a   :  { %3163 = vmatmul.mubr.bf16.gmra.mrb[92].mxu0 %v6308_v51 }
 0x23b   :  { %3170 = vmatprep.mubr.bf16.mxu0 %v6317_v55 }
 0x23c   :  { %v8546_v57 = vpop.f32.mrb[52].mxu1 }
 0x23d   :  { %v2508_v34 = vpop.f32.mrb[53].mxu1 }
 0x23e   :  { %v8554_v61 = vpop.f32.mrb[54].mxu1 }
 0x23f   :  { %v2511_v2 = vpop.f32.mrb[55].mxu1 }
 0x242   :  { %3171 = vmatmul.mubr.bf16.gmra.mrb[96].mxu0 %v6316_v1 }
 0x243   :  { %3178 = vmatprep.mubr.bf16.mxu0 %v6325_v3 }
 0x244   :  { %v8556_v36 = vpop.f32.mrb[56].mxu1 }
 0x245   :  { %v2516_v8 = vpop.f32.mrb[57].mxu1 }
 0x246   :  { %v8564_v13 = vpop.f32.mrb[58].mxu1 }
 0x247   :  { %v2519_v17 = vpop.f32.mrb[59].mxu1 }
 0x248   :  { %v263_v17 = vld [vmem:[%s9274_s0 + $0x778] sm:$0xff] }
 0x24a   :  { %3179 = vmatmul.mubr.bf16.gmra.mrb[100].mxu0 %v6324_v15  ;;  %v259_v15 = vld [vmem:[%s9274_s0 + $0x758] sm:$0xff] }
 0x24b   :  { %3186 = vmatprep.mubr.bf16.mxu0 %v6333_v20 }
 0x24c   :  { %v8566_v21 = vpop.f32.mrb[60].mxu1 }
 0x24d   :  { %v2524_v24 = vpop.f32.mrb[61].mxu1 }
 0x24e   :  { %v8574_v27 = vpop.f32.mrb[62].mxu1 }
 0x24f   :  { %v2527_v31 = vpop.f32.mrb[63].mxu1 }
 0x252   :  { %3187 = vmatmul.mubr.bf16.gmra.mrb[104].mxu0 %v6332_v14 }
 0x253   :  { %3194 = vmatprep.mubr.bf16.mxu0 %v6341_v16  ;;  %v6348_v16 = vcombine.low %v251_v18, %v255_v43  ;;  %v267_v18 = vld [vmem:[%s9274_s0 + $0x798] sm:$0xff] }
 0x254   :  { %v8583_v40 = vpop.f32.mrb[64].mxu1  ;;  %v271_v43 = vld [vmem:[%s9274_s0 + $0x7b8] sm:$0xff] }
 0x255   :  { %v2980_v44 = vpop.f32.mrb[0].mxu0  ;;  %v2532_v47 = vpop.f32.mrb[65].mxu1 }
 0x256   :  { %v6867_v50 = vadd.f32 %v2980_v44, %v2114_v39  ;;  %v2982_v51 = vpop.f32.mrb[1].mxu0  ;;  %v8593_v53 = vpop.f32.mrb[66].mxu1 }
 0x257   :  { %v2983_v55 = vpop.f32.mrb[2].mxu0  ;;  %v2535_v59 = vpop.f32.mrb[67].mxu1 }
 0x258   :  { %v3235_v34 = vmax.f32 %v6867_v50, 0.0  ;;  %v6869_v1 = vadd.f32 %v2983_v55, %v2117_v48  ;;  %v2985_v2 = vpop.f32.mrb[3].mxu0  ;;  %v6357_v48 = vcombine.high %v259_v15, %v263_v17 }
 0x25a   :  { %v3236_v3 = vmax.f32 %v6869_v1, 0.0  ;;  %3195 = vmatmul.mubr.bf16.gmra.mrb[108].mxu0 %v6340_v26  ;;  %v3300_v49 = vsel %vm3299_vm0, %v3235_v34, -inf }
 0x25b   :  { %3202 = vmatprep.mubr.bf16.mxu0 %v6349_v60  ;;  %v2130_v60 = vadd.f32 %v8579_v37, %v8134_v63  ;;  %v2133_v63 = vadd.f32 %v8579_v37, %v8136_v4  ;;  %v2138_v4 = vadd.f32 %v8579_v37, %v8150_v11  ;;  %v2141_v11 = vadd.f32 %v8579_v37, %v8152_v10 }
 0x25c   :  { %v3301_v7 = vsel %vm3299_vm0, %v3236_v3, -inf  ;;  %v8599_v8 = vpop.f32.mrb[68].mxu1 }
 0x25d   :  { %v3302_v20 = vmax.f32 %v3300_v49, %v3301_v7  ;;  %v2988_v12 = vpop.f32.mrb[4].mxu0  ;;  %v2540_v23 = vpop.f32.mrb[69].mxu1 }
 0x25e   :  { %v6871_v24 = vadd.f32 %v2988_v12, %v2122_v6  ;;  %v2990_v14 = vpop.f32.mrb[5].mxu0  ;;  %v8609_v31 = vpop.f32.mrb[70].mxu1  ;;  %v6356_v23 = vcombine.low %v259_v15, %v263_v17 }
 0x25f   :  { %v3303_v39 = vrot.slane %v3302_v20, 4  ;;  %v2991_v44 = vpop.f32.mrb[6].mxu0  ;;  %v2543_v47 = vpop.f32.mrb[71].mxu1 }
 0x260   :  { %v3237_v50 = vmax.f32 %v6871_v24, 0.0  ;;  %v6873_v51 = vadd.f32 %v2991_v44, %v2125_v54  ;;  %v2993_v26 = vpop.f32.mrb[7].mxu0 }
 0x261   :  { %v3304_v55 = vmax.f32 %v3302_v20, %v3303_v39 }
 0x262   :  { %v3238_v59 = vmax.f32 %v6873_v51, 0.0  ;;  %3203 = vmatmul.mubr.bf16.gmra.mrb[112].mxu0 %v6348_v16  ;;  %v3309_v32 = vsel %vm3299_vm0, %v3237_v50, -inf  ;;  %v6365_v16 = vcombine.high %v267_v18, %v271_v43 }
 0x263   :  { %3210 = vmatprep.mubr.bf16.mxu0 %v6357_v48  ;;  %v3305_v2 = vrot.slane %v3304_v55, 2 }
 0x264   :  { %v3310_v34 = vsel %vm3299_vm0, %v3238_v59, -inf  ;;  %v8615_v1 = vpop.f32.mrb[72].mxu1 }
 0x265   :  { %v3311_v3 = vmax.f32 %v3309_v32, %v3310_v34  ;;  %v2996_v6 = vpop.f32.mrb[8].mxu0  ;;  %v2548_v49 = vpop.f32.mrb[73].mxu1  ;;  %v3306_v48 = vmax.f32 %v3304_v55, %v3305_v2  ;;  %v279_v55 = vld [vmem:[%s9274_s0 + $0x7f8] sm:$0xff] }
 0x266   :  { %v6875_v7 = vadd.f32 %v2996_v6, %v2130_v60  ;;  %v2998_v20 = vpop.f32.mrb[9].mxu0  ;;  %v8625_v12 = vpop.f32.mrb[74].mxu1  ;;  %v275_v60 = vld [vmem:[%s9274_s0 + $0x7d8] sm:$0xff] }
 0x267   :  { %v3312_v54 = vrot.slane %v3311_v3, 4  ;;  %v2999_v24 = vpop.f32.mrb[10].mxu0  ;;  %v2551_v14 = vpop.f32.mrb[75].mxu1  ;;  %v3307_v32 = vrot.slane %v3306_v48, 1  ;;  %v6364_v20 = vcombine.low %v267_v18, %v271_v43  ;;  %v2146_v18 = vadd.f32 %v8579_v37, %v8166_v25 }
 0x268   :  { %v3239_v39 = vmax.f32 %v6875_v7, 0.0  ;;  %v6877_v44 = vadd.f32 %v2999_v24, %v2133_v63  ;;  %v3001_v47 = vpop.f32.mrb[11].mxu0 }
 0x269   :  { %v3313_v50 = vmax.f32 %v3311_v3, %v3312_v54 }
 0x26a   :  { %v3240_v51 = vmax.f32 %v6877_v44, 0.0  ;;  %3211 = vmatmul.mubr.bf16.gmra.mrb[116].mxu0 %v6356_v23  ;;  %v3318_v59 = vsel %vm3299_vm0, %v3239_v39, -inf }
 0x26b   :  { %v3314_v26 = vrot.slane %v3313_v50, 2  ;;  %3218 = vmatprep.mubr.bf16.mxu0 %v6365_v16  ;;  %v6373_v16 = vcombine.high %v275_v60, %v279_v55 }
 0x26c   :  { %v3319_v15 = vsel %vm3299_vm0, %v3240_v51, -inf  ;;  %v8631_v17 = vpop.f32.mrb[76].mxu1 }
 0x26d   :  { %v3315_v34 = vmax.f32 %v3313_v50, %v3314_v26  ;;  %v3320_v2 = vmax.f32 %v3318_v59, %v3319_v15  ;;  %v3004_v3 = vpop.f32.mrb[12].mxu0  ;;  %v2556_v6 = vpop.f32.mrb[77].mxu1  ;;  %v3308_v50 = vmax.f32 %v3306_v48, %v3307_v32 }
 0x26e   :  { %v6879_v49 = vadd.f32 %v3004_v3, %v2138_v4  ;;  %v3006_v63 = vpop.f32.mrb[13].mxu0  ;;  %v8641_v7 = vpop.f32.mrb[78].mxu1 }
 0x26f   :  { %v3316_v23 = vrot.slane %v3315_v34, 1  ;;  %v3321_v54 = vrot.slane %v3320_v2, 4  ;;  %v3007_v24 = vpop.f32.mrb[14].mxu0  ;;  %v2559_v14 = vpop.f32.mrb[79].mxu1  ;;  %v6372_v63 = vcombine.low %v275_v60, %v279_v55 }
 0x270   :  { %v3241_v39 = vmax.f32 %v6879_v49, 0.0  ;;  %v6881_v44 = vadd.f32 %v3007_v24, %v2141_v11  ;;  %v3009_v47 = vpop.f32.mrb[15].mxu0 }
 0x271   :  { %v3317_v51 = vmax.f32 %v3315_v34, %v3316_v23  ;;  %v3322_v26 = vmax.f32 %v3320_v2, %v3321_v54  ;;  %v2149_v34 = vadd.f32 %v8579_v37, %v8168_v33 }
 0x272   :  { %v3242_v59 = vmax.f32 %v6881_v44, 0.0  ;;  %3219 = vmatmul.mubr.bf16.gmra.mrb[120].mxu0 %v6364_v20  ;;  %v3327_v43 = vsel %vm3299_vm0, %v3241_v39, -inf }
 0x273   :  { %3226 = vmatprep.mubr.bf16.mxu0 %v6373_v16  ;;  %v8644_v10 = vsel %vm3603_vm1, %v3317_v51, %v3308_v50  ;;  %v3323_v3 = vrot.slane %v3322_v26, 2  ;;  %v2154_v50 = vadd.f32 %v8579_v37, %v8182_v42  ;;  %v6440_v42 = vld [vmem:[%s9277_s3 + $0x40] sm:$0xff] }
 0x274   :  { %v3328_v4 = vsel %vm3299_vm0, %v3242_v59, -inf  ;;  %v8650_v15 = vpop.f32.mrb[80].mxu1 }
 0x275   :  { %v3329_v6 = vmax.f32 %v3327_v43, %v3328_v4  ;;  %v3012_v48 = vpop.f32.mrb[16].mxu0  ;;  %v2564_v32 = vpop.f32.mrb[81].mxu1  ;;  %v3324_v16 = vmax.f32 %v3322_v26, %v3323_v3  ;;  %v2157_v26 = vadd.f32 %v8579_v37, %v8184_v46  ;;  %v3589_v46 = vld [vmem:[%s9277_s3 + $0x8] sm:$0xff] }
 0x276   :  { %v6883_v2 = vadd.f32 %v3012_v48, %v2146_v18  ;;  %v3014_v11 = vpop.f32.mrb[17].mxu0  ;;  %v8654_v49 = vpop.f32.mrb[82].mxu1  ;;  %v6443_v32 = vld [vmem:[%s9277_s3 + $0x58] sm:$0xff] }
 0x277   :  { %v3330_v20 = vrot.slane %v3329_v6, 4  ;;  %v3015_v25 = vpop.f32.mrb[18].mxu0  ;;  %v2567_v23 = vpop.f32.mrb[83].mxu1  ;;  %v3325_v60 = vrot.slane %v3324_v16, 1 }
 0x278   :  { %v3243_v54 = vmax.f32 %v6883_v2, 0.0  ;;  %v6885_v24 = vadd.f32 %v3015_v25, %v2149_v34  ;;  %v3017_v14 = vpop.f32.mrb[19].mxu0 }
 0x279   :  { %v3331_v39 = vmax.f32 %v3329_v6, %v3330_v20  ;;  %v3592_v20 = vld [vmem:[%s9277_s3 + $0x20] sm:$0xff] }
 0x27a   :  { %v3244_v44 = vmax.f32 %v6885_v24, 0.0  ;;  %3227 = vmatmul.mubr.bf16.gmra.mrb[124].mxu0 %v6372_v63  ;;  %v3336_v33 = vsel %vm3299_vm0, %v3243_v54, -inf  ;;  %v3326_v24 = vmax.f32 %v3324_v16, %v3325_v60 }
 0x27b   :  { %v3332_v47 = vrot.slane %v3331_v39, 2 }
 0x27c   :  { %v3337_v51 = vsel %vm3299_vm0, %v3244_v44, -inf  ;;  %v8660_v59 = vpop.f32.mrb[84].mxu1  ;;  %v6727_v44 = vpack.c.bf16 %v6443_v32, %v6440_v42 }
 0x27d   :  { %v3333_v55 = vmax.f32 %v3331_v39, %v3332_v47  ;;  %v3338_v18 = vmax.f32 %v3336_v33, %v3337_v51  ;;  %v3020_v43 = vpop.f32.mrb[20].mxu0  ;;  %v2572_v4 = vpop.f32.mrb[85].mxu1  ;;  %v3588_v33 = vld [vmem:[%s9277_s3] sm:$0xff]  ;;  %v3591_v51 = vld [vmem:[%s9277_s3 + $0x18] sm:$0xff] }
 0x27e   :  { %v6887_v3 = vadd.f32 %v3020_v43, %v2154_v50  ;;  %v3022_v6 = vpop.f32.mrb[21].mxu0  ;;  %v8664_v48 = vpop.f32.mrb[86].mxu1  ;;  %v6729_v50 = vpack.c.bf16 %v3592_v20, %v3589_v46  ;;  %v2162_v4 = vadd.f32 %v8579_v37, %v8198_v30  ;;  %v6731_v42 = vpack.c.bf16 %v3591_v51, %v3588_v33 }
 0x27f   :  { %v3334_v34 = vrot.slane %v3333_v55, 1  ;;  %v3339_v2 = vrot.slane %v3338_v18, 4  ;;  %v3023_v11 = vpop.f32.mrb[22].mxu0  ;;  %v2575_v63 = vpop.f32.mrb[87].mxu1  ;;  %v2165_v30 = vadd.f32 %v8579_v37, %v8200_v58  ;;  %v6449_v58 = vld [vmem:[%s9277_s3 + $0x68] sm:$0xff] }
 0x280   :  { %v3245_v25 = vmax.f32 %v6887_v3, 0.0  ;;  %v6889_v23 = vadd.f32 %v3023_v11, %v2157_v26  ;;  %v3025_v54 = vpop.f32.mrb[23].mxu0  ;;  %v3590_v11 = vld [vmem:[%s9277_s3 + $0x10] sm:$0xff]  ;;  %v3593_v63 = vld [vmem:[%s9277_s3 + $0x28] sm:$0xff] }
 0x281   :  { %v3335_v14 = vmax.f32 %v3333_v55, %v3334_v34  ;;  %v3340_v39 = vmax.f32 %v3338_v18, %v3339_v2 }
 0x282   :  { %v3246_v47 = vmax.f32 %v6889_v23, 0.0  ;;  %v3345_v16 = vsel %vm3299_vm0, %v3245_v25, -inf  ;;  %v6452_v23 = vld [vmem:[%s9277_s3 + $0x80] sm:$0xff] }
 0x283   :  { %v3604_v43 = vsel %vm3603_vm1, %v3335_v14, %v3326_v24  ;;  %v3341_v18 = vrot.slane %v3340_v39, 2  ;;  %v6736_v51 = vpack.c.bf16 %v6452_v23, %v6449_v58 }
 0x284   :  { %v3346_v60 = vsel %vm3299_vm0, %v3246_v47, -inf  ;;  %6444 = vmatmul.mubr.msk.f32.vlgmr.msra.gmra.mrb[128].mxu1 %vm3299_vm0, %v3604_v43  ;;  %v8690_v55 = vpop.f32.mrb[88].mxu1 }
 0x285   :  { %v3347_v26 = vmax.f32 %v3345_v16, %v3346_v60  ;;  %v3028_v3 = vpop.f32.mrb[24].mxu0  ;;  %6728 = vmatpush3.bf16.msra.mxu1 %v6727_v44  ;;  %v2580_v6 = vpop.f32.mrb[89].mxu1  ;;  %6614 = vmatprep.mubr.msk.f32.mxu1 %vm7377_vm2, %v7375_v52  ;;  %v3342_v44 = vmax.f32 %v3340_v39, %v3341_v18  ;;  %v6451_v16 = vld [vmem:[%s9277_s3 + $0x78] sm:$0xff]  ;;  %v2170_v39 = vadd.f32 %v8579_v37, %v8214_v0  ;;  %v6450_v0 = vld [vmem:[%s9277_s3 + $0x70] sm:$0xff] }
 0x286   :  { %v6891_v32 = vadd.f32 %v3028_v3, %v2162_v4  ;;  %v3030_v34 = vpop.f32.mrb[25].mxu0  ;;  %v8696_v2 = vpop.f32.mrb[90].mxu1  ;;  %6730 = vmatprep.subr.bf16.mxu1 %v6729_v50  ;;  %v6734_v50 = vpack.c.bf16 %v3593_v63, %v3590_v11  ;;  %v6448_v4 = vld [vmem:[%s9277_s3 + $0x60] sm:$0xff]  ;;  %v6453_v11 = vld [vmem:[%s9277_s3 + $0x88] sm:$0xff]  ;;  %v2173_v63 = vadd.f32 %v8579_v37, %v8216_v38 }
 0x287   :  { %v3348_v46 = vrot.slane %v3347_v26, 4  ;;  %v3031_v20 = vpop.f32.mrb[26].mxu0  ;;  %v2583_v25 = vpop.f32.mrb[91].mxu1  ;;  %v3343_v3 = vrot.slane %v3342_v44, 1  ;;  %v6738_v34 = vpack.c.bf16 %v6451_v16, %v6448_v4  ;;  %v6741_v4 = vpack.c.bf16 %v6453_v11, %v6450_v0 }
 0x288   :  { %v3247_v54 = vmax.f32 %v6891_v32, 0.0  ;;  %v6893_v24 = vadd.f32 %v3031_v20, %v2165_v30  ;;  %v3033_v14 = vpop.f32.mrb[27].mxu0  ;;  %6615 = vmatmul.mubr.msk.f32.vlgmr.msra.gmra.mrb[130].mxu1 %vm3299_vm0, %v3604_v43 }
 0x289   :  { %v3349_v47 = vmax.f32 %v3347_v26, %v3348_v46  ;;  %6732 = vmatpush1.bf16.msra.mxu1 %v6731_v42  ;;  %3817 = vmatprep.mubr.f32.mxu1 %v7375_v52  ;;  %v6457_v14 = vld [vmem:[%s9277_s3 + $0x98] sm:$0xff] }
 0x28a   :  { %v3248_v33 = vmax.f32 %v6893_v24, 0.0  ;;  %6733 = vmatprep.subr.bf16.mxu1 %v7376_v56  ;;  %v3354_v43 = vsel %vm3299_vm0, %v3247_v54, -inf }
 0x28b   :  { %v3350_v60 = vrot.slane %v3349_v47, 2 }
 0x28c   :  { %v3355_v18 = vsel %vm3299_vm0, %v3248_v33, -inf  ;;  %6446 = vmatmul.mubr.msk.f32.vlgmr.msra.gmra.mrb[128].mxu1 %vm3299_vm0, %v8644_v10  ;;  %v8725_v26 = vpop.f32.mrb[92].mxu1 }
 0x28d   :  { %v3351_v6 = vmax.f32 %v3349_v47, %v3350_v60  ;;  %v3356_v42 = vmax.f32 %v3354_v43, %v3355_v18  ;;  %v3036_v30 = vpop.f32.mrb[28].mxu0  ;;  %6735 = vmatpush3.bf16.msra.mxu1 %v6734_v50  ;;  %v2588_v32 = vpop.f32.mrb[93].mxu1  ;;  %6621 = vmatprep.mubr.msk.f32.mxu1 %vm7377_vm2, %v7375_v52  ;;  %v6460_v47 = vld [vmem:[%s9277_s3 + $0xb0] sm:$0xff] }
 0x28e   :  { %v6895_v46 = vadd.f32 %v3036_v30, %v2170_v39  ;;  %v3038_v20 = vpop.f32.mrb[29].mxu0  ;;  %v8737_v25 = vpop.f32.mrb[94].mxu1  ;;  %6737 = vmatprep.subr.bf16.mxu1 %v6736_v51  ;;  %v3344_v51 = vmax.f32 %v3342_v44, %v3343_v3  ;;  %v6743_v43 = vpack.c.bf16 %v6460_v47, %v6457_v14  ;;  %v6456_v18 = vld [vmem:[%s9277_s3 + $0x90] sm:$0xff]  ;;  %v6459_v30 = vld [vmem:[%s9277_s3 + $0xa8] sm:$0xff]  ;;  %v6898_v44 = vadd.f32 %v8579_v37, %v8496_v62 }
 0x28f   :  { %v3352_v58 = vrot.slane %v3351_v6, 1  ;;  %v3357_v23 = vrot.slane %v3356_v42, 4  ;;  %v3039_v54 = vpop.f32.mrb[30].mxu0  ;;  %v2591_v24 = vpop.f32.mrb[95].mxu1  ;;  %v6900_v62 = vadd.f32 %v8579_v37, %v8504_v5 }
 0x290   :  { %v3249_v50 = vmax.f32 %v6895_v46, 0.0  ;;  %v6897_v33 = vadd.f32 %v3039_v54, %v2173_v63  ;;  %v3041_v38 = vpop.f32.mrb[31].mxu0  ;;  %6622 = vmatmul.mubr.msk.f32.vlgmr.msra.gmra.mrb[132].mxu1 %vm3299_vm0, %v8644_v10  ;;  %v6745_v63 = vpack.c.bf16 %v6459_v30, %v6456_v18 }
 0x291   :  { %v3353_v16 = vmax.f32 %v3351_v6, %v3352_v58  ;;  %v3358_v60 = vmax.f32 %v3356_v42, %v3357_v23  ;;  %6739 = vmatpush1.bf16.msra.mxu1 %v6738_v34  ;;  %3970 = vmatprep.mubr.f32.mxu1 %v7375_v52 }
 0x292   :  { %v3250_v39 = vmax.f32 %v6897_v33, 0.0  ;;  %6740 = vmatprep.subr.bf16.mxu1 %v7376_v56  ;;  %v3363_v3 = vsel %vm3299_vm0, %v3249_v50, -inf }
 0x293   :  { %v3903_v10 = vsel %vm3603_vm1, %v3353_v16, %v3344_v51  ;;  %v3359_v32 = vrot.slane %v3358_v60, 2  ;;  %v6902_v51 = vadd.f32 %v8579_v37, %v8506_v9  ;;  %v6458_v9 = vld [vmem:[%s9277_s3 + $0xa0] sm:$0xff] }
 0x294   :  { %v3364_v6 = vsel %vm3299_vm0, %v3250_v39, -inf  ;;  %6454 = vmatmul.mubr.msk.f32.vlgmr.msra.gmra.mrb[128].mxu1 %vm3299_vm0, %v3903_v10  ;;  %v8761_v42 = vpop.f32.mrb[96].mxu1 }
 0x295   :  { %v3365_v34 = vmax.f32 %v3363_v3, %v3364_v6  ;;  %v3044_v0 = vpop.f32.mrb[32].mxu0  ;;  %6742 = vmatpush3.bf16.msra.mxu1 %v6741_v4  ;;  %v2596_v11 = vpop.f32.mrb[97].mxu1  ;;  %6628 = vmatprep.mubr.msk.f32.mxu1 %vm7377_vm2, %v7375_v52  ;;  %v3360_v33 = vmax.f32 %v3358_v60, %v3359_v32  ;;  %v6904_v3 = vadd.f32 %v8579_v37, %v8514_v19  ;;  %v6465_v19 = vld [vmem:[%s9277_s3 + $0xc8] sm:$0xff] }
 0x296   :  { %v6899_v46 = vadd.f32 %v6898_v44, %v3044_v0  ;;  %v3046_v20 = vpop.f32.mrb[33].mxu0  ;;  %v8767_v58 = vpop.f32.mrb[98].mxu1  ;;  %6744 = vmatprep.subr.bf16.mxu1 %v6743_v43  ;;  %v6461_v0 = vld [vmem:[%s9277_s3 + $0xb8] sm:$0xff] }
 0x297   :  { %v3366_v23 = vrot.slane %v3365_v34, 4  ;;  %v3047_v54 = vpop.f32.mrb[34].mxu0  ;;  %v2599_v24 = vpop.f32.mrb[99].mxu1  ;;  %v3361_v18 = vrot.slane %v3360_v33, 1  ;;  %v6468_v20 = vld [vmem:[%s9277_s3 + $0xe0] sm:$0xff] }
 0x298   :  { %v3251_v14 = vmax.f32 %v6899_v46, 0.0  ;;  %v6901_v47 = vadd.f32 %v6900_v62, %v3047_v54  ;;  %v3049_v50 = vpop.f32.mrb[35].mxu0  ;;  %6629 = vmatmul.mubr.msk.f32.vlgmr.msra.gmra.mrb[134].mxu1 %vm3299_vm0, %v3903_v10 }
 0x299   :  { %v3367_v38 = vmax.f32 %v3365_v34, %v3366_v23  ;;  %6746 = vmatpush1.bf16.msra.mxu1 %v6745_v63  ;;  %4126 = vmatprep.mubr.f32.mxu1 %v7375_v52 }
 0x29a   :  { %v3252_v4 = vmax.f32 %v6901_v47, 0.0  ;;  %6747 = vmatprep.subr.bf16.mxu1 %v7376_v56  ;;  %v3372_v16 = vsel %vm3299_vm0, %v3251_v14, -inf  ;;  %v3362_v14 = vmax.f32 %v3360_v33, %v3361_v18 }
 0x29b   :  { %v3368_v5 = vrot.slane %v3367_v38, 2 }
 0x29c   :  { %v3373_v39 = vsel %vm3299_vm0, %v3252_v4, -inf  ;;  %v8776_v43 = vpop.f32.mrb[100].mxu1 }
 0x29d   :  { %v3369_v30 = vmax.f32 %v3367_v38, %v3368_v5  ;;  %v3374_v60 = vmax.f32 %v3372_v16, %v3373_v39  ;;  %v3052_v10 = vpop.f32.mrb[36].mxu0  ;;  %v2604_v44 = vpop.f32.mrb[101].mxu1  ;;  %v6748_v38 = vpack.c.bf16 %v6461_v0, %v6458_v9  ;;  %v6750_v5 = vpack.c.bf16 %v6468_v20, %v6465_v19  ;;  %v6467_v16 = vld [vmem:[%s9277_s3 + $0xd8] sm:$0xff] }
 0x29e   :  { %v6903_v6 = vadd.f32 %v6902_v51, %v3052_v10  ;;  %v3054_v32 = vpop.f32.mrb[37].mxu0  ;;  %v8780_v34 = vpop.f32.mrb[102].mxu1  ;;  %v6464_v51 = vld [vmem:[%s9277_s3 + $0xc0] sm:$0xff]  ;;  %v6906_v10 = vadd.f32 %v8579_v37, %v8516_v22  ;;  %v6908_v22 = vadd.f32 %v8579_v37, %v8524_v29 }
 0x29f   :  { %v3370_v11 = vrot.slane %v3369_v30, 1  ;;  %v3375_v63 = vrot.slane %v3374_v60, 4  ;;  %v3055_v62 = vpop.f32.mrb[38].mxu0  ;;  %v2607_v46 = vpop.f32.mrb[103].mxu1  ;;  %v6752_v32 = vpack.c.bf16 %v6467_v16, %v6464_v51 }
 0x2a0   :  { %v3253_v23 = vmax.f32 %v6903_v6, 0.0  ;;  %v6905_v54 = vadd.f32 %v6904_v3, %v3055_v62  ;;  %v3057_v24 = vpop.f32.mrb[39].mxu0 }
 0x2a1   :  { %v3371_v47 = vmax.f32 %v3369_v30, %v3370_v11  ;;  %v3376_v50 = vmax.f32 %v3374_v60, %v3375_v63 }
 0x2a2   :  { %v3254_v4 = vmax.f32 %v6905_v54, 0.0  ;;  %v3381_v33 = vsel %vm3299_vm0, %v3253_v23, -inf }
 0x2a3   :  { %v4059_v39 = vsel %vm3603_vm1, %v3371_v47, %v3362_v14  ;;  %v3377_v60 = vrot.slane %v3376_v50, 2  ;;  %v6910_v47 = vadd.f32 %v8579_v37, %v8526_v35  ;;  %v6466_v35 = vld [vmem:[%s9277_s3 + $0xd0] sm:$0xff] }
 0x2a4   :  { %v3382_v18 = vsel %vm3299_vm0, %v3254_v4, -inf  ;;  %6462 = vmatmul.mubr.msk.f32.vlgmr.msra.gmra.mrb[128].mxu1 %vm3299_vm0, %v4059_v39  ;;  %v8806_v30 = vpop.f32.mrb[104].mxu1 }
 0x2a5   :  { %v3383_v44 = vmax.f32 %v3381_v33, %v3382_v18  ;;  %v3060_v3 = vpop.f32.mrb[40].mxu0  ;;  %6749 = vmatpush3.bf16.msra.mxu1 %v6748_v38  ;;  %v2612_v6 = vpop.f32.mrb[105].mxu1  ;;  %6635 = vmatprep.mubr.msk.f32.mxu1 %vm7377_vm2, %v7375_v52  ;;  %v3378_v54 = vmax.f32 %v3376_v50, %v3377_v60  ;;  %v6912_v33 = vadd.f32 %v8579_v37, %v8534_v41  ;;  %v6473_v41 = vld [vmem:[%s9277_s3 + $0xf8] sm:$0xff] }
 0x2a6   :  { %v6907_v9 = vadd.f32 %v6906_v10, %v3060_v3  ;;  %v3062_v0 = vpop.f32.mrb[41].mxu0  ;;  %v8812_v11 = vpop.f32.mrb[106].mxu1  ;;  %6751 = vmatprep.subr.bf16.mxu1 %v6750_v5  ;;  %v6469_v3 = vld [vmem:[%s9277_s3 + $0xe8] sm:$0xff] }
 0x2a7   :  { %v3384_v63 = vrot.slane %v3383_v44, 4  ;;  %v3063_v62 = vpop.f32.mrb[42].mxu0  ;;  %v2615_v46 = vpop.f32.mrb[107].mxu1  ;;  %v3379_v51 = vrot.slane %v3378_v54, 1  ;;  %v6476_v0 = vld [vmem:[%s9277_s3 + $0x110] sm:$0xff] }
 0x2a8   :  { %v3255_v19 = vmax.f32 %v6907_v9, 0.0  ;;  %v6909_v20 = vadd.f32 %v6908_v22, %v3063_v62  ;;  %v3065_v23 = vpop.f32.mrb[43].mxu0  ;;  %6636 = vmatmul.mubr.msk.f32.vlgmr.msra.gmra.mrb[136].mxu1 %vm3299_vm0, %v4059_v39 }
 0x2a9   :  { %v3385_v24 = vmax.f32 %v3383_v44, %v3384_v63  ;;  %6753 = vmatpush1.bf16.msra.mxu1 %v6752_v32  ;;  %4282 = vmatprep.mubr.f32.mxu1 %v7375_v52 }
 0x2aa   :  { %v3256_v14 = vmax.f32 %v6909_v20, 0.0  ;;  %6754 = vmatprep.subr.bf16.mxu1 %v7376_v56  ;;  %v3390_v38 = vsel %vm3299_vm0, %v3255_v19, -inf  ;;  %v3380_v19 = vmax.f32 %v3378_v54, %v3379_v51 }
 0x2ab   :  { %v3386_v29 = vrot.slane %v3385_v24, 2 }
 0x2ac   :  { %v3391_v4 = vsel %vm3299_vm0, %v3256_v14, -inf  ;;  %v8821_v5 = vpop.f32.mrb[108].mxu1 }
 0x2ad   :  { %v3387_v16 = vmax.f32 %v3385_v24, %v3386_v29  ;;  %v3392_v50 = vmax.f32 %v3390_v38, %v3391_v4  ;;  %v3068_v39 = vpop.f32.mrb[44].mxu0  ;;  %v2620_v10 = vpop.f32.mrb[109].mxu1  ;;  %v6755_v24 = vpack.c.bf16 %v6469_v3, %v6466_v35  ;;  %v6757_v29 = vpack.c.bf16 %v6476_v0, %v6473_v41  ;;  %v6475_v38 = vld [vmem:[%s9277_s3 + $0x108] sm:$0xff] }
 0x2ae   :  { %v6911_v18 = vadd.f32 %v6910_v47, %v3068_v39  ;;  %v3070_v60 = vpop.f32.mrb[45].mxu0  ;;  %v8825_v44 = vpop.f32.mrb[110].mxu1  ;;  %v6472_v47 = vld [vmem:[%s9277_s3 + $0xf0] sm:$0xff]  ;;  %v6914_v39 = vadd.f32 %v8579_v37, %v8536_v45  ;;  %v6916_v45 = vadd.f32 %v8579_v37, %v8544_v28 }
 0x2af   :  { %v3388_v6 = vrot.slane %v3387_v16, 1  ;;  %v3393_v32 = vrot.slane %v3392_v50, 4  ;;  %v3071_v22 = vpop.f32.mrb[46].mxu0  ;;  %v2623_v9 = vpop.f32.mrb[111].mxu1  ;;  %v6759_v60 = vpack.c.bf16 %v6475_v38, %v6472_v47 }
 0x2b0   :  { %v3257_v63 = vmax.f32 %v6911_v18, 0.0  ;;  %v6913_v62 = vadd.f32 %v6912_v33, %v3071_v22  ;;  %v3073_v46 = vpop.f32.mrb[47].mxu0 }
 0x2b1   :  { %v3389_v20 = vmax.f32 %v3387_v16, %v3388_v6  ;;  %v3394_v23 = vmax.f32 %v3392_v50, %v3393_v32 }
 0x2b2   :  { %v3258_v14 = vmax.f32 %v6913_v62, 0.0  ;;  %v3399_v54 = vsel %vm3299_vm0, %v3257_v63, -inf }
 0x2b3   :  { %v4215_v4 = vsel %vm3603_vm1, %v3389_v20, %v3380_v19  ;;  %v3395_v50 = vrot.slane %v3394_v23, 2  ;;  %v6918_v20 = vadd.f32 %v8579_v37, %v8546_v57  ;;  %v6474_v57 = vld [vmem:[%s9277_s3 + $0x100] sm:$0xff] }
 0x2b4   :  { %v3400_v51 = vsel %vm3299_vm0, %v3258_v14, -inf  ;;  %6470 = vmatmul.mubr.msk.f32.vlgmr.msra.gmra.mrb[128].mxu1 %vm3299_vm0, %v4215_v4  ;;  %v8851_v16 = vpop.f32.mrb[112].mxu1 }
 0x2b5   :  { %v3401_v10 = vmax.f32 %v3399_v54, %v3400_v51  ;;  %v3076_v33 = vpop.f32.mrb[48].mxu0  ;;  %6756 = vmatpush3.bf16.msra.mxu1 %v6755_v24  ;;  %v2628_v18 = vpop.f32.mrb[113].mxu1  ;;  %6642 = vmatprep.mubr.msk.f32.mxu1 %vm7377_vm2, %v7375_v52  ;;  %v3396_v62 = vmax.f32 %v3394_v23, %v3395_v50  ;;  %v6920_v54 = vadd.f32 %v8579_v37, %v8554_v61  ;;  %v6481_v61 = vld [vmem:[%s9277_s3 + $0x128] sm:$0xff] }
 0x2b6   :  { %v6915_v35 = vadd.f32 %v6914_v39, %v3076_v33  ;;  %v3078_v3 = vpop.f32.mrb[49].mxu0  ;;  %v8857_v6 = vpop.f32.mrb[114].mxu1  ;;  %6758 = vmatprep.subr.bf16.mxu1 %v6757_v29  ;;  %v6477_v33 = vld [vmem:[%s9277_s3 + $0x118] sm:$0xff] }
 0x2b7   :  { %v3402_v32 = vrot.slane %v3401_v10, 4  ;;  %v3079_v22 = vpop.f32.mrb[50].mxu0  ;;  %v2631_v9 = vpop.f32.mrb[115].mxu1  ;;  %v3397_v47 = vrot.slane %v3396_v62, 1  ;;  %v6484_v3 = vld [vmem:[%s9277_s3 + $0x140] sm:$0xff] }
 0x2b8   :  { %v3259_v41 = vmax.f32 %v6915_v35, 0.0  ;;  %v6917_v0 = vadd.f32 %v6916_v45, %v3079_v22  ;;  %v3081_v63 = vpop.f32.mrb[51].mxu0  ;;  %6643 = vmatmul.mubr.msk.f32.vlgmr.msra.gmra.mrb[138].mxu1 %vm3299_vm0, %v4215_v4 }
 0x2b9   :  { %v3403_v46 = vmax.f32 %v3401_v10, %v3402_v32  ;;  %6760 = vmatpush1.bf16.msra.mxu1 %v6759_v60  ;;  %4438 = vmatprep.mubr.f32.mxu1 %v7375_v52 }
 0x2ba   :  { %v3260_v19 = vmax.f32 %v6917_v0, 0.0  ;;  %6761 = vmatprep.subr.bf16.mxu1 %v7376_v56  ;;  %v3408_v24 = vsel %vm3299_vm0, %v3259_v41, -inf  ;;  %v3398_v41 = vmax.f32 %v3396_v62, %v3397_v47 }
 0x2bb   :  { %v3404_v28 = vrot.slane %v3403_v46, 2 }
 0x2bc   :  { %v3409_v14 = vsel %vm3299_vm0, %v3260_v19, -inf  ;;  %v8866_v29 = vpop.f32.mrb[116].mxu1 }
 0x2bd   :  { %v3405_v38 = vmax.f32 %v3403_v46, %v3404_v28  ;;  %v3410_v23 = vmax.f32 %v3408_v24, %v3409_v14  ;;  %v3084_v4 = vpop.f32.mrb[52].mxu0  ;;  %v2636_v39 = vpop.f32.mrb[117].mxu1  ;;  %v6762_v46 = vpack.c.bf16 %v6477_v33, %v6474_v57  ;;  %v6764_v28 = vpack.c.bf16 %v6484_v3, %v6481_v61  ;;  %v6483_v24 = vld [vmem:[%s9277_s3 + $0x138] sm:$0xff] }
 0x2be   :  { %v6919_v51 = vadd.f32 %v6918_v20, %v3084_v4  ;;  %v3086_v50 = vpop.f32.mrb[53].mxu0  ;;  %v8870_v10 = vpop.f32.mrb[118].mxu1  ;;  %v6480_v20 = vld [vmem:[%s9277_s3 + $0x120] sm:$0xff]  ;;  %v6922_v4 = vadd.f32 %v8579_v37, %v8556_v36  ;;  %v6924_v36 = vadd.f32 %v8579_v37, %v8564_v13 }
 0x2bf   :  { %v3406_v18 = vrot.slane %v3405_v38, 1  ;;  %v3411_v60 = vrot.slane %v3410_v23, 4  ;;  %v3087_v45 = vpop.f32.mrb[54].mxu0  ;;  %v2639_v35 = vpop.f32.mrb[119].mxu1  ;;  %v6766_v50 = vpack.c.bf16 %v6483_v24, %v6480_v20 }
 0x2c0   :  { %v3261_v32 = vmax.f32 %v6919_v51, 0.0  ;;  %v6921_v22 = vadd.f32 %v6920_v54, %v3087_v45  ;;  %v3089_v9 = vpop.f32.mrb[55].mxu0 }
 0x2c1   :  { %v3407_v0 = vmax.f32 %v3405_v38, %v3406_v18  ;;  %v3412_v63 = vmax.f32 %v3410_v23, %v3411_v60 }
 0x2c2   :  { %v3262_v19 = vmax.f32 %v6921_v22, 0.0  ;;  %v3417_v62 = vsel %vm3299_vm0, %v3261_v32, -inf }
 0x2c3   :  { %v4371_v14 = vsel %vm3603_vm1, %v3407_v0, %v3398_v41  ;;  %v3413_v23 = vrot.slane %v3412_v63, 2  ;;  %v6926_v0 = vadd.f32 %v8579_v37, %v8566_v21  ;;  %v6482_v21 = vld [vmem:[%s9277_s3 + $0x130] sm:$0xff] }
 0x2c4   :  { %v3418_v47 = vsel %vm3299_vm0, %v3262_v19, -inf  ;;  %6478 = vmatmul.mubr.msk.f32.vlgmr.msra.gmra.mrb[128].mxu1 %vm3299_vm0, %v4371_v14  ;;  %v8896_v38 = vpop.f32.mrb[120].mxu1 }
 0x2c5   :  { %v3419_v39 = vmax.f32 %v3417_v62, %v3418_v47  ;;  %v3092_v54 = vpop.f32.mrb[56].mxu0  ;;  %6763 = vmatpush3.bf16.msra.mxu1 %v6762_v46  ;;  %v2644_v51 = vpop.f32.mrb[121].mxu1  ;;  %6649 = vmatprep.mubr.msk.f32.mxu1 %vm7377_vm2, %v7375_v52  ;;  %v3414_v22 = vmax.f32 %v3412_v63, %v3413_v23  ;;  %v6928_v62 = vadd.f32 %v8579_v37, %v8574_v27  ;;  %v6489_v27 = vld [vmem:[%s9277_s3 + $0x158] sm:$0xff] }
 0x2c6   :  { %v6923_v57 = vadd.f32 %v6922_v4, %v3092_v54  ;;  %v3094_v33 = vpop.f32.mrb[57].mxu0  ;;  %v8902_v18 = vpop.f32.mrb[122].mxu1  ;;  %6765 = vmatprep.subr.bf16.mxu1 %v6764_v28  ;;  %v6485_v54 = vld [vmem:[%s9277_s3 + $0x148] sm:$0xff] }
 0x2c7   :  { %v3420_v60 = vrot.slane %v3419_v39, 4  ;;  %v3095_v45 = vpop.f32.mrb[58].mxu0  ;;  %v2647_v35 = vpop.f32.mrb[123].mxu1  ;;  %v3415_v20 = vrot.slane %v3414_v22, 1  ;;  %v6492_v33 = vld [vmem:[%s9277_s3 + $0x170] sm:$0xff] }
 0x2c8   :  { %v3263_v61 = vmax.f32 %v6923_v57, 0.0  ;;  %v6925_v3 = vadd.f32 %v6924_v36, %v3095_v45  ;;  %v3097_v32 = vpop.f32.mrb[59].mxu0  ;;  %6650 = vmatmul.mubr.msk.f32.vlgmr.msra.gmra.mrb[140].mxu1 %vm3299_vm0, %v4371_v14 }
 0x2c9   :  { %v3421_v9 = vmax.f32 %v3419_v39, %v3420_v60  ;;  %6767 = vmatpush1.bf16.msra.mxu1 %v6766_v50  ;;  %4594 = vmatprep.mubr.f32.mxu1 %v7375_v52 }
 0x2ca   :  { %v3264_v41 = vmax.f32 %v6925_v3, 0.0  ;;  %6768 = vmatprep.subr.bf16.mxu1 %v7376_v56  ;;  %v3426_v46 = vsel %vm3299_vm0, %v3263_v61, -inf  ;;  %v3416_v61 = vmax.f32 %v3414_v22, %v3415_v20 }
 0x2cb   :  { %v3422_v13 = vrot.slane %v3421_v9, 2 }
 0x2cc   :  { %v3427_v19 = vsel %vm3299_vm0, %v3264_v41, -inf  ;;  %v8911_v28 = vpop.f32.mrb[124].mxu1 }
 0x2cd   :  { %v3423_v24 = vmax.f32 %v3421_v9, %v3422_v13  ;;  %v3428_v63 = vmax.f32 %v3426_v46, %v3427_v19  ;;  %v3100_v14 = vpop.f32.mrb[60].mxu0  ;;  %v2652_v4 = vpop.f32.mrb[125].mxu1  ;;  %v6769_v9 = vpack.c.bf16 %v6485_v54, %v6482_v21  ;;  %v6771_v13 = vpack.c.bf16 %v6492_v33, %v6489_v27  ;;  %v6491_v46 = vld [vmem:[%s9277_s3 + $0x168] sm:$0xff] }
 0x2ce   :  { %v6927_v47 = vadd.f32 %v6926_v0, %v3100_v14  ;;  %v3102_v23 = vpop.f32.mrb[61].mxu0  ;;  %v8915_v39 = vpop.f32.mrb[126].mxu1  ;;  %v6488_v0 = vld [vmem:[%s9277_s3 + $0x150] sm:$0xff]  ;;  %v6930_v14 = vadd.f32 %v8579_v37, %v8583_v40 }
 0x2cf   :  { %v3424_v51 = vrot.slane %v3423_v24, 1  ;;  %v3429_v50 = vrot.slane %v3428_v63, 4  ;;  %v3103_v36 = vpop.f32.mrb[62].mxu0  ;;  %v2655_v57 = vpop.f32.mrb[127].mxu1 }
 0x2d0   :  { %v3265_v60 = vmax.f32 %v6927_v47, 0.0  ;;  %v6929_v45 = vadd.f32 %v6928_v62, %v3103_v36  ;;  %v3105_v35 = vpop.f32.mrb[63].mxu0  ;;  %v6773_v62 = vpack.c.bf16 %v6491_v46, %v6488_v0  ;;  %v8946_v47 = vld [vmem:[%s9276_s2] ss:$0 sm:$0xff] }
 0x2d1   :  { %v3425_v3 = vmax.f32 %v3423_v24, %v3424_v51  ;;  %v3430_v32 = vmax.f32 %v3428_v63, %v3429_v50  ;;  %v6932_v37 = vadd.f32 %v8946_v47, %v8593_v53  ;;  %v6934_v53 = vadd.f32 %v8946_v47, %v8599_v8  ;;  %v6490_v46 = vld [vmem:[%s9277_s3 + $0x160] sm:$0xff]  ;;  %v6493_v8 = vld [vmem:[%s9277_s3 + $0x178] sm:$0xff] }
 0x2d2   :  { %v3266_v41 = vmax.f32 %v6929_v45, 0.0  ;;  %v3435_v22 = vsel %vm3299_vm0, %v3265_v60, -inf }
 0x2d3   :  { %v4527_v19 = vsel %vm3603_vm1, %v3425_v3, %v3416_v61  ;;  %v3431_v24 = vrot.slane %v3430_v32, 2 }
 0x2d4   :  { %v3436_v20 = vsel %vm3299_vm0, %v3266_v41, -inf  ;;  %6486 = vmatmul.mubr.msk.f32.vlgmr.msra.gmra.mrb[128].mxu1 %vm3299_vm0, %v4527_v19 }
 0x2d5   :  { %v3437_v63 = vmax.f32 %v3435_v22, %v3436_v20  ;;  %v3108_v4 = vpop.f32.mrb[64].mxu0  ;;  %6770 = vmatpush3.bf16.msra.mxu1 %v6769_v9  ;;  %6656 = vmatprep.mubr.msk.f32.mxu1 %vm7377_vm2, %v7375_v52  ;;  %v3432_v57 = vmax.f32 %v3430_v32, %v3431_v24  ;;  %v6936_v32 = vadd.f32 %v8946_v47, %v8609_v31  ;;  %v6497_v20 = vld [vmem:[%s9277_s3 + $0x188] sm:$0xff]  ;;  %v6500_v31 = vld [vmem:[%s9277_s3 + $0x1a0] sm:$0xff] }
 0x2d6   :  { %v6931_v40 = vadd.f32 %v6930_v14, %v3108_v4  ;;  %v3110_v23 = vpop.f32.mrb[65].mxu0  ;;  %6772 = vmatprep.subr.bf16.mxu1 %v6771_v13 }
 0x2d7   :  { %v3438_v21 = vrot.slane %v3437_v63, 4  ;;  %v3111_v54 = vpop.f32.mrb[66].mxu0  ;;  %v3433_v61 = vrot.slane %v3432_v57, 1  ;;  %v6776_v23 = vpack.c.bf16 %v6493_v8, %v6490_v46 }
 0x2d8   :  { %v3267_v51 = vmax.f32 %v6931_v40, 0.0  ;;  %v6933_v50 = vadd.f32 %v6932_v37, %v3111_v54  ;;  %v3113_v36 = vpop.f32.mrb[67].mxu0  ;;  %6657 = vmatmul.mubr.msk.f32.vlgmr.msra.gmra.mrb[142].mxu1 %vm3299_vm0, %v4527_v19  ;;  %v6778_v54 = vpack.c.bf16 %v6500_v31, %v6497_v20 }
 0x2d9   :  { %v3439_v27 = vmax.f32 %v3437_v63, %v3438_v21  ;;  %6774 = vmatpush1.bf16.msra.mxu1 %v6773_v62  ;;  %4750 = vmatprep.mubr.f32.mxu1 %v7375_v52  ;;  %v3434_v62 = vmax.f32 %v3432_v57, %v3433_v61  ;;  %v6940_v61 = vadd.f32 %v8946_v47, %v8625_v12 }
 0x2da   :  { %v3268_v33 = vmax.f32 %v6933_v50, 0.0  ;;  %6775 = vmatprep.subr.bf16.mxu1 %v7376_v56  ;;  %v3444_v45 = vsel %vm3299_vm0, %v3267_v51, -inf  ;;  %v6496_v51 = vld [vmem:[%s9277_s3 + $0x180] sm:$0xff]  ;;  %v6499_v50 = vld [vmem:[%s9277_s3 + $0x198] sm:$0xff]  ;;  %v6942_v12 = vadd.f32 %v8946_v47, %v8631_v17  ;;  %v6501_v17 = vld [vmem:[%s9277_s3 + $0x1a8] sm:$0xff] }
 0x2db   :  { %v3440_v60 = vrot.slane %v3439_v27, 2 }
 0x2dc   :  { %v3445_v35 = vsel %vm3299_vm0, %v3268_v33, -inf }
 0x2dd   :  { %v3441_v3 = vmax.f32 %v3439_v27, %v3440_v60  ;;  %v3446_v9 = vmax.f32 %v3444_v45, %v3445_v35  ;;  %v3116_v41 = vpop.f32.mrb[68].mxu0  ;;  %v6938_v27 = vadd.f32 %v8946_v47, %v8615_v1  ;;  %v6780_v35 = vpack.c.bf16 %v6499_v50, %v6496_v51  ;;  %v6505_v50 = vld [vmem:[%s9277_s3 + $0x1b8] sm:$0xff] }
 0x2de   :  { %v6935_v13 = vadd.f32 %v6934_v53, %v3116_v41  ;;  %v3118_v0 = vpop.f32.mrb[69].mxu0 }
 0x2df   :  { %v3442_v19 = vrot.slane %v3441_v3, 1  ;;  %v3447_v14 = vrot.slane %v3446_v9, 4  ;;  %v3119_v22 = vpop.f32.mrb[70].mxu0 }
 0x2e0   :  { %v3269_v24 = vmax.f32 %v6935_v13, 0.0  ;;  %v6937_v63 = vadd.f32 %v6936_v32, %v3119_v22  ;;  %v3121_v4 = vpop.f32.mrb[71].mxu0 }
 0x2e1   :  { %v3443_v37 = vmax.f32 %v3441_v3, %v3442_v19  ;;  %v3448_v40 = vmax.f32 %v3446_v9, %v3447_v14 }
 0x2e2   :  { %v3270_v21 = vmax.f32 %v6937_v63, 0.0  ;;  %v3453_v57 = vsel %vm3299_vm0, %v3269_v24, -inf }
 0x2e3   :  { %v4683_v36 = vsel %vm3603_vm1, %v3443_v37, %v3434_v62  ;;  %v3449_v60 = vrot.slane %v3448_v40, 2  ;;  %v6944_v62 = vadd.f32 %v8946_v47, %v8641_v7  ;;  %v6508_v7 = vld [vmem:[%s9277_s3 + $0x1d0] sm:$0xff] }
 0x2e4   :  { %v3454_v33 = vsel %vm3299_vm0, %v3270_v21, -inf  ;;  %6494 = vmatmul.mubr.msk.f32.vlgmr.msra.gmra.mrb[128].mxu1 %vm3299_vm0, %v4683_v36 }
 0x2e5   :  { %v3455_v53 = vmax.f32 %v3453_v57, %v3454_v33  ;;  %v3124_v45 = vpop.f32.mrb[72].mxu0  ;;  %6777 = vmatpush3.bf16.msra.mxu1 %v6776_v23  ;;  %6663 = vmatprep.mubr.msk.f32.mxu1 %vm7377_vm2, %v7375_v52  ;;  %v3450_v46 = vmax.f32 %v3448_v40, %v3449_v60  ;;  %v6498_v23 = vld [vmem:[%s9277_s3 + $0x190] sm:$0xff] }
 0x2e6   :  { %v6939_v3 = vadd.f32 %v6938_v27, %v3124_v45  ;;  %v3126_v9 = vpop.f32.mrb[73].mxu0  ;;  %6779 = vmatprep.subr.bf16.mxu1 %v6778_v54  ;;  %v6783_v45 = vpack.c.bf16 %v6501_v17, %v6498_v23 }
 0x2e7   :  { %v3456_v1 = vrot.slane %v3455_v53, 4  ;;  %v3127_v41 = vpop.f32.mrb[74].mxu0  ;;  %v3451_v31 = vrot.slane %v3450_v46, 1  ;;  %v6507_v9 = vld [vmem:[%s9277_s3 + $0x1c8] sm:$0xff] }
 0x2e8   :  { %v3271_v32 = vmax.f32 %v6939_v3, 0.0  ;;  %v6941_v13 = vadd.f32 %v6940_v61, %v3127_v41  ;;  %v3129_v0 = vpop.f32.mrb[75].mxu0  ;;  %6664 = vmatmul.mubr.msk.f32.vlgmr.msra.gmra.mrb[144].mxu1 %vm3299_vm0, %v4683_v36  ;;  %v6785_v61 = vpack.c.bf16 %v6508_v7, %v6505_v50  ;;  %v6504_v3 = vld [vmem:[%s9277_s3 + $0x1b0] sm:$0xff]  ;;  %v6946_v41 = vadd.f32 %v8946_v47, %v8650_v15 }
 0x2e9   :  { %v3457_v8 = vmax.f32 %v3455_v53, %v3456_v1  ;;  %6781 = vmatpush1.bf16.msra.mxu1 %v6780_v35  ;;  %4906 = vmatprep.mubr.f32.mxu1 %v7375_v52  ;;  %v3452_v33 = vmax.f32 %v3450_v46, %v3451_v31  ;;  %v6952_v7 = vadd.f32 %v8946_v47, %v8664_v48  ;;  %v6516_v48 = vld [vmem:[%s9277_s3 + $0x200] sm:$0xff] }
 0x2ea   :  { %v3272_v19 = vmax.f32 %v6941_v13, 0.0  ;;  %6782 = vmatprep.subr.bf16.mxu1 %v7376_v56  ;;  %v3462_v22 = vsel %vm3299_vm0, %v3271_v32, -inf }
 0x2eb   :  { %v3458_v14 = vrot.slane %v3457_v8, 2 }
 0x2ec   :  { %v3463_v20 = vsel %vm3299_vm0, %v3272_v19, -inf  ;;  %v6787_v19 = vpack.c.bf16 %v6507_v9, %v6504_v3 }
 0x2ed   :  { %v3459_v24 = vmax.f32 %v3457_v8, %v3458_v14  ;;  %v3464_v63 = vmax.f32 %v3462_v22, %v3463_v20  ;;  %v3132_v4 = vpop.f32.mrb[76].mxu0  ;;  %v6948_v14 = vadd.f32 %v8946_v47, %v8654_v49  ;;  %v6950_v49 = vadd.f32 %v8946_v47, %v8660_v59  ;;  %v6509_v59 = vld [vmem:[%s9277_s3 + $0x1d8] sm:$0xff] }
 0x2ee   :  { %v6943_v37 = vadd.f32 %v6942_v12, %v3132_v4  ;;  %v3134_v40 = vpop.f32.mrb[77].mxu0 }
 0x2ef   :  { %v3460_v21 = vrot.slane %v3459_v24, 1  ;;  %v3465_v54 = vrot.slane %v3464_v63, 4  ;;  %v3135_v51 = vpop.f32.mrb[78].mxu0 }
 0x2f0   :  { %v3273_v36 = vmax.f32 %v6943_v37, 0.0  ;;  %v6945_v27 = vadd.f32 %v6944_v62, %v3135_v51  ;;  %v3137_v57 = vpop.f32.mrb[79].mxu0 }
 0x2f1   :  { %v3461_v60 = vmax.f32 %v3459_v24, %v3460_v21  ;;  %v3466_v53 = vmax.f32 %v3464_v63, %v3465_v54  ;;  %v6506_v57 = vld [vmem:[%s9277_s3 + $0x1c0] sm:$0xff] }
 0x2f2   :  { %v3274_v35 = vmax.f32 %v6945_v27, 0.0  ;;  %v3471_v32 = vsel %vm3299_vm0, %v3273_v36, -inf }
 0x2f3   :  { %v4839_v1 = vsel %vm3603_vm1, %v3461_v60, %v3452_v33  ;;  %v3467_v0 = vrot.slane %v3466_v53, 2 }
 0x2f4   :  { %v3472_v13 = vsel %vm3299_vm0, %v3274_v35, -inf  ;;  %6502 = vmatmul.mubr.msk.f32.vlgmr.msra.gmra.mrb[128].mxu1 %vm3299_vm0, %v4839_v1 }
 0x2f5   :  { %v3473_v46 = vmax.f32 %v3471_v32, %v3472_v13  ;;  %v3140_v8 = vpop.f32.mrb[80].mxu0  ;;  %6784 = vmatpush3.bf16.msra.mxu1 %v6783_v45  ;;  %6670 = vmatprep.mubr.msk.f32.mxu1 %vm7377_vm2, %v7375_v52  ;;  %v3468_v4 = vmax.f32 %v3466_v53, %v3467_v0  ;;  %v6513_v45 = vld [vmem:[%s9277_s3 + $0x1e8] sm:$0xff]  ;;  %v6790_v32 = vpack.c.bf16 %v6509_v59, %v6506_v57 }
 0x2f6   :  { %v6947_v12 = vadd.f32 %v6946_v41, %v3140_v8  ;;  %v3142_v22 = vpop.f32.mrb[81].mxu0  ;;  %6786 = vmatprep.subr.bf16.mxu1 %v6785_v61  ;;  %v6792_v0 = vpack.c.bf16 %v6516_v48, %v6513_v45  ;;  %v6515_v8 = vld [vmem:[%s9277_s3 + $0x1f8] sm:$0xff]  ;;  %v6514_v45 = vld [vmem:[%s9277_s3 + $0x1f0] sm:$0xff] }
 0x2f7   :  { %v3474_v15 = vrot.slane %v3473_v46, 4  ;;  %v3143_v20 = vpop.f32.mrb[82].mxu0  ;;  %v3469_v21 = vrot.slane %v3468_v4, 1 }
 0x2f8   :  { %v3275_v31 = vmax.f32 %v6947_v12, 0.0  ;;  %v6949_v24 = vadd.f32 %v6948_v14, %v3143_v20  ;;  %v3145_v63 = vpop.f32.mrb[83].mxu0  ;;  %6671 = vmatmul.mubr.msk.f32.vlgmr.msra.gmra.mrb[146].mxu1 %vm3299_vm0, %v4839_v1  ;;  %v6954_v14 = vadd.f32 %v8946_v47, %v8690_v55 }
 0x2f9   :  { %v3475_v62 = vmax.f32 %v3473_v46, %v3474_v15  ;;  %6788 = vmatpush1.bf16.msra.mxu1 %v6787_v19  ;;  %5062 = vmatprep.mubr.f32.mxu1 %v7375_v52  ;;  %v3470_v9 = vmax.f32 %v3468_v4, %v3469_v21  ;;  %v6512_v46 = vld [vmem:[%s9277_s3 + $0x1e0] sm:$0xff]  ;;  %v6956_v63 = vadd.f32 %v8946_v47, %v8696_v2 }
 0x2fa   :  { %v3276_v37 = vmax.f32 %v6949_v24, 0.0  ;;  %6789 = vmatprep.subr.bf16.mxu1 %v7376_v56  ;;  %v3480_v23 = vsel %vm3299_vm0, %v3275_v31, -inf  ;;  %v6794_v24 = vpack.c.bf16 %v6515_v8, %v6512_v46  ;;  %v6958_v2 = vadd.f32 %v8946_v47, %v8725_v26  ;;  %v6517_v26 = vld [vmem:[%s9277_s3 + $0x208] sm:$0xff] }
 0x2fb   :  { %v3476_v40 = vrot.slane %v3475_v62, 2  ;;  %v6797_v46 = vpack.c.bf16 %v6517_v26, %v6514_v45  ;;  %v6522_v26 = vld [vmem:[%s9277_s3 + $0x220] sm:$0xff] }
 0x2fc   :  { %v3481_v17 = vsel %vm3299_vm0, %v3276_v37, -inf }
 0x2fd   :  { %v3477_v54 = vmax.f32 %v3475_v62, %v3476_v40  ;;  %v3482_v51 = vmax.f32 %v3480_v23, %v3481_v17  ;;  %v3148_v50 = vpop.f32.mrb[84].mxu0 }
 0x2fe   :  { %v6951_v36 = vadd.f32 %v6950_v49, %v3148_v50  ;;  %v3150_v27 = vpop.f32.mrb[85].mxu0 }
 0x2ff   :  { %v3478_v33 = vrot.slane %v3477_v54, 1  ;;  %v3483_v60 = vrot.slane %v3482_v51, 4  ;;  %v3151_v53 = vpop.f32.mrb[86].mxu0 }
 0x300   :  { %v3277_v35 = vmax.f32 %v6951_v36, 0.0  ;;  %v6953_v61 = vadd.f32 %v6952_v7, %v3151_v53  ;;  %v3153_v3 = vpop.f32.mrb[87].mxu0 }
 0x301   :  { %v3479_v1 = vmax.f32 %v3477_v54, %v3478_v33  ;;  %v3484_v41 = vmax.f32 %v3482_v51, %v3483_v60  ;;  %v6960_v33 = vadd.f32 %v8946_v47, %v8737_v25  ;;  %v6521_v3 = vld [vmem:[%s9277_s3 + $0x218] sm:$0xff]  ;;  %v6524_v25 = vld [vmem:[%s9277_s3 + $0x230] sm:$0xff] }
 0x302   :  { %v3278_v13 = vmax.f32 %v6953_v61, 0.0  ;;  %v3489_v12 = vsel %vm3299_vm0, %v3277_v35, -inf }
 0x303   :  { %v4995_v19 = vsel %vm3603_vm1, %v3479_v1, %v3470_v9  ;;  %v3485_v15 = vrot.slane %v3484_v41, 2 }
 0x304   :  { %v3490_v22 = vsel %vm3299_vm0, %v3278_v13, -inf  ;;  %6510 = vmatmul.mubr.msk.f32.vlgmr.msra.gmra.mrb[128].mxu1 %vm3299_vm0, %v4995_v19 }
 0x305   :  { %v3491_v20 = vmax.f32 %v3489_v12, %v3490_v22  ;;  %v3156_v31 = vpop.f32.mrb[88].mxu0  ;;  %6791 = vmatpush3.bf16.msra.mxu1 %v6790_v32  ;;  %6677 = vmatprep.mubr.msk.f32.mxu1 %vm7377_vm2, %v7375_v52  ;;  %v3486_v17 = vmax.f32 %v3484_v41, %v3485_v15  ;;  %v6523_v12 = vld [vmem:[%s9277_s3 + $0x228] sm:$0xff]  ;;  %v6962_v15 = vadd.f32 %v8946_v47, %v8761_v42 }
 0x306   :  { %v6955_v4 = vadd.f32 %v6954_v14, %v3156_v31  ;;  %v3158_v62 = vpop.f32.mrb[89].mxu0  ;;  %6793 = vmatprep.subr.bf16.mxu1 %v6792_v0  ;;  %v6520_v14 = vld [vmem:[%s9277_s3 + $0x210] sm:$0xff] }
 0x307   :  { %v3492_v55 = vrot.slane %v3491_v20, 4  ;;  %v3159_v37 = vpop.f32.mrb[90].mxu0  ;;  %v3487_v36 = vrot.slane %v3486_v17, 1  ;;  %v6801_v62 = vpack.c.bf16 %v6523_v12, %v6520_v14  ;;  %v6531_v14 = vld [vmem:[%s9277_s3 + $0x258] sm:$0xff] }
 0x308   :  { %v3279_v40 = vmax.f32 %v6955_v4, 0.0  ;;  %v6957_v49 = vadd.f32 %v6956_v63, %v3159_v37  ;;  %v3161_v23 = vpop.f32.mrb[91].mxu0  ;;  %6678 = vmatmul.mubr.msk.f32.vlgmr.msra.gmra.mrb[148].mxu1 %vm3299_vm0, %v4995_v19  ;;  %v6799_v19 = vpack.c.bf16 %v6524_v25, %v6521_v3  ;;  %v6529_v3 = vld [vmem:[%s9277_s3 + $0x248] sm:$0xff] }
 0x309   :  { %v3493_v21 = vmax.f32 %v3491_v20, %v3492_v55  ;;  %6795 = vmatpush1.bf16.msra.mxu1 %v6794_v24  ;;  %5218 = vmatprep.mubr.f32.mxu1 %v7375_v52  ;;  %v3488_v32 = vmax.f32 %v3486_v17, %v3487_v36  ;;  %v6964_v55 = vadd.f32 %v8946_v47, %v8767_v58 }
 0x30a   :  { %v3280_v54 = vmax.f32 %v6957_v49, 0.0  ;;  %6796 = vmatprep.subr.bf16.mxu1 %v7376_v56  ;;  %v3498_v50 = vsel %vm3299_vm0, %v3279_v40, -inf  ;;  %v6966_v58 = vadd.f32 %v8946_v47, %v8776_v43  ;;  %v6525_v43 = vld [vmem:[%s9277_s3 + $0x238] sm:$0xff] }
 0x30b   :  { %v3494_v51 = vrot.slane %v3493_v21, 2 }
 0x30c   :  { %v3499_v7 = vsel %vm3299_vm0, %v3280_v54, -inf }
 0x30d   :  { %v3495_v27 = vmax.f32 %v3493_v21, %v3494_v51  ;;  %v3500_v57 = vmax.f32 %v3498_v50, %v3499_v7  ;;  %v3164_v59 = vpop.f32.mrb[92].mxu0 }
 0x30e   :  { %v6959_v60 = vadd.f32 %v6958_v2, %v3164_v59  ;;  %v3166_v53 = vpop.f32.mrb[93].mxu0 }
 0x30f   :  { %v3496_v48 = vrot.slane %v3495_v27, 1  ;;  %v3501_v35 = vrot.slane %v3500_v57, 4  ;;  %v3167_v61 = vpop.f32.mrb[94].mxu0 }
 0x310   :  { %v3281_v9 = vmax.f32 %v6959_v60, 0.0  ;;  %v6961_v1 = vadd.f32 %v6960_v33, %v3167_v61  ;;  %v3169_v41 = vpop.f32.mrb[95].mxu0  ;;  %v6968_v60 = vadd.f32 %v8946_v47, %v8780_v34  ;;  %v6532_v34 = vld [vmem:[%s9277_s3 + $0x260] sm:$0xff] }
 0x311   :  { %v3497_v13 = vmax.f32 %v3495_v27, %v3496_v48  ;;  %v3502_v0 = vmax.f32 %v3500_v57, %v3501_v35 }
 0x312   :  { %v3282_v8 = vmax.f32 %v6961_v1, 0.0  ;;  %v3507_v20 = vsel %vm3299_vm0, %v3281_v9, -inf }
 0x313   :  { %v5151_v22 = vsel %vm3603_vm1, %v3497_v13, %v3488_v32  ;;  %v3503_v24 = vrot.slane %v3502_v0, 2 }
 0x314   :  { %v3508_v31 = vsel %vm3299_vm0, %v3282_v8, -inf  ;;  %6518 = vmatmul.mubr.msk.f32.vlgmr.msra.gmra.mrb[128].mxu1 %vm3299_vm0, %v5151_v22  ;;  %v6806_v8 = vpack.c.bf16 %v6532_v34, %v6529_v3 }
 0x315   :  { %v3509_v63 = vmax.f32 %v3507_v20, %v3508_v31  ;;  %v3172_v4 = vpop.f32.mrb[96].mxu0  ;;  %6798 = vmatpush3.bf16.msra.mxu1 %v6797_v46  ;;  %6684 = vmatprep.mubr.msk.f32.mxu1 %vm7377_vm2, %v7375_v52  ;;  %v3504_v54 = vmax.f32 %v3502_v0, %v3503_v24  ;;  %v6804_v0 = vpack.c.bf16 %v6525_v43, %v6522_v26  ;;  %v6537_v43 = vld [vmem:[%s9277_s3 + $0x278] sm:$0xff] }
 0x316   :  { %v6963_v37 = vadd.f32 %v6962_v15, %v3172_v4  ;;  %v3174_v40 = vpop.f32.mrb[97].mxu0  ;;  %6800 = vmatprep.subr.bf16.mxu1 %v6799_v19  ;;  %v6528_v19 = vld [vmem:[%s9277_s3 + $0x240] sm:$0xff] }
 0x317   :  { %v3510_v42 = vrot.slane %v3509_v63, 4  ;;  %v3175_v49 = vpop.f32.mrb[98].mxu0  ;;  %v3505_v27 = vrot.slane %v3504_v54, 1  ;;  %v6808_v4 = vpack.c.bf16 %v6531_v14, %v6528_v19 }
 0x318   :  { %v3283_v23 = vmax.f32 %v6963_v37, 0.0  ;;  %v6965_v17 = vadd.f32 %v6964_v55, %v3175_v49  ;;  %v3177_v21 = vpop.f32.mrb[99].mxu0  ;;  %6685 = vmatmul.mubr.msk.f32.vlgmr.msra.gmra.mrb[150].mxu1 %vm3299_vm0, %v5151_v22  ;;  %v6970_v22 = vadd.f32 %v8946_v47, %v8806_v30 }
 0x319   :  { %v3511_v51 = vmax.f32 %v3509_v63, %v3510_v42  ;;  %6802 = vmatpush1.bf16.msra.mxu1 %v6801_v62  ;;  %5374 = vmatprep.mubr.f32.mxu1 %v7375_v52  ;;  %v3506_v41 = vmax.f32 %v3504_v54, %v3505_v27  ;;  %v6972_v62 = vadd.f32 %v8946_v47, %v8812_v11 }
 0x31a   :  { %v3284_v2 = vmax.f32 %v6965_v17, 0.0  ;;  %6803 = vmatprep.subr.bf16.mxu1 %v7376_v56  ;;  %v3516_v7 = vsel %vm3299_vm0, %v3283_v23, -inf  ;;  %v6974_v11 = vadd.f32 %v8946_v47, %v8821_v5  ;;  %v6533_v5 = vld [vmem:[%s9277_s3 + $0x268] sm:$0xff] }
 0x31b   :  { %v3512_v50 = vrot.slane %v3511_v51, 2 }
 0x31c   :  { %v3517_v36 = vsel %vm3299_vm0, %v3284_v2, -inf }
 0x31d   :  { %v3513_v57 = vmax.f32 %v3511_v51, %v3512_v50  ;;  %v3518_v59 = vmax.f32 %v3516_v7, %v3517_v36  ;;  %v3180_v33 = vpop.f32.mrb[100].mxu0 }
 0x31e   :  { %v6967_v53 = vadd.f32 %v6966_v58, %v3180_v33  ;;  %v3182_v45 = vpop.f32.mrb[101].mxu0 }
 0x31f   :  { %v3514_v48 = vrot.slane %v3513_v57, 1  ;;  %v3519_v35 = vrot.slane %v3518_v59, 4  ;;  %v3183_v61 = vpop.f32.mrb[102].mxu0 }
 0x320   :  { %v3285_v25 = vmax.f32 %v6967_v53, 0.0  ;;  %v6969_v9 = vadd.f32 %v6968_v60, %v3183_v61  ;;  %v3185_v1 = vpop.f32.mrb[103].mxu0  ;;  %v6530_v60 = vld [vmem:[%s9277_s3 + $0x250] sm:$0xff] }
 0x321   :  { %v3515_v32 = vmax.f32 %v3513_v57, %v3514_v48  ;;  %v3520_v13 = vmax.f32 %v3518_v59, %v3519_v35  ;;  %v6976_v57 = vadd.f32 %v8946_v47, %v8825_v44  ;;  %v6540_v44 = vld [vmem:[%s9277_s3 + $0x290] sm:$0xff] }
 0x322   :  { %v3286_v46 = vmax.f32 %v6969_v9, 0.0  ;;  %v3525_v15 = vsel %vm3299_vm0, %v3285_v25, -inf  ;;  %v6811_v9 = vpack.c.bf16 %v6533_v5, %v6530_v60 }
 0x323   :  { %v5307_v12 = vsel %vm3603_vm1, %v3515_v32, %v3506_v41  ;;  %v3521_v31 = vrot.slane %v3520_v13, 2  ;;  %v6813_v41 = vpack.c.bf16 %v6540_v44, %v6537_v43  ;;  %v6536_v32 = vld [vmem:[%s9277_s3 + $0x270] sm:$0xff] }
 0x324   :  { %v3526_v20 = vsel %vm3299_vm0, %v3286_v46, -inf  ;;  %6526 = vmatmul.mubr.msk.f32.vlgmr.msra.gmra.mrb[128].mxu1 %vm3299_vm0, %v5307_v12  ;;  %v6978_v46 = vadd.f32 %v8946_v47, %v8851_v16 }
 0x325   :  { %v3527_v24 = vmax.f32 %v3525_v15, %v3526_v20  ;;  %v3188_v63 = vpop.f32.mrb[104].mxu0  ;;  %6805 = vmatpush3.bf16.msra.mxu1 %v6804_v0  ;;  %6691 = vmatprep.mubr.msk.f32.mxu1 %vm7377_vm2, %v7375_v52  ;;  %v3522_v17 = vmax.f32 %v3520_v13, %v3521_v31  ;;  %v6539_v13 = vld [vmem:[%s9277_s3 + $0x288] sm:$0xff]  ;;  %v6980_v20 = vadd.f32 %v8946_v47, %v8857_v6 }
 0x326   :  { %v6971_v55 = vadd.f32 %v6970_v22, %v3188_v63  ;;  %v3190_v37 = vpop.f32.mrb[105].mxu0  ;;  %6807 = vmatprep.subr.bf16.mxu1 %v6806_v8  ;;  %v6815_v15 = vpack.c.bf16 %v6539_v13, %v6536_v32  ;;  %v6982_v6 = vadd.f32 %v8946_v47, %v8866_v29  ;;  %v6541_v29 = vld [vmem:[%s9277_s3 + $0x298] sm:$0xff]  ;;  %v6988_v13 = vadd.f32 %v8946_v47, %v8902_v18 }
 0x327   :  { %v3528_v30 = vrot.slane %v3527_v24, 4  ;;  %v3191_v40 = vpop.f32.mrb[106].mxu0  ;;  %v3523_v58 = vrot.slane %v3522_v17, 1  ;;  %v6990_v18 = vadd.f32 %v8946_v47, %v8911_v28  ;;  %v6549_v28 = vld [vmem:[%s9277_s3 + $0x2c8] sm:$0xff] }
 0x328   :  { %v3287_v42 = vmax.f32 %v6971_v55, 0.0  ;;  %v6973_v49 = vadd.f32 %v6972_v62, %v3191_v40  ;;  %v3193_v23 = vpop.f32.mrb[107].mxu0  ;;  %6692 = vmatmul.mubr.msk.f32.vlgmr.msra.gmra.mrb[152].mxu1 %vm3299_vm0, %v5307_v12 }
 0x329   :  { %v3529_v21 = vmax.f32 %v3527_v24, %v3528_v30  ;;  %6809 = vmatpush1.bf16.msra.mxu1 %v6808_v4  ;;  %5530 = vmatprep.mubr.f32.mxu1 %v7375_v52  ;;  %v3524_v3 = vmax.f32 %v3522_v17, %v3523_v58  ;;  %v6538_v58 = vld [vmem:[%s9277_s3 + $0x280] sm:$0xff] }
 0x32a   :  { %v3288_v54 = vmax.f32 %v6973_v49, 0.0  ;;  %6810 = vmatprep.subr.bf16.mxu1 %v7376_v56  ;;  %v3534_v2 = vsel %vm3299_vm0, %v3287_v42, -inf }
 0x32b   :  { %v3530_v51 = vrot.slane %v3529_v21, 2 }
 0x32c   :  { %v3535_v50 = vsel %vm3299_vm0, %v3288_v54, -inf }
 0x32d   :  { %v3531_v7 = vmax.f32 %v3529_v21, %v3530_v51  ;;  %v3536_v36 = vmax.f32 %v3534_v2, %v3535_v50  ;;  %v3196_v27 = vpop.f32.mrb[108].mxu0 }
 0x32e   :  { %v6975_v59 = vadd.f32 %v6974_v11, %v3196_v27  ;;  %v3198_v33 = vpop.f32.mrb[109].mxu0  ;;  %v6984_v11 = vadd.f32 %v8946_v47, %v8870_v10  ;;  %v6548_v10 = vld [vmem:[%s9277_s3 + $0x2c0] sm:$0xff] }
 0x32f   :  { %v3532_v53 = vrot.slane %v3531_v7, 1  ;;  %v3537_v45 = vrot.slane %v3536_v36, 4  ;;  %v3199_v26 = vpop.f32.mrb[110].mxu0 }
 0x330   :  { %v3289_v48 = vmax.f32 %v6975_v59, 0.0  ;;  %v6977_v35 = vadd.f32 %v6976_v57, %v3199_v26  ;;  %v3201_v61 = vpop.f32.mrb[111].mxu0  ;;  %v6545_v57 = vld [vmem:[%s9277_s3 + $0x2a8] sm:$0xff]  ;;  %v6818_v26 = vpack.c.bf16 %v6541_v29, %v6538_v58 }
 0x331   :  { %v3533_v34 = vmax.f32 %v3531_v7, %v3532_v53  ;;  %v3538_v25 = vmax.f32 %v3536_v36, %v3537_v45  ;;  %v6820_v44 = vpack.c.bf16 %v6548_v10, %v6545_v57 }
 0x332   :  { %v3290_v1 = vmax.f32 %v6977_v35, 0.0  ;;  %v3543_v8 = vsel %vm3299_vm0, %v3289_v48, -inf  ;;  %v6544_v48 = vld [vmem:[%s9277_s3 + $0x2a0] sm:$0xff]  ;;  %v6547_v35 = vld [vmem:[%s9277_s3 + $0x2b8] sm:$0xff] }
 0x333   :  { %v5463_v0 = vsel %vm3603_vm1, %v3533_v34, %v3524_v3  ;;  %v3539_v14 = vrot.slane %v3538_v25, 2  ;;  %v6986_v3 = vadd.f32 %v8946_v47, %v8896_v38  ;;  %v6822_v32 = vpack.c.bf16 %v6547_v35, %v6544_v48 }
 0x334   :  { %v3544_v19 = vsel %vm3299_vm0, %v3290_v1, -inf  ;;  %6534 = vmatmul.mubr.msk.f32.vlgmr.msra.gmra.mrb[128].mxu1 %vm3299_vm0, %v5463_v0 }
 0x335   :  { %v3545_v12 = vmax.f32 %v3543_v8, %v3544_v19  ;;  %v3204_v22 = vpop.f32.mrb[112].mxu0  ;;  %6812 = vmatpush3.bf16.msra.mxu1 %v6811_v9  ;;  %6698 = vmatprep.mubr.msk.f32.mxu1 %vm7377_vm2, %v7375_v52  ;;  %v3540_v37 = vmax.f32 %v3538_v25, %v3539_v14 }
 0x336   :  { %v6979_v31 = vadd.f32 %v6978_v46, %v3204_v22  ;;  %v3206_v24 = vpop.f32.mrb[113].mxu0  ;;  %6814 = vmatprep.subr.bf16.mxu1 %v6813_v41 }
 0x337   :  { %v3546_v16 = vrot.slane %v3545_v12, 4  ;;  %v3207_v63 = vpop.f32.mrb[114].mxu0  ;;  %v3541_v17 = vrot.slane %v3540_v37, 1 }
 0x338   :  { %v3291_v4 = vmax.f32 %v6979_v31, 0.0  ;;  %v6981_v62 = vadd.f32 %v6980_v20, %v3207_v63  ;;  %v3209_v55 = vpop.f32.mrb[115].mxu0  ;;  %6699 = vmatmul.mubr.msk.f32.vlgmr.msra.gmra.mrb[154].mxu1 %vm3299_vm0, %v5463_v0 }
 0x339   :  { %v3547_v30 = vmax.f32 %v3545_v12, %v3546_v16  ;;  %6816 = vmatpush1.bf16.msra.mxu1 %v6815_v15  ;;  %5686 = vmatprep.mubr.f32.mxu1 %v7375_v52  ;;  %v3542_v5 = vmax.f32 %v3540_v37, %v3541_v17  ;;  %v6992_v37 = vadd.f32 %v8946_v47, %v8915_v39  ;;  %v6553_v17 = vld [vmem:[%s9277_s3 + $0x2d8] sm:$0xff]  ;;  %v6556_v39 = vld [vmem:[%s9277_s3 + $0x2f0] sm:$0xff] }
 0x33a   :  { %v3292_v40 = vmax.f32 %v6981_v62, 0.0  ;;  %6817 = vmatprep.subr.bf16.mxu1 %v7376_v56  ;;  %v3552_v49 = vsel %vm3299_vm0, %v3291_v4, -inf  ;;  %v6827_v29 = vpack.c.bf16 %v6556_v39, %v6553_v17 }
 0x33b   :  { %v3548_v42 = vrot.slane %v3547_v30, 2 }
 0x33c   :  { %v3553_v23 = vsel %vm3299_vm0, %v3292_v40, -inf }
 0x33d   :  { %v3549_v21 = vmax.f32 %v3547_v30, %v3548_v42  ;;  %v3554_v54 = vmax.f32 %v3552_v49, %v3553_v23  ;;  %v3212_v51 = vpop.f32.mrb[116].mxu0  ;;  %v6546_v42 = vld [vmem:[%s9277_s3 + $0x2b0] sm:$0xff] }
 0x33e   :  { %v6983_v2 = vadd.f32 %v6982_v6, %v3212_v51  ;;  %v3214_v50 = vpop.f32.mrb[117].mxu0 }
 0x33f   :  { %v3550_v7 = vrot.slane %v3549_v21, 1  ;;  %v3555_v36 = vrot.slane %v3554_v54, 4  ;;  %v3215_v27 = vpop.f32.mrb[118].mxu0  ;;  %v6825_v50 = vpack.c.bf16 %v6549_v28, %v6546_v42 }
 0x340   :  { %v3293_v59 = vmax.f32 %v6983_v2, 0.0  ;;  %v6985_v33 = vadd.f32 %v6984_v11, %v3215_v27  ;;  %v3217_v60 = vpop.f32.mrb[119].mxu0 }
 0x341   :  { %v3551_v53 = vmax.f32 %v3549_v21, %v3550_v7  ;;  %v3556_v45 = vmax.f32 %v3554_v54, %v3555_v36  ;;  %v6552_v7 = vld [vmem:[%s9277_s3 + $0x2d0] sm:$0xff]  ;;  %v6555_v36 = vld [vmem:[%s9277_s3 + $0x2e8] sm:$0xff] }
 0x342   :  { %v3294_v43 = vmax.f32 %v6985_v33, 0.0  ;;  %v3561_v34 = vsel %vm3299_vm0, %v3293_v59, -inf  ;;  %v6829_v60 = vpack.c.bf16 %v6555_v36, %v6552_v7 }
 0x343   :  { %v5619_v61 = vsel %vm3603_vm1, %v3551_v53, %v3542_v5  ;;  %v3557_v9 = vrot.slane %v3556_v45, 2 }
 0x344   :  { %v3562_v25 = vsel %vm3299_vm0, %v3294_v43, -inf  ;;  %6542 = vmatmul.mubr.msk.f32.vlgmr.msra.gmra.mrb[128].mxu1 %vm3299_vm0, %v5619_v61 }
 0x345   :  { %v3563_v1 = vmax.f32 %v3561_v34, %v3562_v25  ;;  %v3220_v41 = vpop.f32.mrb[120].mxu0  ;;  %6819 = vmatpush3.bf16.msra.mxu1 %v6818_v26  ;;  %6705 = vmatprep.mubr.msk.f32.mxu1 %vm7377_vm2, %v7375_v52  ;;  %v3558_v22 = vmax.f32 %v3556_v45, %v3557_v9 }
 0x346   :  { %v6987_v0 = vadd.f32 %v6986_v3, %v3220_v41  ;;  %v3222_v46 = vpop.f32.mrb[121].mxu0  ;;  %6821 = vmatprep.subr.bf16.mxu1 %v6820_v44  ;;  %v6557_v3 = vld [vmem:[%s9277_s3 + $0x2f8] sm:$0xff] }
 0x347   :  { %v3564_v38 = vrot.slane %v3563_v1, 4  ;;  %v3223_v8 = vpop.f32.mrb[122].mxu0  ;;  %v3559_v63 = vrot.slane %v3558_v22, 1 }
 0x348   :  { %v3295_v19 = vmax.f32 %v6987_v0, 0.0  ;;  %v6989_v14 = vadd.f32 %v6988_v13, %v3223_v8  ;;  %v3225_v12 = vpop.f32.mrb[123].mxu0  ;;  %6706 = vmatmul.mubr.msk.f32.vlgmr.msra.gmra.mrb[156].mxu1 %vm3299_vm0, %v5619_v61  ;;  %v6554_v61 = vld [vmem:[%s9277_s3 + $0x2e0] sm:$0xff] }
 0x349   :  { %v3565_v15 = vmax.f32 %v3563_v1, %v3564_v38  ;;  %6823 = vmatpush1.bf16.msra.mxu1 %v6822_v32  ;;  %5842 = vmatprep.mubr.f32.mxu1 %v7375_v52  ;;  %v3560_v51 = vmax.f32 %v3558_v22, %v3559_v63  ;;  %v6832_v1 = vpack.c.bf16 %v6557_v3, %v6554_v61 }
 0x34a   :  { %v3296_v20 = vmax.f32 %v6989_v14, 0.0  ;;  %6824 = vmatprep.subr.bf16.mxu1 %v7376_v56  ;;  %v3570_v24 = vsel %vm3299_vm0, %v3295_v19, -inf }
 0x34b   :  { %v3566_v31 = vrot.slane %v3565_v15, 2 }
 0x34c   :  { %v3571_v16 = vsel %vm3299_vm0, %v3296_v20, -inf }
 0x34d   :  { %v3567_v4 = vmax.f32 %v3565_v15, %v3566_v31  ;;  %v3572_v62 = vmax.f32 %v3570_v24, %v3571_v16  ;;  %v3228_v55 = vpop.f32.mrb[124].mxu0 }
 0x34e   :  { %v6991_v30 = vadd.f32 %v6990_v18, %v3228_v55  ;;  %v3230_v40 = vpop.f32.mrb[125].mxu0 }
 0x34f   :  { %v3568_v6 = vrot.slane %v3567_v4, 1  ;;  %v3573_v49 = vrot.slane %v3572_v62, 4  ;;  %v3231_v23 = vpop.f32.mrb[126].mxu0 }
 0x350   :  { %v3297_v47 = vmax.f32 %v6991_v30, 0.0  ;;  %v6993_v21 = vadd.f32 %v6992_v37, %v3231_v23  ;;  %v3233_v54 = vpop.f32.mrb[127].mxu0 }
 0x351   :  { %v3569_v11 = vmax.f32 %v3567_v4, %v3568_v6  ;;  %v3574_v2 = vmax.f32 %v3572_v62, %v3573_v49 }
 0x352   :  { %v3298_v58 = vmax.f32 %v6993_v21, 0.0  ;;  %v3579_v57 = vsel %vm3299_vm0, %v3297_v47, -inf }
 0x353   :  { %v5775_v27 = vsel %vm3603_vm1, %v3569_v11, %v3560_v51  ;;  %v3575_v59 = vrot.slane %v3574_v2, 2 }
 0x354   :  { %v3580_v10 = vsel %vm3299_vm0, %v3298_v58, -inf  ;;  %6550 = vmatmul.mubr.msk.f32.vlgmr.msra.gmra.mrb[128].mxu1 %vm3299_vm0, %v5775_v27 }
 0x355   :  { %v3581_v33 = vmax.f32 %v3579_v57, %v3580_v10  ;;  %6826 = vmatpush3.bf16.msra.mxu1 %v6825_v50  ;;  %6712 = vmatprep.mubr.msk.f32.mxu1 %vm7377_vm2, %v7375_v52  ;;  %v3576_v53 = vmax.f32 %v3574_v2, %v3575_v59  ;;  %v6561_v59 = vld [vmem:[%s9278_s4] ss:$0 sm:$0xff] }
 0x356   :  { %6828 = vmatprep.subr.bf16.mxu1 %v6827_v29 }
 0x357   :  { %v3582_v5 = vrot.slane %v3581_v33, 4  ;;  %v3577_v48 = vrot.slane %v3576_v53, 1 }
 0x358   :  { %6713 = vmatmul.mubr.msk.f32.vlgmr.msra.gmra.mrb[158].mxu1 %vm3299_vm0, %v5775_v27 }
 0x359   :  { %v3583_v45 = vmax.f32 %v3581_v33, %v3582_v5  ;;  %6830 = vmatpush1.bf16.msra.mxu1 %v6829_v60  ;;  %5998 = vmatprep.mubr.f32.mxu1 %v7375_v52  ;;  %v3578_v25 = vmax.f32 %v3576_v53, %v3577_v48 }
 0x35a   :  { %6831 = vmatprep.subr.bf16.mxu1 %v7376_v56 }
 0x35b   :  { %v3584_v26 = vrot.slane %v3583_v45, 2  ;;  %v3744_v43 = vpop.f32.mrb[130].mxu1 }
 0x35c   :  { %v6616_v44 = vpop.f32.mrb[131].mxu1 }
 0x35d   :  { %v3585_v35 = vmax.f32 %v3583_v45, %v3584_v26 }
 0x35f   :  { %v3586_v34 = vrot.slane %v3585_v35, 1 }
 0x361   :  { %v3587_v9 = vmax.f32 %v3585_v35, %v3586_v34 }
 0x363   :  { %v3890_v41 = vpop.f32.mrb[132].mxu1  ;;  %v5931_v56 = vsel %vm3603_vm1, %v3587_v9, %v3578_v25 }
 0x364   :  { %v3891_v32 = vadd.f32 %v3890_v41, %v3744_v43  ;;  %v6623_v13 = vpop.f32.mrb[133].mxu1  ;;  %6558 = vmatmul.mubr.msk.f32.vlgmr.msra.gmra.mrb[128].mxu1 %vm3299_vm0, %v5931_v56 }
 0x365   :  { %6833 = vmatpush3.bf16.msra.mxu1 %v6832_v1  ;;  %6719 = vmatprep.mubr.msk.f32.mxu1 %vm7377_vm2, %v7375_v52 }
 0x368   :  { %6720 = vmatmul.mubr.msk.f32.vlgmr.msra.gmra.mrb[160].mxu1 %vm3299_vm0, %v5931_v56 }
 0x36b   :  { %v4043_v0 = vpop.f32.mrb[134].mxu1 }
 0x36c   :  { %v4049_v46 = vadd.f32 %v4043_v0, %v3891_v32  ;;  %v6630_v38 = vpop.f32.mrb[135].mxu1 }
 0x37b   :  { %v4199_v8 = vpop.f32.mrb[136].mxu1 }
 0x37c   :  { %v4205_v19 = vadd.f32 %v4199_v8, %v4049_v46  ;;  %v6637_v14 = vpop.f32.mrb[137].mxu1 }
 0x38b   :  { %v4355_v12 = vpop.f32.mrb[138].mxu1 }
 0x38c   :  { %v4361_v22 = vadd.f32 %v4355_v12, %v4205_v19  ;;  %v6644_v15 = vpop.f32.mrb[139].mxu1 }
 0x39b   :  { %v4511_v20 = vpop.f32.mrb[140].mxu1 }
 0x39c   :  { %v4517_v31 = vadd.f32 %v4511_v20, %v4361_v22  ;;  %v6651_v18 = vpop.f32.mrb[141].mxu1 }
 0x3ab   :  { %v4667_v24 = vpop.f32.mrb[142].mxu1 }
 0x3ac   :  { %v4673_v16 = vadd.f32 %v4667_v24, %v4517_v31  ;;  %v6658_v63 = vpop.f32.mrb[143].mxu1 }
 0x3bb   :  { %v4823_v4 = vpop.f32.mrb[144].mxu1 }
 0x3bc   :  { %v4829_v62 = vadd.f32 %v4823_v4, %v4673_v16  ;;  %v6665_v52 = vpop.f32.mrb[145].mxu1 }
 0x3cb   :  { %v4979_v55 = vpop.f32.mrb[146].mxu1 }
 0x3cc   :  { %v4985_v37 = vadd.f32 %v4979_v55, %v4829_v62  ;;  %v6672_v30 = vpop.f32.mrb[147].mxu1 }
 0x3db   :  { %v5135_v40 = vpop.f32.mrb[148].mxu1 }
 0x3dc   :  { %v5141_v42 = vadd.f32 %v5135_v40, %v4985_v37  ;;  %v6679_v28 = vpop.f32.mrb[149].mxu1 }
 0x3eb   :  { %v5291_v6 = vpop.f32.mrb[150].mxu1 }
 0x3ec   :  { %v5297_v49 = vadd.f32 %v5291_v6, %v5141_v42  ;;  %v6686_v23 = vpop.f32.mrb[151].mxu1 }
 0x3fb   :  { %v5447_v17 = vpop.f32.mrb[152].mxu1 }
 0x3fc   :  { %v5453_v39 = vadd.f32 %v5447_v17, %v5297_v49  ;;  %v6693_v47 = vpop.f32.mrb[153].mxu1 }
 0x40b   :  { %v5603_v21 = vpop.f32.mrb[154].mxu1 }
 0x40c   :  { %v5609_v54 = vadd.f32 %v5603_v21, %v5453_v39  ;;  %v6700_v51 = vpop.f32.mrb[155].mxu1 }
 0x41b   :  { %v5759_v11 = vpop.f32.mrb[156].mxu1 }
 0x41c   :  { %v5765_v2 = vadd.f32 %v5759_v11, %v5609_v54  ;;  %v6707_v50 = vpop.f32.mrb[157].mxu1 }
 0x42b   :  { %v5915_v58 = vpop.f32.mrb[158].mxu1 }
 0x42c   :  { %v5921_v29 = vadd.f32 %v5915_v58, %v5765_v2  ;;  %v6714_v7 = vpop.f32.mrb[159].mxu1 }
 0x437   :  { %v6000_v36 = vpop.f32.mrb[128].mxu1 }
 0x438   :  { %v6002_v27 = vpop.f32.mrb[129].mxu1 }
 0x439   :  { %v6080_v57 = vcombine.low %v6000_v36, %v6002_v27 }
 0x43b   :  { %6560 = vst.sshfl [vmem:[%s9279_s5] sm:$0x33 pattern:$0x76325410] %v6080_v57  ;;  %v6071_v10 = vpop.f32.mrb[160].mxu1 }
 0x43c   :  { %v6077_v33 = vadd.f32 %v6071_v10, %v5921_v29  ;;  %v6721_v60 = vpop.f32.mrb[161].mxu1 }
 0x43e   :  { %v6097_v5 = vadd.f32 %v6561_v59, %v6077_v33 }
 0x440   :  { %6098 = vst [vmem:[#allocation2] sm:$0x3] %v6097_v5 }
 0x441   :  { %7361 = shalt.err (!%p7358_p4)
}
 0x442   :  { %s7362_s15 = scalar_lea.hbm %s9280_s6, 32 }
 0x443   :  { %p7363_p5 = scmp.ne.s32.totalorder %s9280_s6, %s7362_s15  ;;  %p7366_p6 = scmp.lt.u32.totalorder %s7362_s15, %s9280_s6 }
 0x445   :  { %p7368_p7 = pnand %p7366_p6, %p7363_p5 }
 0x447   :  { %7371 = shalt.err (!%p7368_p7)
}
 0x448   :  { %6110 = dma.vmem_to_hbm [thread:$0]  %s6108_s1, 32, %s9280_s6, [#allocation3]  }
 0x449   :  { %7372 = dma.done.wait [#allocation3], 32  }
 0x44a   :  { %7373 = vsyncadd [#allocation3], 4294967264 }
 0x44b   :  { %6116 = vsyncpa [#allocation3], 1 }

</bundles_post_ra>
